<compile_context>
chip_gen: v5e
topology: v5e:2x2
jax: 0.10.0
libtpu: 0.0.40
codegen_flags: <defaults>
</compile_context>

<pallas_src>
import math

import jax
import jax.numpy as jnp
from jax.experimental import pallas as pl
from jax.experimental.pallas import tpu as pltpu  # noqa: F401  (TPU backend)

D_MODEL = 128
NHEAD = 4
DIM_FF = 256
NLAYERS = 2
LN_EPS = 1e-5


# ---------------------------------------------------------------------------
# In-kernel helpers
# ---------------------------------------------------------------------------
def _layernorm(x, g, b):
    mean = jnp.mean(x, axis=-1, keepdims=True)
    c = x - mean
    var = jnp.mean(c * c, axis=-1, keepdims=True)
    return c * jax.lax.rsqrt(var + LN_EPS) * g + b


def _make_encoder_kernel(batch, seq, d_model, nhead, nlayers):
    d_head = d_model // nhead
    scale = 1.0 / math.sqrt(d_head)
    bt = batch * seq

    def kernel(x_ref, bias_ref,
               win_ref, bin_ref, wout_ref, bout_ref,
               ln1g_ref, ln1b_ref, w1_ref, b1_ref, w2_ref, b2_ref,
               ln2g_ref, ln2b_ref, o_ref):
        # ---- token fusion prologue: embedding + positional + modality ------
        x = (x_ref[...] + bias_ref[...]).astype(jnp.float32)      # (B, S, D)
        x = x.reshape(bt, d_model)                                # (B*S, D) rows for MXU

        # Per-head lane masks built ONCE (hoisted out of the layer loop).
        lane = jax.lax.broadcasted_iota(jnp.int32, (1, d_model), 1)
        head_masks = [
            jnp.logical_and(lane >= h * d_head,
                            lane < (h + 1) * d_head).astype(jnp.float32)  # (1, D)
            for h in range(nhead)
        ]

        for l in range(nlayers):                                  # static unroll over layers
            win = win_ref[l]                                      # (D, 3D)
            bin_ = bin_ref[l]                                     # (1, 3D)
            wout = wout_ref[l]                                    # (D, D)
            bout = bout_ref[l]                                    # (1, D)

            # ---- multi-head self-attention ---------------------------------
            qkv = jnp.dot(x, win, preferred_element_type=jnp.float32) + bin_
            q = qkv[:, :d_model].reshape(batch, seq, d_model)
            k = qkv[:, d_model:2 * d_model].reshape(batch, seq, d_model)
            v = qkv[:, 2 * d_model:].reshape(batch, seq, d_model)

            attn = jnp.zeros((batch, seq, d_model), jnp.float32)
            for h in range(nhead):                                # static unroll over heads
                m = head_masks[h]
                # Masked full-width contraction == Q_h @ K_h^T (no .T, no slices).
                s = jnp.einsum('bqd,bkd->bqk', q * m, k,
                               preferred_element_type=jnp.float32) * scale
                s = s - jnp.max(s, axis=-1, keepdims=True)
                p = jnp.exp(s)
                p = p * pl.reciprocal(jnp.sum(p, axis=-1, keepdims=True), approx=True)
                # Masked V leaves only head-h output columns; summing over heads
                # reproduces the per-head concat with zero layout shuffles.
                attn = attn + jnp.einsum('bqk,bkd->bqd', p, v * m,
                                         preferred_element_type=jnp.float32)

            attn = attn.reshape(bt, d_model)
            attn = jnp.dot(attn, wout, preferred_element_type=jnp.float32) + bout

            # ---- residual + layernorm 1 (post-norm) -------------------------
            x = _layernorm(x + attn, ln1g_ref[l], ln1b_ref[l])

            # ---- feed-forward (ReLU) ----------------------------------------
            h1 = jnp.maximum(
                jnp.dot(x, w1_ref[l], preferred_element_type=jnp.float32) + b1_ref[l],
                0.0)
            ff = jnp.dot(h1, w2_ref[l], preferred_element_type=jnp.float32) + b2_ref[l]

            # ---- residual + layernorm 2 -------------------------------------
            x = _layernorm(x + ff, ln2g_ref[l], ln2b_ref[l])

        o_ref[...] = x.reshape(batch, seq, d_model).astype(o_ref.dtype)

    return kernel


# ---------------------------------------------------------------------------
# Host-side setup (constants / parameters)
# ---------------------------------------------------------------------------
def positional_encoding(seq_len, d_model=D_MODEL):
    position = jnp.arange(seq_len, dtype=jnp.float32)[:, None]
    div_term = jnp.exp(jnp.arange(0, d_model, 2, dtype=jnp.float32)
                       * -(math.log(10000.0) / d_model))
    pe = jnp.zeros((seq_len, d_model), jnp.float32)
    pe = pe.at[:, 0::2].set(jnp.sin(position * div_term))
    pe = pe.at[:, 1::2].set(jnp.cos(position * div_term))
    return pe


def init_layer_params(key, d_model, dim_ff):
    ks = jax.random.split(key, 6)
    scale = 0.02
    # PyTorch-layout weights, transposed to (in, out) for the kernel.
    in_proj_w = scale * jax.random.normal(ks[0], (3 * d_model, d_model), jnp.float32)
    in_proj_b = scale * jax.random.normal(ks[1], (3 * d_model,), jnp.float32)
    out_proj_w = scale * jax.random.normal(ks[2], (d_model, d_model), jnp.float32)
    out_proj_b = scale * jax.random.normal(ks[3], (d_model,), jnp.float32)
    w1 = scale * jax.random.normal(ks[4], (dim_ff, d_model), jnp.float32)
    b1 = jnp.zeros((dim_ff,), jnp.float32)
    w2 = scale * jax.random.normal(ks[5], (d_model, dim_ff), jnp.float32)
    b2 = jnp.zeros((d_model,), jnp.float32)
    return {
        "win_t": in_proj_w.T,                      # (D, 3D)
        "bin": in_proj_b.reshape(1, -1),           # (1, 3D)
        "wout_t": out_proj_w.T,                    # (D, D)
        "bout": out_proj_b.reshape(1, -1),         # (1, D)
        "ln1_g": jnp.ones((1, d_model), jnp.float32),
        "ln1_b": jnp.zeros((1, d_model), jnp.float32),
        "w1_t": w1.T,                              # (D, F)
        "b1": b1.reshape(1, -1),                   # (1, F)
        "w2_t": w2.T,                              # (F, D)
        "b2": b2.reshape(1, -1),                   # (1, D)
        "ln2_g": jnp.ones((1, d_model), jnp.float32),
        "ln2_b": jnp.zeros((1, d_model), jnp.float32),
    }


# ---------------------------------------------------------------------------
# Full forward pass (eval mode: dropout = identity)
# ---------------------------------------------------------------------------
def audio_fusion_transformer_encoder(audio_emb, audiolm_emb,
                                     modality_table, layer_params, nhead=NHEAD):
    B, Sa, D = audio_emb.shape
    _, Sl, _ = audiolm_emb.shape
    S = Sa + Sl

    # Constant additive bias = positional encoding + modality embedding
    # (input-independent, built once with plain XLA, folded into the kernel).
    bias = jnp.concatenate(
        [positional_encoding(Sa, D) + modality_table[1:2],
         positional_encoding(Sl, D) + modality_table[2:3]], axis=0)        # (S, D)

    # Trivial sequence concat of the two embedding streams (XLA handles it).
    x_in = jnp.concatenate([audio_emb, audiolm_emb], axis=1)               # (B, S, D)
    # nn.Dropout is identity in eval mode.

    def stack(name):
        return jnp.stack([p[name] for p in layer_params], axis=0)

    weights = [stack(n) for n in ("win_t", "bin", "wout_t", "bout",
                                  "ln1_g", "ln1_b", "w1_t", "b1",
                                  "w2_t", "b2", "ln2_g", "ln2_b")]

    kernel = _make_encoder_kernel(B, S, D, nhead, len(layer_params))
    # Single invocation (no grid): every operand lives wholly in VMEM
    # (~1 MiB total); weights are DMA'd exactly once.
    return pl.pallas_call(
        kernel,
        out_shape=jax.ShapeDtypeStruct((B, S, D), audio_emb.dtype),
    )(x_in, bias, *weights)


if __name__ == "__main__":
    key = jax.random.PRNGKey(0)
    k_a, k_l, k_mod, k_layers = jax.random.split(key, 4)

    B, Sa, Sl = 2, 8, 8
    audio_emb = jax.random.normal(k_a, (B, Sa, D_MODEL), jnp.float32)
    audiolm_emb = jax.random.normal(k_l, (B, Sl, D_MODEL), jnp.float32)

    # nn.Embedding(3, 128, padding_idx=0): row 0 zeroed, rows 1/2 used.
    modality_table = 0.02 * jax.random.normal(k_mod, (3, D_MODEL), jnp.float32)
    modality_table = modality_table.at[0].set(0.0)

    layer_keys = jax.random.split(k_layers, NLAYERS)
    layer_params = [init_layer_params(k, D_MODEL, DIM_FF) for k in layer_keys]

    out = audio_fusion_transformer_encoder(
        audio_emb, audiolm_emb, modality_table, layer_params, NHEAD)
    out = jax.block_until_ready(out)

    assert out.shape == (B, Sa + Sl, D_MODEL)
    assert bool(jnp.all(jnp.isfinite(out)))
    print("KERNEL_OK")
</pallas_src>

<mosaic_0001>
module attributes {stable_mosaic.version = 11 : i64} {
  func.func @kernel(%arg0: memref<2x16x128xf32, #tpu.memory_space<vmem>>, %arg1: memref<16x128xf32, #tpu.memory_space<vmem>>, %arg2: memref<2x128x384xf32, #tpu.memory_space<vmem>>, %arg3: memref<2x1x384xf32, #tpu.memory_space<vmem>>, %arg4: memref<2x128x128xf32, #tpu.memory_space<vmem>>, %arg5: memref<2x1x128xf32, #tpu.memory_space<vmem>>, %arg6: memref<2x1x128xf32, #tpu.memory_space<vmem>>, %arg7: memref<2x1x128xf32, #tpu.memory_space<vmem>>, %arg8: memref<2x128x256xf32, #tpu.memory_space<vmem>>, %arg9: memref<2x1x256xf32, #tpu.memory_space<vmem>>, %arg10: memref<2x256x128xf32, #tpu.memory_space<vmem>>, %arg11: memref<2x1x128xf32, #tpu.memory_space<vmem>>, %arg12: memref<2x1x128xf32, #tpu.memory_space<vmem>>, %arg13: memref<2x1x128xf32, #tpu.memory_space<vmem>>, %arg14: memref<2x16x128xf32, #tpu.memory_space<vmem>>) attributes {dimension_semantics = [], scalar_prefetch = 0 : i64, scratch_operands = 0 : i64, tpu.core_type = #tpu.core_type<tc>} {
    %c0 = arith.constant 0 : index
    %c0_0 = arith.constant 0 : index
    %c0_1 = arith.constant 0 : index
    %0 = vector.load %arg0[%c0, %c0_0, %c0_1] : memref<2x16x128xf32, #tpu.memory_space<vmem>>, vector<2x16x128xf32>
    %c0_2 = arith.constant 0 : index
    %c0_3 = arith.constant 0 : index
    %1 = vector.load %arg1[%c0_2, %c0_3] : memref<16x128xf32, #tpu.memory_space<vmem>>, vector<16x128xf32>
    %2 = vector.shape_cast %1 : vector<16x128xf32> to vector<1x16x128xf32>
    %3 = vector.broadcast %2 : vector<1x16x128xf32> to vector<2x16x128xf32>
    %4 = arith.addf %0, %3 : vector<2x16x128xf32>
    %5 = vector.shape_cast %4 : vector<2x16x128xf32> to vector<32x128xf32>
    %6 = tpu.iota {dimensions = array<i32: 1>} : vector<1x128xi32>
    %c0_i32 = arith.constant 0 : i32
    %7 = vector.broadcast %c0_i32 : i32 to vector<1x128xi32>
    %8 = arith.cmpi sge, %6, %7 : vector<1x128xi32>
    %c32_i32 = arith.constant 32 : i32
    %9 = vector.broadcast %c32_i32 : i32 to vector<1x128xi32>
    %10 = arith.cmpi slt, %6, %9 : vector<1x128xi32>
    %11 = arith.andi %8, %10 : vector<1x128xi1>
    %12 = arith.extui %11 : vector<1x128xi1> to vector<1x128xi32>
    %13 = arith.sitofp %12 : vector<1x128xi32> to vector<1x128xf32>
    %c32_i32_4 = arith.constant 32 : i32
    %14 = vector.broadcast %c32_i32_4 : i32 to vector<1x128xi32>
    %15 = arith.cmpi sge, %6, %14 : vector<1x128xi32>
    %c64_i32 = arith.constant 64 : i32
    %16 = vector.broadcast %c64_i32 : i32 to vector<1x128xi32>
    %17 = arith.cmpi slt, %6, %16 : vector<1x128xi32>
    %18 = arith.andi %15, %17 : vector<1x128xi1>
    %19 = arith.extui %18 : vector<1x128xi1> to vector<1x128xi32>
    %20 = arith.sitofp %19 : vector<1x128xi32> to vector<1x128xf32>
    %c64_i32_5 = arith.constant 64 : i32
    %21 = vector.broadcast %c64_i32_5 : i32 to vector<1x128xi32>
    %22 = arith.cmpi sge, %6, %21 : vector<1x128xi32>
    %c96_i32 = arith.constant 96 : i32
    %23 = vector.broadcast %c96_i32 : i32 to vector<1x128xi32>
    %24 = arith.cmpi slt, %6, %23 : vector<1x128xi32>
    %25 = arith.andi %22, %24 : vector<1x128xi1>
    %26 = arith.extui %25 : vector<1x128xi1> to vector<1x128xi32>
    %27 = arith.sitofp %26 : vector<1x128xi32> to vector<1x128xf32>
    %c96_i32_6 = arith.constant 96 : i32
    %28 = vector.broadcast %c96_i32_6 : i32 to vector<1x128xi32>
    %29 = arith.cmpi sge, %6, %28 : vector<1x128xi32>
    %c128_i32 = arith.constant 128 : i32
    %30 = vector.broadcast %c128_i32 : i32 to vector<1x128xi32>
    %31 = arith.cmpi slt, %6, %30 : vector<1x128xi32>
    %32 = arith.andi %29, %31 : vector<1x128xi1>
    %33 = arith.extui %32 : vector<1x128xi1> to vector<1x128xi32>
    %34 = arith.sitofp %33 : vector<1x128xi32> to vector<1x128xf32>
    %c0_7 = arith.constant 0 : index
    %c0_8 = arith.constant 0 : index
    %c0_9 = arith.constant 0 : index
    %35 = vector.load %arg2[%c0_7, %c0_8, %c0_9] : memref<2x128x384xf32, #tpu.memory_space<vmem>>, vector<1x128x384xf32>
    %36 = vector.shape_cast %35 : vector<1x128x384xf32> to vector<128x384xf32>
    %c0_10 = arith.constant 0 : index
    %c0_11 = arith.constant 0 : index
    %c0_12 = arith.constant 0 : index
    %37 = vector.load %arg3[%c0_10, %c0_11, %c0_12] : memref<2x1x384xf32, #tpu.memory_space<vmem>>, vector<1x1x384xf32>
    %38 = vector.shape_cast %37 : vector<1x1x384xf32> to vector<1x384xf32>
    %c0_13 = arith.constant 0 : index
    %c0_14 = arith.constant 0 : index
    %c0_15 = arith.constant 0 : index
    %39 = vector.load %arg4[%c0_13, %c0_14, %c0_15] : memref<2x128x128xf32, #tpu.memory_space<vmem>>, vector<1x128x128xf32>
    %40 = vector.shape_cast %39 : vector<1x128x128xf32> to vector<128x128xf32>
    %c0_16 = arith.constant 0 : index
    %c0_17 = arith.constant 0 : index
    %c0_18 = arith.constant 0 : index
    %41 = vector.load %arg5[%c0_16, %c0_17, %c0_18] : memref<2x1x128xf32, #tpu.memory_space<vmem>>, vector<1x1x128xf32>
    %42 = vector.shape_cast %41 : vector<1x1x128xf32> to vector<1x128xf32>
    %cst = arith.constant dense<0.000000e+00> : vector<32x384xf32>
    %43 = tpu.matmul %5, %36, %cst {dimension_numbers = #tpu.dot_dimension_numbers<[1], [0], [0], [1], [0, 0, 1, 1], [], []>} : vector<32x128xf32>, vector<128x384xf32>, vector<32x384xf32> -> vector<32x384xf32>
    %44 = vector.broadcast %38 : vector<1x384xf32> to vector<32x384xf32>
    %45 = arith.addf %43, %44 : vector<32x384xf32>
    %46 = vector.extract_strided_slice %45 {offsets = [0, 0], sizes = [32, 128], strides = [1, 1]} : vector<32x384xf32> to vector<32x128xf32>
    %47 = vector.shape_cast %46 : vector<32x128xf32> to vector<2x16x128xf32>
    %48 = vector.extract_strided_slice %45 {offsets = [0, 128], sizes = [32, 128], strides = [1, 1]} : vector<32x384xf32> to vector<32x128xf32>
    %49 = vector.shape_cast %48 : vector<32x128xf32> to vector<2x16x128xf32>
    %50 = vector.extract_strided_slice %45 {offsets = [0, 256], sizes = [32, 128], strides = [1, 1]} : vector<32x384xf32> to vector<32x128xf32>
    %51 = vector.shape_cast %50 : vector<32x128xf32> to vector<2x16x128xf32>
    %cst_19 = arith.constant 0.000000e+00 : f32
    %52 = vector.broadcast %cst_19 : f32 to vector<2x16x128xf32>
    %53 = vector.shape_cast %13 : vector<1x128xf32> to vector<1x1x128xf32>
    %54 = vector.broadcast %53 : vector<1x1x128xf32> to vector<2x16x128xf32>
    %55 = arith.mulf %47, %54 : vector<2x16x128xf32>
    "tpu.trace_start"() <{level = 10 : i32, message = "bqd,bkd->bqk"}> : () -> ()
    %cst_20 = arith.constant dense<0.000000e+00> : vector<2x16x16xf32>
    %56 = tpu.matmul %55, %49, %cst_20 {dimension_numbers = #tpu.dot_dimension_numbers<[2], [2], [1], [1], [0, 0, 0, 1, 1, 1], [0], [0]>} : vector<2x16x128xf32>, vector<2x16x128xf32>, vector<2x16x16xf32> -> vector<2x16x16xf32>
    "tpu.trace_stop"() : () -> ()
    %cst_21 = arith.constant 0.176776692 : f32
    %57 = vector.broadcast %cst_21 : f32 to vector<2x16x16xf32>
    %58 = arith.mulf %56, %57 : vector<2x16x16xf32>
    %cst_22 = arith.constant dense<0xFF800000> : vector<2x16xf32>
    %59 = vector.multi_reduction <maximumf>, %58, %cst_22 [2] : vector<2x16x16xf32> to vector<2x16xf32>
    %60 = vector.shape_cast %59 : vector<2x16xf32> to vector<2x16x1xf32>
    %61 = vector.broadcast %60 : vector<2x16x1xf32> to vector<2x16x16xf32>
    %62 = arith.subf %58, %61 : vector<2x16x16xf32>
    %63 = math.exp %62 : vector<2x16x16xf32>
    %cst_23 = arith.constant dense<0.000000e+00> : vector<2x16xf32>
    %64 = vector.multi_reduction <add>, %63, %cst_23 [2] : vector<2x16x16xf32> to vector<2x16xf32>
    %65 = vector.shape_cast %64 : vector<2x16xf32> to vector<2x16x1xf32>
    %66 = tpu.reciprocal %65 {approx = true} : vector<2x16x1xf32> -> vector<2x16x1xf32>
    %67 = vector.broadcast %66 : vector<2x16x1xf32> to vector<2x16x16xf32>
    %68 = arith.mulf %63, %67 : vector<2x16x16xf32>
    %69 = vector.shape_cast %13 : vector<1x128xf32> to vector<1x1x128xf32>
    %70 = vector.broadcast %69 : vector<1x1x128xf32> to vector<2x16x128xf32>
    %71 = arith.mulf %51, %70 : vector<2x16x128xf32>
    "tpu.trace_start"() <{level = 10 : i32, message = "bqk,bkd->bqd"}> : () -> ()
    %cst_24 = arith.constant dense<0.000000e+00> : vector<2x16x128xf32>
    %72 = tpu.matmul %68, %71, %cst_24 {dimension_numbers = #tpu.dot_dimension_numbers<[2], [1], [1], [2], [0, 0, 0, 1, 1, 2], [0], [0]>} : vector<2x16x16xf32>, vector<2x16x128xf32>, vector<2x16x128xf32> -> vector<2x16x128xf32>
    "tpu.trace_stop"() : () -> ()
    %73 = arith.addf %52, %72 : vector<2x16x128xf32>
    %74 = vector.shape_cast %20 : vector<1x128xf32> to vector<1x1x128xf32>
    %75 = vector.broadcast %74 : vector<1x1x128xf32> to vector<2x16x128xf32>
    %76 = arith.mulf %47, %75 : vector<2x16x128xf32>
    "tpu.trace_start"() <{level = 10 : i32, message = "bqd,bkd->bqk"}> : () -> ()
    %cst_25 = arith.constant dense<0.000000e+00> : vector<2x16x16xf32>
    %77 = tpu.matmul %76, %49, %cst_25 {dimension_numbers = #tpu.dot_dimension_numbers<[2], [2], [1], [1], [0, 0, 0, 1, 1, 1], [0], [0]>} : vector<2x16x128xf32>, vector<2x16x128xf32>, vector<2x16x16xf32> -> vector<2x16x16xf32>
    "tpu.trace_stop"() : () -> ()
    %cst_26 = arith.constant 0.176776692 : f32
    %78 = vector.broadcast %cst_26 : f32 to vector<2x16x16xf32>
    %79 = arith.mulf %77, %78 : vector<2x16x16xf32>
    %cst_27 = arith.constant dense<0xFF800000> : vector<2x16xf32>
    %80 = vector.multi_reduction <maximumf>, %79, %cst_27 [2] : vector<2x16x16xf32> to vector<2x16xf32>
    %81 = vector.shape_cast %80 : vector<2x16xf32> to vector<2x16x1xf32>
    %82 = vector.broadcast %81 : vector<2x16x1xf32> to vector<2x16x16xf32>
    %83 = arith.subf %79, %82 : vector<2x16x16xf32>
    %84 = math.exp %83 : vector<2x16x16xf32>
    %cst_28 = arith.constant dense<0.000000e+00> : vector<2x16xf32>
    %85 = vector.multi_reduction <add>, %84, %cst_28 [2] : vector<2x16x16xf32> to vector<2x16xf32>
    %86 = vector.shape_cast %85 : vector<2x16xf32> to vector<2x16x1xf32>
    %87 = tpu.reciprocal %86 {approx = true} : vector<2x16x1xf32> -> vector<2x16x1xf32>
    %88 = vector.broadcast %87 : vector<2x16x1xf32> to vector<2x16x16xf32>
    %89 = arith.mulf %84, %88 : vector<2x16x16xf32>
    %90 = vector.shape_cast %20 : vector<1x128xf32> to vector<1x1x128xf32>
    %91 = vector.broadcast %90 : vector<1x1x128xf32> to vector<2x16x128xf32>
    %92 = arith.mulf %51, %91 : vector<2x16x128xf32>
    "tpu.trace_start"() <{level = 10 : i32, message = "bqk,bkd->bqd"}> : () -> ()
    %cst_29 = arith.constant dense<0.000000e+00> : vector<2x16x128xf32>
    %93 = tpu.matmul %89, %92, %cst_29 {dimension_numbers = #tpu.dot_dimension_numbers<[2], [1], [1], [2], [0, 0, 0, 1, 1, 2], [0], [0]>} : vector<2x16x16xf32>, vector<2x16x128xf32>, vector<2x16x128xf32> -> vector<2x16x128xf32>
    "tpu.trace_stop"() : () -> ()
    %94 = arith.addf %73, %93 : vector<2x16x128xf32>
    %95 = vector.shape_cast %27 : vector<1x128xf32> to vector<1x1x128xf32>
    %96 = vector.broadcast %95 : vector<1x1x128xf32> to vector<2x16x128xf32>
    %97 = arith.mulf %47, %96 : vector<2x16x128xf32>
    "tpu.trace_start"() <{level = 10 : i32, message = "bqd,bkd->bqk"}> : () -> ()
    %cst_30 = arith.constant dense<0.000000e+00> : vector<2x16x16xf32>
    %98 = tpu.matmul %97, %49, %cst_30 {dimension_numbers = #tpu.dot_dimension_numbers<[2], [2], [1], [1], [0, 0, 0, 1, 1, 1], [0], [0]>} : vector<2x16x128xf32>, vector<2x16x128xf32>, vector<2x16x16xf32> -> vector<2x16x16xf32>
    "tpu.trace_stop"() : () -> ()
    %cst_31 = arith.constant 0.176776692 : f32
    %99 = vector.broadcast %cst_31 : f32 to vector<2x16x16xf32>
    %100 = arith.mulf %98, %99 : vector<2x16x16xf32>
    %cst_32 = arith.constant dense<0xFF800000> : vector<2x16xf32>
    %101 = vector.multi_reduction <maximumf>, %100, %cst_32 [2] : vector<2x16x16xf32> to vector<2x16xf32>
    %102 = vector.shape_cast %101 : vector<2x16xf32> to vector<2x16x1xf32>
    %103 = vector.broadcast %102 : vector<2x16x1xf32> to vector<2x16x16xf32>
    %104 = arith.subf %100, %103 : vector<2x16x16xf32>
    %105 = math.exp %104 : vector<2x16x16xf32>
    %cst_33 = arith.constant dense<0.000000e+00> : vector<2x16xf32>
    %106 = vector.multi_reduction <add>, %105, %cst_33 [2] : vector<2x16x16xf32> to vector<2x16xf32>
    %107 = vector.shape_cast %106 : vector<2x16xf32> to vector<2x16x1xf32>
    %108 = tpu.reciprocal %107 {approx = true} : vector<2x16x1xf32> -> vector<2x16x1xf32>
    %109 = vector.broadcast %108 : vector<2x16x1xf32> to vector<2x16x16xf32>
    %110 = arith.mulf %105, %109 : vector<2x16x16xf32>
    %111 = vector.shape_cast %27 : vector<1x128xf32> to vector<1x1x128xf32>
    %112 = vector.broadcast %111 : vector<1x1x128xf32> to vector<2x16x128xf32>
    %113 = arith.mulf %51, %112 : vector<2x16x128xf32>
    "tpu.trace_start"() <{level = 10 : i32, message = "bqk,bkd->bqd"}> : () -> ()
    %cst_34 = arith.constant dense<0.000000e+00> : vector<2x16x128xf32>
    %114 = tpu.matmul %110, %113, %cst_34 {dimension_numbers = #tpu.dot_dimension_numbers<[2], [1], [1], [2], [0, 0, 0, 1, 1, 2], [0], [0]>} : vector<2x16x16xf32>, vector<2x16x128xf32>, vector<2x16x128xf32> -> vector<2x16x128xf32>
    "tpu.trace_stop"() : () -> ()
    %115 = arith.addf %94, %114 : vector<2x16x128xf32>
    %116 = vector.shape_cast %34 : vector<1x128xf32> to vector<1x1x128xf32>
    %117 = vector.broadcast %116 : vector<1x1x128xf32> to vector<2x16x128xf32>
    %118 = arith.mulf %47, %117 : vector<2x16x128xf32>
    "tpu.trace_start"() <{level = 10 : i32, message = "bqd,bkd->bqk"}> : () -> ()
    %cst_35 = arith.constant dense<0.000000e+00> : vector<2x16x16xf32>
    %119 = tpu.matmul %118, %49, %cst_35 {dimension_numbers = #tpu.dot_dimension_numbers<[2], [2], [1], [1], [0, 0, 0, 1, 1, 1], [0], [0]>} : vector<2x16x128xf32>, vector<2x16x128xf32>, vector<2x16x16xf32> -> vector<2x16x16xf32>
    "tpu.trace_stop"() : () -> ()
    %cst_36 = arith.constant 0.176776692 : f32
    %120 = vector.broadcast %cst_36 : f32 to vector<2x16x16xf32>
    %121 = arith.mulf %119, %120 : vector<2x16x16xf32>
    %cst_37 = arith.constant dense<0xFF800000> : vector<2x16xf32>
    %122 = vector.multi_reduction <maximumf>, %121, %cst_37 [2] : vector<2x16x16xf32> to vector<2x16xf32>
    %123 = vector.shape_cast %122 : vector<2x16xf32> to vector<2x16x1xf32>
    %124 = vector.broadcast %123 : vector<2x16x1xf32> to vector<2x16x16xf32>
    %125 = arith.subf %121, %124 : vector<2x16x16xf32>
    %126 = math.exp %125 : vector<2x16x16xf32>
    %cst_38 = arith.constant dense<0.000000e+00> : vector<2x16xf32>
    %127 = vector.multi_reduction <add>, %126, %cst_38 [2] : vector<2x16x16xf32> to vector<2x16xf32>
    %128 = vector.shape_cast %127 : vector<2x16xf32> to vector<2x16x1xf32>
    %129 = tpu.reciprocal %128 {approx = true} : vector<2x16x1xf32> -> vector<2x16x1xf32>
    %130 = vector.broadcast %129 : vector<2x16x1xf32> to vector<2x16x16xf32>
    %131 = arith.mulf %126, %130 : vector<2x16x16xf32>
    %132 = vector.shape_cast %34 : vector<1x128xf32> to vector<1x1x128xf32>
    %133 = vector.broadcast %132 : vector<1x1x128xf32> to vector<2x16x128xf32>
    %134 = arith.mulf %51, %133 : vector<2x16x128xf32>
    "tpu.trace_start"() <{level = 10 : i32, message = "bqk,bkd->bqd"}> : () -> ()
    %cst_39 = arith.constant dense<0.000000e+00> : vector<2x16x128xf32>
    %135 = tpu.matmul %131, %134, %cst_39 {dimension_numbers = #tpu.dot_dimension_numbers<[2], [1], [1], [2], [0, 0, 0, 1, 1, 2], [0], [0]>} : vector<2x16x16xf32>, vector<2x16x128xf32>, vector<2x16x128xf32> -> vector<2x16x128xf32>
    "tpu.trace_stop"() : () -> ()
    %136 = arith.addf %115, %135 : vector<2x16x128xf32>
    %137 = vector.shape_cast %136 : vector<2x16x128xf32> to vector<32x128xf32>
    %cst_40 = arith.constant dense<0.000000e+00> : vector<32x128xf32>
    %138 = tpu.matmul %137, %40, %cst_40 {dimension_numbers = #tpu.dot_dimension_numbers<[1], [0], [0], [1], [0, 0, 1, 1], [], []>} : vector<32x128xf32>, vector<128x128xf32>, vector<32x128xf32> -> vector<32x128xf32>
    %139 = vector.broadcast %42 : vector<1x128xf32> to vector<32x128xf32>
    %140 = arith.addf %138, %139 : vector<32x128xf32>
    %141 = arith.addf %5, %140 : vector<32x128xf32>
    %c0_41 = arith.constant 0 : index
    %c0_42 = arith.constant 0 : index
    %c0_43 = arith.constant 0 : index
    %142 = vector.load %arg6[%c0_41, %c0_42, %c0_43] : memref<2x1x128xf32, #tpu.memory_space<vmem>>, vector<1x1x128xf32>
    %143 = vector.shape_cast %142 : vector<1x1x128xf32> to vector<1x128xf32>
    %c0_44 = arith.constant 0 : index
    %c0_45 = arith.constant 0 : index
    %c0_46 = arith.constant 0 : index
    %144 = vector.load %arg7[%c0_44, %c0_45, %c0_46] : memref<2x1x128xf32, #tpu.memory_space<vmem>>, vector<1x1x128xf32>
    %145 = vector.shape_cast %144 : vector<1x1x128xf32> to vector<1x128xf32>
    %cst_47 = arith.constant dense<0.000000e+00> : vector<32xf32>
    %146 = vector.multi_reduction <add>, %141, %cst_47 [1] : vector<32x128xf32> to vector<32xf32>
    %147 = vector.shape_cast %146 : vector<32xf32> to vector<32x1xf32>
    %cst_48 = arith.constant 1.280000e+02 : f32
    %148 = vector.broadcast %cst_48 : f32 to vector<32x1xf32>
    %149 = arith.divf %147, %148 : vector<32x1xf32>
    %150 = vector.broadcast %149 : vector<32x1xf32> to vector<32x128xf32>
    %151 = arith.subf %141, %150 : vector<32x128xf32>
    %152 = arith.mulf %151, %151 : vector<32x128xf32>
    %cst_49 = arith.constant dense<0.000000e+00> : vector<32xf32>
    %153 = vector.multi_reduction <add>, %152, %cst_49 [1] : vector<32x128xf32> to vector<32xf32>
    %154 = vector.shape_cast %153 : vector<32xf32> to vector<32x1xf32>
    %cst_50 = arith.constant 1.280000e+02 : f32
    %155 = vector.broadcast %cst_50 : f32 to vector<32x1xf32>
    %156 = arith.divf %154, %155 : vector<32x1xf32>
    %cst_51 = arith.constant 9.99999974E-6 : f32
    %157 = vector.broadcast %cst_51 : f32 to vector<32x1xf32>
    %158 = arith.addf %156, %157 : vector<32x1xf32>
    %159 = math.rsqrt %158 : vector<32x1xf32>
    %160 = vector.broadcast %159 : vector<32x1xf32> to vector<32x128xf32>
    %161 = arith.mulf %151, %160 : vector<32x128xf32>
    %162 = vector.broadcast %143 : vector<1x128xf32> to vector<32x128xf32>
    %163 = arith.mulf %161, %162 : vector<32x128xf32>
    %164 = vector.broadcast %145 : vector<1x128xf32> to vector<32x128xf32>
    %165 = arith.addf %163, %164 : vector<32x128xf32>
    %c0_52 = arith.constant 0 : index
    %c0_53 = arith.constant 0 : index
    %c0_54 = arith.constant 0 : index
    %166 = vector.load %arg8[%c0_52, %c0_53, %c0_54] : memref<2x128x256xf32, #tpu.memory_space<vmem>>, vector<1x128x256xf32>
    %167 = vector.shape_cast %166 : vector<1x128x256xf32> to vector<128x256xf32>
    %cst_55 = arith.constant dense<0.000000e+00> : vector<32x256xf32>
    %168 = tpu.matmul %165, %167, %cst_55 {dimension_numbers = #tpu.dot_dimension_numbers<[1], [0], [0], [1], [0, 0, 1, 1], [], []>} : vector<32x128xf32>, vector<128x256xf32>, vector<32x256xf32> -> vector<32x256xf32>
    %c0_56 = arith.constant 0 : index
    %c0_57 = arith.constant 0 : index
    %c0_58 = arith.constant 0 : index
    %169 = vector.load %arg9[%c0_56, %c0_57, %c0_58] : memref<2x1x256xf32, #tpu.memory_space<vmem>>, vector<1x1x256xf32>
    %170 = vector.shape_cast %169 : vector<1x1x256xf32> to vector<1x256xf32>
    %171 = vector.broadcast %170 : vector<1x256xf32> to vector<32x256xf32>
    %172 = arith.addf %168, %171 : vector<32x256xf32>
    %cst_59 = arith.constant 0.000000e+00 : f32
    %173 = vector.broadcast %cst_59 : f32 to vector<32x256xf32>
    %174 = arith.maximumf %172, %173 : vector<32x256xf32>
    %c0_60 = arith.constant 0 : index
    %c0_61 = arith.constant 0 : index
    %c0_62 = arith.constant 0 : index
    %175 = vector.load %arg10[%c0_60, %c0_61, %c0_62] : memref<2x256x128xf32, #tpu.memory_space<vmem>>, vector<1x256x128xf32>
    %176 = vector.shape_cast %175 : vector<1x256x128xf32> to vector<256x128xf32>
    %cst_63 = arith.constant dense<0.000000e+00> : vector<32x128xf32>
    %177 = tpu.matmul %174, %176, %cst_63 {dimension_numbers = #tpu.dot_dimension_numbers<[1], [0], [0], [1], [0, 0, 1, 1], [], []>} : vector<32x256xf32>, vector<256x128xf32>, vector<32x128xf32> -> vector<32x128xf32>
    %c0_64 = arith.constant 0 : index
    %c0_65 = arith.constant 0 : index
    %c0_66 = arith.constant 0 : index
    %178 = vector.load %arg11[%c0_64, %c0_65, %c0_66] : memref<2x1x128xf32, #tpu.memory_space<vmem>>, vector<1x1x128xf32>
    %179 = vector.shape_cast %178 : vector<1x1x128xf32> to vector<1x128xf32>
    %180 = vector.broadcast %179 : vector<1x128xf32> to vector<32x128xf32>
    %181 = arith.addf %177, %180 : vector<32x128xf32>
    %182 = arith.addf %165, %181 : vector<32x128xf32>
    %c0_67 = arith.constant 0 : index
    %c0_68 = arith.constant 0 : index
    %c0_69 = arith.constant 0 : index
    %183 = vector.load %arg12[%c0_67, %c0_68, %c0_69] : memref<2x1x128xf32, #tpu.memory_space<vmem>>, vector<1x1x128xf32>
    %184 = vector.shape_cast %183 : vector<1x1x128xf32> to vector<1x128xf32>
    %c0_70 = arith.constant 0 : index
    %c0_71 = arith.constant 0 : index
    %c0_72 = arith.constant 0 : index
    %185 = vector.load %arg13[%c0_70, %c0_71, %c0_72] : memref<2x1x128xf32, #tpu.memory_space<vmem>>, vector<1x1x128xf32>
    %186 = vector.shape_cast %185 : vector<1x1x128xf32> to vector<1x128xf32>
    %cst_73 = arith.constant dense<0.000000e+00> : vector<32xf32>
    %187 = vector.multi_reduction <add>, %182, %cst_73 [1] : vector<32x128xf32> to vector<32xf32>
    %188 = vector.shape_cast %187 : vector<32xf32> to vector<32x1xf32>
    %cst_74 = arith.constant 1.280000e+02 : f32
    %189 = vector.broadcast %cst_74 : f32 to vector<32x1xf32>
    %190 = arith.divf %188, %189 : vector<32x1xf32>
    %191 = vector.broadcast %190 : vector<32x1xf32> to vector<32x128xf32>
    %192 = arith.subf %182, %191 : vector<32x128xf32>
    %193 = arith.mulf %192, %192 : vector<32x128xf32>
    %cst_75 = arith.constant dense<0.000000e+00> : vector<32xf32>
    %194 = vector.multi_reduction <add>, %193, %cst_75 [1] : vector<32x128xf32> to vector<32xf32>
    %195 = vector.shape_cast %194 : vector<32xf32> to vector<32x1xf32>
    %cst_76 = arith.constant 1.280000e+02 : f32
    %196 = vector.broadcast %cst_76 : f32 to vector<32x1xf32>
    %197 = arith.divf %195, %196 : vector<32x1xf32>
    %cst_77 = arith.constant 9.99999974E-6 : f32
    %198 = vector.broadcast %cst_77 : f32 to vector<32x1xf32>
    %199 = arith.addf %197, %198 : vector<32x1xf32>
    %200 = math.rsqrt %199 : vector<32x1xf32>
    %201 = vector.broadcast %200 : vector<32x1xf32> to vector<32x128xf32>
    %202 = arith.mulf %192, %201 : vector<32x128xf32>
    %203 = vector.broadcast %184 : vector<1x128xf32> to vector<32x128xf32>
    %204 = arith.mulf %202, %203 : vector<32x128xf32>
    %205 = vector.broadcast %186 : vector<1x128xf32> to vector<32x128xf32>
    %206 = arith.addf %204, %205 : vector<32x128xf32>
    %c1 = arith.constant 1 : index
    %c0_78 = arith.constant 0 : index
    %c0_79 = arith.constant 0 : index
    %207 = vector.load %arg2[%c1, %c0_78, %c0_79] : memref<2x128x384xf32, #tpu.memory_space<vmem>>, vector<1x128x384xf32>
    %208 = vector.shape_cast %207 : vector<1x128x384xf32> to vector<128x384xf32>
    %c1_80 = arith.constant 1 : index
    %c0_81 = arith.constant 0 : index
    %c0_82 = arith.constant 0 : index
    %209 = vector.load %arg3[%c1_80, %c0_81, %c0_82] : memref<2x1x384xf32, #tpu.memory_space<vmem>>, vector<1x1x384xf32>
    %210 = vector.shape_cast %209 : vector<1x1x384xf32> to vector<1x384xf32>
    %c1_83 = arith.constant 1 : index
    %c0_84 = arith.constant 0 : index
    %c0_85 = arith.constant 0 : index
    %211 = vector.load %arg4[%c1_83, %c0_84, %c0_85] : memref<2x128x128xf32, #tpu.memory_space<vmem>>, vector<1x128x128xf32>
    %212 = vector.shape_cast %211 : vector<1x128x128xf32> to vector<128x128xf32>
    %c1_86 = arith.constant 1 : index
    %c0_87 = arith.constant 0 : index
    %c0_88 = arith.constant 0 : index
    %213 = vector.load %arg5[%c1_86, %c0_87, %c0_88] : memref<2x1x128xf32, #tpu.memory_space<vmem>>, vector<1x1x128xf32>
    %214 = vector.shape_cast %213 : vector<1x1x128xf32> to vector<1x128xf32>
    %cst_89 = arith.constant dense<0.000000e+00> : vector<32x384xf32>
    %215 = tpu.matmul %206, %208, %cst_89 {dimension_numbers = #tpu.dot_dimension_numbers<[1], [0], [0], [1], [0, 0, 1, 1], [], []>} : vector<32x128xf32>, vector<128x384xf32>, vector<32x384xf32> -> vector<32x384xf32>
    %216 = vector.broadcast %210 : vector<1x384xf32> to vector<32x384xf32>
    %217 = arith.addf %215, %216 : vector<32x384xf32>
    %218 = vector.extract_strided_slice %217 {offsets = [0, 0], sizes = [32, 128], strides = [1, 1]} : vector<32x384xf32> to vector<32x128xf32>
    %219 = vector.shape_cast %218 : vector<32x128xf32> to vector<2x16x128xf32>
    %220 = vector.extract_strided_slice %217 {offsets = [0, 128], sizes = [32, 128], strides = [1, 1]} : vector<32x384xf32> to vector<32x128xf32>
    %221 = vector.shape_cast %220 : vector<32x128xf32> to vector<2x16x128xf32>
    %222 = vector.extract_strided_slice %217 {offsets = [0, 256], sizes = [32, 128], strides = [1, 1]} : vector<32x384xf32> to vector<32x128xf32>
    %223 = vector.shape_cast %222 : vector<32x128xf32> to vector<2x16x128xf32>
    %cst_90 = arith.constant 0.000000e+00 : f32
    %224 = vector.broadcast %cst_90 : f32 to vector<2x16x128xf32>
    %225 = vector.shape_cast %13 : vector<1x128xf32> to vector<1x1x128xf32>
    %226 = vector.broadcast %225 : vector<1x1x128xf32> to vector<2x16x128xf32>
    %227 = arith.mulf %219, %226 : vector<2x16x128xf32>
    "tpu.trace_start"() <{level = 10 : i32, message = "bqd,bkd->bqk"}> : () -> ()
    %cst_91 = arith.constant dense<0.000000e+00> : vector<2x16x16xf32>
    %228 = tpu.matmul %227, %221, %cst_91 {dimension_numbers = #tpu.dot_dimension_numbers<[2], [2], [1], [1], [0, 0, 0, 1, 1, 1], [0], [0]>} : vector<2x16x128xf32>, vector<2x16x128xf32>, vector<2x16x16xf32> -> vector<2x16x16xf32>
    "tpu.trace_stop"() : () -> ()
    %cst_92 = arith.constant 0.176776692 : f32
    %229 = vector.broadcast %cst_92 : f32 to vector<2x16x16xf32>
    %230 = arith.mulf %228, %229 : vector<2x16x16xf32>
    %cst_93 = arith.constant dense<0xFF800000> : vector<2x16xf32>
    %231 = vector.multi_reduction <maximumf>, %230, %cst_93 [2] : vector<2x16x16xf32> to vector<2x16xf32>
    %232 = vector.shape_cast %231 : vector<2x16xf32> to vector<2x16x1xf32>
    %233 = vector.broadcast %232 : vector<2x16x1xf32> to vector<2x16x16xf32>
    %234 = arith.subf %230, %233 : vector<2x16x16xf32>
    %235 = math.exp %234 : vector<2x16x16xf32>
    %cst_94 = arith.constant dense<0.000000e+00> : vector<2x16xf32>
    %236 = vector.multi_reduction <add>, %235, %cst_94 [2] : vector<2x16x16xf32> to vector<2x16xf32>
    %237 = vector.shape_cast %236 : vector<2x16xf32> to vector<2x16x1xf32>
    %238 = tpu.reciprocal %237 {approx = true} : vector<2x16x1xf32> -> vector<2x16x1xf32>
    %239 = vector.broadcast %238 : vector<2x16x1xf32> to vector<2x16x16xf32>
    %240 = arith.mulf %235, %239 : vector<2x16x16xf32>
    %241 = vector.shape_cast %13 : vector<1x128xf32> to vector<1x1x128xf32>
    %242 = vector.broadcast %241 : vector<1x1x128xf32> to vector<2x16x128xf32>
    %243 = arith.mulf %223, %242 : vector<2x16x128xf32>
    "tpu.trace_start"() <{level = 10 : i32, message = "bqk,bkd->bqd"}> : () -> ()
    %cst_95 = arith.constant dense<0.000000e+00> : vector<2x16x128xf32>
    %244 = tpu.matmul %240, %243, %cst_95 {dimension_numbers = #tpu.dot_dimension_numbers<[2], [1], [1], [2], [0, 0, 0, 1, 1, 2], [0], [0]>} : vector<2x16x16xf32>, vector<2x16x128xf32>, vector<2x16x128xf32> -> vector<2x16x128xf32>
    "tpu.trace_stop"() : () -> ()
    %245 = arith.addf %224, %244 : vector<2x16x128xf32>
    %246 = vector.shape_cast %20 : vector<1x128xf32> to vector<1x1x128xf32>
    %247 = vector.broadcast %246 : vector<1x1x128xf32> to vector<2x16x128xf32>
    %248 = arith.mulf %219, %247 : vector<2x16x128xf32>
    "tpu.trace_start"() <{level = 10 : i32, message = "bqd,bkd->bqk"}> : () -> ()
    %cst_96 = arith.constant dense<0.000000e+00> : vector<2x16x16xf32>
    %249 = tpu.matmul %248, %221, %cst_96 {dimension_numbers = #tpu.dot_dimension_numbers<[2], [2], [1], [1], [0, 0, 0, 1, 1, 1], [0], [0]>} : vector<2x16x128xf32>, vector<2x16x128xf32>, vector<2x16x16xf32> -> vector<2x16x16xf32>
    "tpu.trace_stop"() : () -> ()
    %cst_97 = arith.constant 0.176776692 : f32
    %250 = vector.broadcast %cst_97 : f32 to vector<2x16x16xf32>
    %251 = arith.mulf %249, %250 : vector<2x16x16xf32>
    %cst_98 = arith.constant dense<0xFF800000> : vector<2x16xf32>
    %252 = vector.multi_reduction <maximumf>, %251, %cst_98 [2] : vector<2x16x16xf32> to vector<2x16xf32>
    %253 = vector.shape_cast %252 : vector<2x16xf32> to vector<2x16x1xf32>
    %254 = vector.broadcast %253 : vector<2x16x1xf32> to vector<2x16x16xf32>
    %255 = arith.subf %251, %254 : vector<2x16x16xf32>
    %256 = math.exp %255 : vector<2x16x16xf32>
    %cst_99 = arith.constant dense<0.000000e+00> : vector<2x16xf32>
    %257 = vector.multi_reduction <add>, %256, %cst_99 [2] : vector<2x16x16xf32> to vector<2x16xf32>
    %258 = vector.shape_cast %257 : vector<2x16xf32> to vector<2x16x1xf32>
    %259 = tpu.reciprocal %258 {approx = true} : vector<2x16x1xf32> -> vector<2x16x1xf32>
    %260 = vector.broadcast %259 : vector<2x16x1xf32> to vector<2x16x16xf32>
    %261 = arith.mulf %256, %260 : vector<2x16x16xf32>
    %262 = vector.shape_cast %20 : vector<1x128xf32> to vector<1x1x128xf32>
    %263 = vector.broadcast %262 : vector<1x1x128xf32> to vector<2x16x128xf32>
    %264 = arith.mulf %223, %263 : vector<2x16x128xf32>
    "tpu.trace_start"() <{level = 10 : i32, message = "bqk,bkd->bqd"}> : () -> ()
    %cst_100 = arith.constant dense<0.000000e+00> : vector<2x16x128xf32>
    %265 = tpu.matmul %261, %264, %cst_100 {dimension_numbers = #tpu.dot_dimension_numbers<[2], [1], [1], [2], [0, 0, 0, 1, 1, 2], [0], [0]>} : vector<2x16x16xf32>, vector<2x16x128xf32>, vector<2x16x128xf32> -> vector<2x16x128xf32>
    "tpu.trace_stop"() : () -> ()
    %266 = arith.addf %245, %265 : vector<2x16x128xf32>
    %267 = vector.shape_cast %27 : vector<1x128xf32> to vector<1x1x128xf32>
    %268 = vector.broadcast %267 : vector<1x1x128xf32> to vector<2x16x128xf32>
    %269 = arith.mulf %219, %268 : vector<2x16x128xf32>
    "tpu.trace_start"() <{level = 10 : i32, message = "bqd,bkd->bqk"}> : () -> ()
    %cst_101 = arith.constant dense<0.000000e+00> : vector<2x16x16xf32>
    %270 = tpu.matmul %269, %221, %cst_101 {dimension_numbers = #tpu.dot_dimension_numbers<[2], [2], [1], [1], [0, 0, 0, 1, 1, 1], [0], [0]>} : vector<2x16x128xf32>, vector<2x16x128xf32>, vector<2x16x16xf32> -> vector<2x16x16xf32>
    "tpu.trace_stop"() : () -> ()
    %cst_102 = arith.constant 0.176776692 : f32
    %271 = vector.broadcast %cst_102 : f32 to vector<2x16x16xf32>
    %272 = arith.mulf %270, %271 : vector<2x16x16xf32>
    %cst_103 = arith.constant dense<0xFF800000> : vector<2x16xf32>
    %273 = vector.multi_reduction <maximumf>, %272, %cst_103 [2] : vector<2x16x16xf32> to vector<2x16xf32>
    %274 = vector.shape_cast %273 : vector<2x16xf32> to vector<2x16x1xf32>
    %275 = vector.broadcast %274 : vector<2x16x1xf32> to vector<2x16x16xf32>
    %276 = arith.subf %272, %275 : vector<2x16x16xf32>
    %277 = math.exp %276 : vector<2x16x16xf32>
    %cst_104 = arith.constant dense<0.000000e+00> : vector<2x16xf32>
    %278 = vector.multi_reduction <add>, %277, %cst_104 [2] : vector<2x16x16xf32> to vector<2x16xf32>
    %279 = vector.shape_cast %278 : vector<2x16xf32> to vector<2x16x1xf32>
    %280 = tpu.reciprocal %279 {approx = true} : vector<2x16x1xf32> -> vector<2x16x1xf32>
    %281 = vector.broadcast %280 : vector<2x16x1xf32> to vector<2x16x16xf32>
    %282 = arith.mulf %277, %281 : vector<2x16x16xf32>
    %283 = vector.shape_cast %27 : vector<1x128xf32> to vector<1x1x128xf32>
    %284 = vector.broadcast %283 : vector<1x1x128xf32> to vector<2x16x128xf32>
    %285 = arith.mulf %223, %284 : vector<2x16x128xf32>
    "tpu.trace_start"() <{level = 10 : i32, message = "bqk,bkd->bqd"}> : () -> ()
    %cst_105 = arith.constant dense<0.000000e+00> : vector<2x16x128xf32>
    %286 = tpu.matmul %282, %285, %cst_105 {dimension_numbers = #tpu.dot_dimension_numbers<[2], [1], [1], [2], [0, 0, 0, 1, 1, 2], [0], [0]>} : vector<2x16x16xf32>, vector<2x16x128xf32>, vector<2x16x128xf32> -> vector<2x16x128xf32>
    "tpu.trace_stop"() : () -> ()
    %287 = arith.addf %266, %286 : vector<2x16x128xf32>
    %288 = vector.shape_cast %34 : vector<1x128xf32> to vector<1x1x128xf32>
    %289 = vector.broadcast %288 : vector<1x1x128xf32> to vector<2x16x128xf32>
    %290 = arith.mulf %219, %289 : vector<2x16x128xf32>
    "tpu.trace_start"() <{level = 10 : i32, message = "bqd,bkd->bqk"}> : () -> ()
    %cst_106 = arith.constant dense<0.000000e+00> : vector<2x16x16xf32>
    %291 = tpu.matmul %290, %221, %cst_106 {dimension_numbers = #tpu.dot_dimension_numbers<[2], [2], [1], [1], [0, 0, 0, 1, 1, 1], [0], [0]>} : vector<2x16x128xf32>, vector<2x16x128xf32>, vector<2x16x16xf32> -> vector<2x16x16xf32>
    "tpu.trace_stop"() : () -> ()
    %cst_107 = arith.constant 0.176776692 : f32
    %292 = vector.broadcast %cst_107 : f32 to vector<2x16x16xf32>
    %293 = arith.mulf %291, %292 : vector<2x16x16xf32>
    %cst_108 = arith.constant dense<0xFF800000> : vector<2x16xf32>
    %294 = vector.multi_reduction <maximumf>, %293, %cst_108 [2] : vector<2x16x16xf32> to vector<2x16xf32>
    %295 = vector.shape_cast %294 : vector<2x16xf32> to vector<2x16x1xf32>
    %296 = vector.broadcast %295 : vector<2x16x1xf32> to vector<2x16x16xf32>
    %297 = arith.subf %293, %296 : vector<2x16x16xf32>
    %298 = math.exp %297 : vector<2x16x16xf32>
    %cst_109 = arith.constant dense<0.000000e+00> : vector<2x16xf32>
    %299 = vector.multi_reduction <add>, %298, %cst_109 [2] : vector<2x16x16xf32> to vector<2x16xf32>
    %300 = vector.shape_cast %299 : vector<2x16xf32> to vector<2x16x1xf32>
    %301 = tpu.reciprocal %300 {approx = true} : vector<2x16x1xf32> -> vector<2x16x1xf32>
    %302 = vector.broadcast %301 : vector<2x16x1xf32> to vector<2x16x16xf32>
    %303 = arith.mulf %298, %302 : vector<2x16x16xf32>
    %304 = vector.shape_cast %34 : vector<1x128xf32> to vector<1x1x128xf32>
    %305 = vector.broadcast %304 : vector<1x1x128xf32> to vector<2x16x128xf32>
    %306 = arith.mulf %223, %305 : vector<2x16x128xf32>
    "tpu.trace_start"() <{level = 10 : i32, message = "bqk,bkd->bqd"}> : () -> ()
    %cst_110 = arith.constant dense<0.000000e+00> : vector<2x16x128xf32>
    %307 = tpu.matmul %303, %306, %cst_110 {dimension_numbers = #tpu.dot_dimension_numbers<[2], [1], [1], [2], [0, 0, 0, 1, 1, 2], [0], [0]>} : vector<2x16x16xf32>, vector<2x16x128xf32>, vector<2x16x128xf32> -> vector<2x16x128xf32>
    "tpu.trace_stop"() : () -> ()
    %308 = arith.addf %287, %307 : vector<2x16x128xf32>
    %309 = vector.shape_cast %308 : vector<2x16x128xf32> to vector<32x128xf32>
    %cst_111 = arith.constant dense<0.000000e+00> : vector<32x128xf32>
    %310 = tpu.matmul %309, %212, %cst_111 {dimension_numbers = #tpu.dot_dimension_numbers<[1], [0], [0], [1], [0, 0, 1, 1], [], []>} : vector<32x128xf32>, vector<128x128xf32>, vector<32x128xf32> -> vector<32x128xf32>
    %311 = vector.broadcast %214 : vector<1x128xf32> to vector<32x128xf32>
    %312 = arith.addf %310, %311 : vector<32x128xf32>
    %313 = arith.addf %206, %312 : vector<32x128xf32>
    %c1_112 = arith.constant 1 : index
    %c0_113 = arith.constant 0 : index
    %c0_114 = arith.constant 0 : index
    %314 = vector.load %arg6[%c1_112, %c0_113, %c0_114] : memref<2x1x128xf32, #tpu.memory_space<vmem>>, vector<1x1x128xf32>
    %315 = vector.shape_cast %314 : vector<1x1x128xf32> to vector<1x128xf32>
    %c1_115 = arith.constant 1 : index
    %c0_116 = arith.constant 0 : index
    %c0_117 = arith.constant 0 : index
    %316 = vector.load %arg7[%c1_115, %c0_116, %c0_117] : memref<2x1x128xf32, #tpu.memory_space<vmem>>, vector<1x1x128xf32>
    %317 = vector.shape_cast %316 : vector<1x1x128xf32> to vector<1x128xf32>
    %cst_118 = arith.constant dense<0.000000e+00> : vector<32xf32>
    %318 = vector.multi_reduction <add>, %313, %cst_118 [1] : vector<32x128xf32> to vector<32xf32>
    %319 = vector.shape_cast %318 : vector<32xf32> to vector<32x1xf32>
    %cst_119 = arith.constant 1.280000e+02 : f32
    %320 = vector.broadcast %cst_119 : f32 to vector<32x1xf32>
    %321 = arith.divf %319, %320 : vector<32x1xf32>
    %322 = vector.broadcast %321 : vector<32x1xf32> to vector<32x128xf32>
    %323 = arith.subf %313, %322 : vector<32x128xf32>
    %324 = arith.mulf %323, %323 : vector<32x128xf32>
    %cst_120 = arith.constant dense<0.000000e+00> : vector<32xf32>
    %325 = vector.multi_reduction <add>, %324, %cst_120 [1] : vector<32x128xf32> to vector<32xf32>
    %326 = vector.shape_cast %325 : vector<32xf32> to vector<32x1xf32>
    %cst_121 = arith.constant 1.280000e+02 : f32
    %327 = vector.broadcast %cst_121 : f32 to vector<32x1xf32>
    %328 = arith.divf %326, %327 : vector<32x1xf32>
    %cst_122 = arith.constant 9.99999974E-6 : f32
    %329 = vector.broadcast %cst_122 : f32 to vector<32x1xf32>
    %330 = arith.addf %328, %329 : vector<32x1xf32>
    %331 = math.rsqrt %330 : vector<32x1xf32>
    %332 = vector.broadcast %331 : vector<32x1xf32> to vector<32x128xf32>
    %333 = arith.mulf %323, %332 : vector<32x128xf32>
    %334 = vector.broadcast %315 : vector<1x128xf32> to vector<32x128xf32>
    %335 = arith.mulf %333, %334 : vector<32x128xf32>
    %336 = vector.broadcast %317 : vector<1x128xf32> to vector<32x128xf32>
    %337 = arith.addf %335, %336 : vector<32x128xf32>
    %c1_123 = arith.constant 1 : index
    %c0_124 = arith.constant 0 : index
    %c0_125 = arith.constant 0 : index
    %338 = vector.load %arg8[%c1_123, %c0_124, %c0_125] : memref<2x128x256xf32, #tpu.memory_space<vmem>>, vector<1x128x256xf32>
    %339 = vector.shape_cast %338 : vector<1x128x256xf32> to vector<128x256xf32>
    %cst_126 = arith.constant dense<0.000000e+00> : vector<32x256xf32>
    %340 = tpu.matmul %337, %339, %cst_126 {dimension_numbers = #tpu.dot_dimension_numbers<[1], [0], [0], [1], [0, 0, 1, 1], [], []>} : vector<32x128xf32>, vector<128x256xf32>, vector<32x256xf32> -> vector<32x256xf32>
    %c1_127 = arith.constant 1 : index
    %c0_128 = arith.constant 0 : index
    %c0_129 = arith.constant 0 : index
    %341 = vector.load %arg9[%c1_127, %c0_128, %c0_129] : memref<2x1x256xf32, #tpu.memory_space<vmem>>, vector<1x1x256xf32>
    %342 = vector.shape_cast %341 : vector<1x1x256xf32> to vector<1x256xf32>
    %343 = vector.broadcast %342 : vector<1x256xf32> to vector<32x256xf32>
    %344 = arith.addf %340, %343 : vector<32x256xf32>
    %cst_130 = arith.constant 0.000000e+00 : f32
    %345 = vector.broadcast %cst_130 : f32 to vector<32x256xf32>
    %346 = arith.maximumf %344, %345 : vector<32x256xf32>
    %c1_131 = arith.constant 1 : index
    %c0_132 = arith.constant 0 : index
    %c0_133 = arith.constant 0 : index
    %347 = vector.load %arg10[%c1_131, %c0_132, %c0_133] : memref<2x256x128xf32, #tpu.memory_space<vmem>>, vector<1x256x128xf32>
    %348 = vector.shape_cast %347 : vector<1x256x128xf32> to vector<256x128xf32>
    %cst_134 = arith.constant dense<0.000000e+00> : vector<32x128xf32>
    %349 = tpu.matmul %346, %348, %cst_134 {dimension_numbers = #tpu.dot_dimension_numbers<[1], [0], [0], [1], [0, 0, 1, 1], [], []>} : vector<32x256xf32>, vector<256x128xf32>, vector<32x128xf32> -> vector<32x128xf32>
    %c1_135 = arith.constant 1 : index
    %c0_136 = arith.constant 0 : index
    %c0_137 = arith.constant 0 : index
    %350 = vector.load %arg11[%c1_135, %c0_136, %c0_137] : memref<2x1x128xf32, #tpu.memory_space<vmem>>, vector<1x1x128xf32>
    %351 = vector.shape_cast %350 : vector<1x1x128xf32> to vector<1x128xf32>
    %352 = vector.broadcast %351 : vector<1x128xf32> to vector<32x128xf32>
    %353 = arith.addf %349, %352 : vector<32x128xf32>
    %354 = arith.addf %337, %353 : vector<32x128xf32>
    %c1_138 = arith.constant 1 : index
    %c0_139 = arith.constant 0 : index
    %c0_140 = arith.constant 0 : index
    %355 = vector.load %arg12[%c1_138, %c0_139, %c0_140] : memref<2x1x128xf32, #tpu.memory_space<vmem>>, vector<1x1x128xf32>
    %356 = vector.shape_cast %355 : vector<1x1x128xf32> to vector<1x128xf32>
    %c1_141 = arith.constant 1 : index
    %c0_142 = arith.constant 0 : index
    %c0_143 = arith.constant 0 : index
    %357 = vector.load %arg13[%c1_141, %c0_142, %c0_143] : memref<2x1x128xf32, #tpu.memory_space<vmem>>, vector<1x1x128xf32>
    %358 = vector.shape_cast %357 : vector<1x1x128xf32> to vector<1x128xf32>
    %cst_144 = arith.constant dense<0.000000e+00> : vector<32xf32>
    %359 = vector.multi_reduction <add>, %354, %cst_144 [1] : vector<32x128xf32> to vector<32xf32>
    %360 = vector.shape_cast %359 : vector<32xf32> to vector<32x1xf32>
    %cst_145 = arith.constant 1.280000e+02 : f32
    %361 = vector.broadcast %cst_145 : f32 to vector<32x1xf32>
    %362 = arith.divf %360, %361 : vector<32x1xf32>
    %363 = vector.broadcast %362 : vector<32x1xf32> to vector<32x128xf32>
    %364 = arith.subf %354, %363 : vector<32x128xf32>
    %365 = arith.mulf %364, %364 : vector<32x128xf32>
    %cst_146 = arith.constant dense<0.000000e+00> : vector<32xf32>
    %366 = vector.multi_reduction <add>, %365, %cst_146 [1] : vector<32x128xf32> to vector<32xf32>
    %367 = vector.shape_cast %366 : vector<32xf32> to vector<32x1xf32>
    %cst_147 = arith.constant 1.280000e+02 : f32
    %368 = vector.broadcast %cst_147 : f32 to vector<32x1xf32>
    %369 = arith.divf %367, %368 : vector<32x1xf32>
    %cst_148 = arith.constant 9.99999974E-6 : f32
    %370 = vector.broadcast %cst_148 : f32 to vector<32x1xf32>
    %371 = arith.addf %369, %370 : vector<32x1xf32>
    %372 = math.rsqrt %371 : vector<32x1xf32>
    %373 = vector.broadcast %372 : vector<32x1xf32> to vector<32x128xf32>
    %374 = arith.mulf %364, %373 : vector<32x128xf32>
    %375 = vector.broadcast %356 : vector<1x128xf32> to vector<32x128xf32>
    %376 = arith.mulf %374, %375 : vector<32x128xf32>
    %377 = vector.broadcast %358 : vector<1x128xf32> to vector<32x128xf32>
    %378 = arith.addf %376, %377 : vector<32x128xf32>
    %379 = vector.shape_cast %378 : vector<32x128xf32> to vector<2x16x128xf32>
    %c0_149 = arith.constant 0 : index
    %c0_150 = arith.constant 0 : index
    %c0_151 = arith.constant 0 : index
    %380 = vector.load %arg14[%c0_149, %c0_150, %c0_151] : memref<2x16x128xf32, #tpu.memory_space<vmem>>, vector<2x16x128xf32>
    tpu.vector_store %arg14[%c0_149, %c0_150, %c0_151], %379 {strides = array<i32>} : memref<2x16x128xf32, #tpu.memory_space<vmem>>, vector<2x16x128xf32>,
    return
  }
}

</mosaic_0001>

<bundles_post_ra>
// kernel: tpu_custom_call.1
= control target key start
LH: loop header
LB: loop body
LE: loop exit
PB: predicated region body
PF: predicated region fallthrough
CT: control target
= control target key end

     0   :  { %19 = vsyncpa [#allocation3], 0  ;;  %s4141_s0 = inlined_call_operand.hbm [shape: f32[2,16,128], index: 0, kind: input, shape index: {}]   ;;  %s4142_s1 = inlined_call_operand.hbm [shape: f32[16,128], index: 1, kind: input, shape index: {}]   ;;  %s4143_s2 = inlined_call_operand.hbm [shape: f32[2,128,384], index: 2, kind: input, shape index: {}]   ;;  %s4144_s3 = inlined_call_operand.hbm [shape: f32[2,1,384], index: 3, kind: input, shape index: {}]   ;;  %s4145_s4 = inlined_call_operand.hbm [shape: f32[2,128,128], index: 4, kind: input, shape index: {}]   ;;  %s4146_s5 = inlined_call_operand.vmem [shape: f32[2,1,128], index: 5, kind: input, shape index: {}]   ;;  %s4147_s6 = inlined_call_operand.hbm [shape: f32[2,1,128], index: 6, kind: input, shape index: {}]   ;;  %s4148_s7 = inlined_call_operand.hbm [shape: f32[2,1,128], index: 7, kind: input, shape index: {}]   ;;  %s4149_s8 = inlined_call_operand.hbm [shape: f32[2,128,256], index: 8, kind: input, shape index: {}]   ;;  %s4150_s9 = inlined_call_operand.vmem [shape: f32[2,1,256], index: 9, kind: input, shape index: {}]   ;;  %s4151_s10 = inlined_call_operand.hbm [shape: f32[2,256,128], index: 10, kind: input, shape index: {}]   ;;  %s4152_s11 = inlined_call_operand.vmem [shape: f32[2,1,128], index: 11, kind: input, shape index: {}]   ;;  %s4153_s12 = inlined_call_operand.vmem [shape: f32[2,1,128], index: 12, kind: input, shape index: {}]   ;;  %s4154_s13 = inlined_call_operand.vmem [shape: f32[2,1,128], index: 13, kind: input, shape index: {}]   ;;  %s4155_s14 = inlined_call_operand.hbm [shape: f32[2,16,128], index: 14, kind: output, shape index: {}]  }
   0x1   :  { %20 = vsyncpa [#allocation6], 0 }
   0x2   :  { %21 = vsyncpa [#allocation9], 0 }
   0x3   :  { %22 = vsyncpa [#allocation12], 0 }
   0x4   :  { %23 = vsyncpa [#allocation15], 0 }
   0x5   :  { %24 = vsyncpa [#allocation4], 0  ;;  %s42_s15 = sshll.u32 %s4142_s1, 4  ;;  %s3233_s16 = smov [#allocation5]   ;;  %s43_s15 = int_to_ptr.hbm [resolvable:$true] %s42_s15 }
   0x6   :  { %s44_s17 = sshll.u32 %s3233_s16, 4  ;;  %s68_s20 = sshll.u32 %s4144_s3, 4  ;;  %s45_s17 = int_to_ptr.vmem [resolvable:$true] %s44_s17  ;;  %s69_s20 = int_to_ptr.hbm [resolvable:$true] %s68_s20 }
   0x7   :  { %s3234_s21 = smov 128   ;;  %s3235_s22 = smov 8  }
   0x8   :  { %50 = dma.hbm_to_vmem [thread:$0]  %s43_s15, 256, %s45_s17, [#allocation6], %s3234_s21, %s3234_s21, %s3235_s22  }
   0x9   :  { %s3236_s23 = smov [#allocation8]   ;;  %s3237_s25 = smov 48  }
   0xa   :  { %s70_s24 = sshll.u32 %s3236_s23, 4  ;;  %s3238_s1 = smov 3   ;;  %s71_s24 = int_to_ptr.vmem [resolvable:$true] %s70_s24 }
   0xb   :  { %76 = dma.hbm_to_vmem [thread:$0]  %s69_s20, 96, %s71_s24, [#allocation9], %s3237_s25, %s3237_s25, %s3238_s1  }
   0xc   :  { %s96_s28 = sshll.u32 %s4147_s6, 4  ;;  %s3239_s29 = smov [#allocation11]   ;;  %s97_s28 = int_to_ptr.hbm [resolvable:$true] %s96_s28 }
   0xd   :  { %s98_s3 = sshll.u32 %s3239_s29, 4  ;;  %s122_s18 = sshll.u32 %s4149_s8, 4  ;;  %s99_s3 = int_to_ptr.vmem [resolvable:$true] %s98_s3  ;;  %s123_s18 = int_to_ptr.hbm [resolvable:$true] %s122_s18 }
   0xe   :  { %s3240_s15 = smov 16   ;;  %s3241_s17 = smov 1  }
   0xf   :  { %104 = dma.hbm_to_vmem [thread:$0]  %s97_s28, 32, %s99_s3, [#allocation12], %s3240_s15, %s3240_s15, %s3241_s17  }
  0x10   :  { %s3242_s19 = smov [#allocation14]   ;;  %s29_s24 = sshll.u32 %s4141_s0, 4  ;;  %s30_s24 = int_to_ptr.hbm [resolvable:$true] %s29_s24 }
  0x11   :  { %s124_s20 = sshll.u32 %s3242_s19, 4  ;;  %s3243_s25 = smov 256   ;;  %s125_s20 = int_to_ptr.vmem [resolvable:$true] %s124_s20 }
  0x12   :  { %130 = dma.hbm_to_vmem [thread:$0]  %s123_s18, 8192, %s125_s20, [#allocation15], %s3243_s25, %s3243_s25, %s3240_s15  }
  0x13   :  { %s3244_s1 = smov [#allocation2]   ;;  %s55_s29 = sshll.u32 %s4143_s2, 4  ;;  %s56_s29 = int_to_ptr.hbm [resolvable:$true] %s55_s29 }
  0x14   :  { %s31_s8 = sshll.u32 %s3244_s1, 4  ;;  %s3245_s28 = smov [#allocation7]   ;;  %s32_s8 = int_to_ptr.vmem [resolvable:$true] %s31_s8 }
  0x15   :  { %37 = dma.hbm_to_vmem [thread:$0]  %s30_s24, 512, %s32_s8, [#allocation3], %s3234_s21, %s3234_s21, %s3235_s22  }
  0x16   :  { %s57_s3 = sshll.u32 %s3245_s28, 4  ;;  %s81_s16 = sshll.u32 %s4145_s4, 4  ;;  %s58_s3 = int_to_ptr.vmem [resolvable:$true] %s57_s3  ;;  %s82_s16 = int_to_ptr.hbm [resolvable:$true] %s81_s16 }
  0x17   :  { %s3246_s18 = smov 384   ;;  %s3247_s19 = smov 24  }
  0x18   :  { %63 = dma.hbm_to_vmem [thread:$0]  %s56_s29, 12288, %s58_s3, [#allocation6], %s3246_s18, %s3246_s18, %s3247_s19  }
  0x19   :  { %s3248_s20 = smov [#allocation10]   ;;  %s109_s25 = sshll.u32 %s4148_s7, 4  ;;  %s110_s25 = int_to_ptr.hbm [resolvable:$true] %s109_s25 }
  0x1a   :  { %s83_s23 = sshll.u32 %s3248_s20, 4  ;;  %s137_s4 = sshll.u32 %s4151_s10, 4  ;;  %s84_s23 = int_to_ptr.vmem [resolvable:$true] %s83_s23  ;;  %s138_s4 = int_to_ptr.hbm [resolvable:$true] %s137_s4 }
  0x1b   :  { %89 = dma.hbm_to_vmem [thread:$0]  %s82_s16, 4096, %s84_s23, [#allocation9], %s3234_s21, %s3234_s21, %s3235_s22  }
  0x1c   :  { %s3249_s8 = smov [#allocation13]   ;;  %s3250_s27 = smov [#allocation16]  }
  0x1d   :  { %s111_s26 = sshll.u32 %s3249_s8, 4  ;;  %s139_s7 = sshll.u32 %s3250_s27, 4  ;;  %s112_s26 = int_to_ptr.vmem [resolvable:$true] %s111_s26  ;;  %s140_s7 = int_to_ptr.vmem [resolvable:$true] %s139_s7 }
  0x1e   :  { %117 = dma.hbm_to_vmem [thread:$0]  %s110_s25, 32, %s112_s26, [#allocation12], %s3240_s15, %s3240_s15, %s3241_s17  }
  0x1f   :  { %145 = dma.hbm_to_vmem [thread:$0]  %s138_s4, 8192, %s140_s7, [#allocation15], %s3234_s21, %s3234_s21, %s3235_s22  }
  0x20   :  { %3221 = dma.done.wait [#allocation3], 512  }
  0x21   :  { %3222 = vsyncadd [#allocation3], 4294966784 }
  0x22   :  { %3223 = dma.done.wait [#allocation6], 12544  }
  0x23   :  { %3224 = vsyncadd [#allocation6], 4294954752 }
  0x24   :  { %3225 = dma.done.wait [#allocation9], 4192  }
  0x25   :  { %3226 = vsyncadd [#allocation9], 4294963104 }
  0x26   :  { %3227 = dma.done.wait [#allocation12], 64  }
  0x27   :  { %3228 = vsyncadd [#allocation12], 4294967232 }
  0x28   :  { %3229 = dma.done.wait [#allocation15], 16384  }
  0x29   :  { %3230 = vsyncadd [#allocation15], 4294950912  ;;  %v266_v0 = vld [vmem:[#allocation7 + $0x170] sm:$0xff]  ;;  %v267_v1 = vld [vmem:[#allocation7 + $0x178] sm:$0xff]  ;;  %v198_v58 = vlaneseq  ;;  %vm434_vm8 = vcmask 130048   ;;  %s2726_s8 = sshll.u32 %s4155_s14, 4  ;;  %s2727_s8 = int_to_ptr.hbm [resolvable:$true] %s2726_s8 }
  0x2a   :  { %v263_v2 = vld [vmem:[#allocation7 + $0x158] sm:$0xff]  ;;  %322 = vmatpush.msra.mxu1 %v266_v0  ;;  %351 = vmatpush.msra.mxu2 %v267_v1  ;;  %v264_v3 = vld [vmem:[#allocation7 + $0x160] sm:$0xff]  ;;  %v261_v5 = vld [vmem:[#allocation7 + $0x148] sm:$0xff] }
  0x2b   :  { %v260_v4 = vld [vmem:[#allocation7 + $0x140] sm:$0xff]  ;;  %v257_v6 = vld [vmem:[#allocation7 + $0x128] sm:$0xff]  ;;  %v258_v7 = vld [vmem:[#allocation7 + $0x130] sm:$0xff]  ;;  %v3395_v60 = vand.u32 127, %v198_v58 }
  0x2c   :  { %323 = vmatpush.msra.mxu1 %v263_v2  ;;  %352 = vmatpush.msra.mxu2 %v264_v3  ;;  %v265_v8 = vld [vmem:[#allocation7 + $0x168] sm:$0xff]  ;;  %v262_v9 = vld [vmem:[#allocation7 + $0x150] sm:$0xff]  ;;  %v255_v11 = vld [vmem:[#allocation7 + $0x118] sm:$0xff] }
  0x2d   :  { %v254_v10 = vld [vmem:[#allocation7 + $0x110] sm:$0xff]  ;;  %293 = vmatpush.msra.mxu0 %v265_v8  ;;  %v259_v12 = vld [vmem:[#allocation7 + $0x138] sm:$0xff]  ;;  %v252_v14 = vld [vmem:[#allocation7 + $0x100] sm:$0xff]  ;;  %vm210_vm0 = vcmp.ge.s32.totalorder %v3395_v60, 64  ;;  %vm211_vm1 = vcmp.lt.s32.totalorder %v3395_v60, 96  ;;  %vm201_vm2 = vcmp.lt.s32.totalorder %v3395_v60, 32 }
  0x2e   :  { %324 = vmatpush.msra.mxu1 %v260_v4  ;;  %353 = vmatpush.msra.mxu2 %v261_v5  ;;  %v251_v13 = vld [vmem:[#allocation7 + $0xf8] sm:$0xff]  ;;  %v256_v15 = vld [vmem:[#allocation7 + $0x120] sm:$0xff]  ;;  %v249_v17 = vld [vmem:[#allocation7 + $0xe8] sm:$0xff]  ;;  %vm215_vm4 = vcmp.ge.s32.totalorder %v3395_v60, 96  ;;  %vm205_vm5 = vcmp.ge.s32.totalorder %v3395_v60, 32  ;;  %vm206_vm6 = vcmp.lt.s32.totalorder %v3395_v60, 64 }
  0x2f   :  { %294 = vmatpush.msra.mxu0 %v262_v9  ;;  %v248_v16 = vld [vmem:[#allocation7 + $0xe0] sm:$0xff]  ;;  %v253_v18 = vld [vmem:[#allocation7 + $0x108] sm:$0xff]  ;;  %v246_v20 = vld [vmem:[#allocation7 + $0xd0] sm:$0xff] }
  0x30   :  { %325 = vmatpush.msra.mxu1 %v257_v6  ;;  %354 = vmatpush.msra.mxu2 %v258_v7  ;;  %v245_v19 = vld [vmem:[#allocation7 + $0xc8] sm:$0xff]  ;;  %v250_v21 = vld [vmem:[#allocation7 + $0xf0] sm:$0xff]  ;;  %v243_v23 = vld [vmem:[#allocation7 + $0xb8] sm:$0xff]  ;;  %v3251_v6 = vmov 0.0  }
  0x31   :  { %295 = vmatpush.msra.mxu0 %v259_v12  ;;  %v242_v22 = vld [vmem:[#allocation7 + $0xb0] sm:$0xff]  ;;  %v247_v24 = vld [vmem:[#allocation7 + $0xd8] sm:$0xff]  ;;  %v240_v26 = vld [vmem:[#allocation7 + $0xa0] sm:$0xff]  ;;  %v3402_v7 = vsel %vm201_vm2, 1.0, %v3251_v6 }
  0x32   :  { %326 = vmatpush.msra.mxu1 %v254_v10  ;;  %355 = vmatpush.msra.mxu2 %v255_v11  ;;  %v239_v25 = vld [vmem:[#allocation7 + $0x98] sm:$0xff]  ;;  %v236_v27 = vld [vmem:[#allocation7 + $0x80] sm:$0xff]  ;;  %v237_v28 = vld [vmem:[#allocation7 + $0x88] sm:$0xff] }
  0x33   :  { %296 = vmatpush.msra.mxu0 %v256_v15  ;;  %v244_v29 = vld [vmem:[#allocation7 + $0xc0] sm:$0xff]  ;;  %v241_v30 = vld [vmem:[#allocation7 + $0xa8] sm:$0xff]  ;;  %v234_v32 = vld [vmem:[#allocation7 + $0x70] sm:$0xff] }
  0x34   :  { %327 = vmatpush.msra.mxu1 %v251_v13  ;;  %356 = vmatpush.msra.mxu2 %v252_v14  ;;  %v233_v31 = vld [vmem:[#allocation7 + $0x68] sm:$0xff]  ;;  %v238_v33 = vld [vmem:[#allocation7 + $0x90] sm:$0xff]  ;;  %v231_v35 = vld [vmem:[#allocation7 + $0x58] sm:$0xff] }
  0x35   :  { %297 = vmatpush.msra.mxu0 %v253_v18  ;;  %v230_v34 = vld [vmem:[#allocation7 + $0x50] sm:$0xff]  ;;  %v235_v36 = vld [vmem:[#allocation7 + $0x78] sm:$0xff]  ;;  %v228_v38 = vld [vmem:[#allocation7 + $0x40] sm:$0xff] }
  0x36   :  { %328 = vmatpush.msra.mxu1 %v248_v16  ;;  %357 = vmatpush.msra.mxu2 %v249_v17  ;;  %v227_v37 = vld [vmem:[#allocation7 + $0x38] sm:$0xff]  ;;  %v188_v39 = vld [vmem:[#allocation2] sm:$0xff]  ;;  %v232_v41 = vld [vmem:[#allocation7 + $0x60] sm:$0xff] }
  0x37   :  { %298 = vmatpush.msra.mxu0 %v250_v21  ;;  %v192_v40 = vld [vmem:[#allocation5] sm:$0xff]  ;;  %v224_v42 = vld [vmem:[#allocation7 + $0x20] sm:$0xff]  ;;  %v225_v43 = vld [vmem:[#allocation7 + $0x28] sm:$0xff]  ;;  %v3423_v21 = vsel %vm215_vm4, 1.0, %v3251_v6 }
  0x38   :  { %329 = vmatpush.msra.mxu1 %v245_v19  ;;  %358 = vmatpush.msra.mxu2 %v246_v20  ;;  %v229_v44 = vld [vmem:[#allocation7 + $0x48] sm:$0xff]  ;;  %v222_v46 = vld [vmem:[#allocation7 + $0x10] sm:$0xff]  ;;  %v3375_v47 = vadd.f32 %v192_v40, %v188_v39  ;;  %v223_v49 = vld [vmem:[#allocation7 + $0x18] sm:$0xff] }
  0x39   :  { %299 = vmatpush.msra.mxu0 %v247_v24  ;;  %v221_v45 = vld [vmem:[#allocation7 + $0x8] sm:$0xff]  ;;  %v226_v48 = vld [vmem:[#allocation7 + $0x30] sm:$0xff]  ;;  %v189_v50 = vld [vmem:[#allocation2 + $0x8] sm:$0xff] }
  0x3a   :  { %330 = vmatpush.msra.mxu1 %v242_v22  ;;  %359 = vmatpush.msra.mxu2 %v243_v23  ;;  %v193_v51 = vld [vmem:[#allocation5 + $0x8] sm:$0xff]  ;;  %v220_v52 = vld [vmem:[#allocation7] sm:$0xff]  ;;  %v191_v56 = vld [vmem:[#allocation2 + $0x18] sm:$0xff] }
  0x3b   :  { %300 = vmatpush.msra.mxu0 %v244_v29  ;;  %v3379_v53 = vadd.f32 %v193_v51, %v189_v50  ;;  %v190_v54 = vld [vmem:[#allocation2 + $0x10] sm:$0xff]  ;;  %v3389_v57 = vadd.f32 %v193_v51, %v191_v56  ;;  %vm212_vm3 = vmand %vm210_vm0, %vm211_vm1 }
  0x3c   :  { %331 = vmatpush.msra.mxu1 %v239_v25  ;;  %360 = vmatpush.msra.mxu2 %v240_v26  ;;  %v3384_v55 = vadd.f32 %v192_v40, %v190_v54  ;;  %v268_v61 = vld [vmem:[#allocation8] sm:$0x7]  ;;  %v3404_v8 = vsel %vm212_vm3, 1.0, %v3251_v6  ;;  %vm207_vm7 = vmand %vm205_vm5, %vm206_vm6 }
  0x3d   :  { %301 = vmatpush.msra.mxu0 %v241_v30  ;;  %v287_v63 = vperm.slane %v268_v61, 0  ;;  %v288_v1 = vperm.slane %v268_v61, 1  ;;  %v3400_v5 = vperm.slane %v268_v61, 2 }
  0x3e   :  { %332 = vmatpush.msra.mxu1 %v236_v27  ;;  %361 = vmatpush.msra.mxu2 %v237_v28 }
  0x3f   :  { %302 = vmatpush.msra.mxu0 %v238_v33  ;;  %v3446_v33 = vsel %vm207_vm7, 1.0, %v3251_v6 }
  0x40   :  { %333 = vmatpush.msra.mxu1 %v233_v31  ;;  %362 = vmatpush.msra.mxu2 %v234_v32 }
  0x41   :  { %303 = vmatpush.msra.mxu0 %v235_v36 }
  0x42   :  { %334 = vmatpush.msra.mxu1 %v230_v34  ;;  %363 = vmatpush.msra.mxu2 %v231_v35 }
  0x43   :  { %304 = vmatpush.msra.mxu0 %v232_v41 }
  0x44   :  { %335 = vmatpush.msra.mxu1 %v227_v37  ;;  %364 = vmatpush.msra.mxu2 %v228_v38 }
  0x45   :  { %305 = vmatpush.msra.mxu0 %v229_v44 }
  0x46   :  { %336 = vmatpush.msra.mxu1 %v224_v42  ;;  %365 = vmatpush.msra.mxu2 %v225_v43 }
  0x47   :  { %306 = vmatpush.msra.mxu0 %v226_v48 }
  0x48   :  { %337 = vmatpush.msra.mxu1 %v221_v45  ;;  %366 = vmatpush.msra.mxu2 %v222_v46 }
  0x49   :  { %338 = vmatmul.f32.vlgmr.msra.gmra.mxu1 %v3375_v47  ;;  %367 = vmatmul.f32.vlgmr.msra.gmra.mxu2 %v3375_v47 }
  0x4a   :  { %307 = vmatpush.msra.mxu0 %v223_v49 }
  0x4c   :  { %308 = vmatpush.msra.mxu0 %v220_v52 }
  0x4d   :  { %309 = vmatmul.f32.vlgmr.msra.gmra.mxu0 %v3375_v47 }
  0x51   :  { %341 = vmatmul.f32.gmra.mxu1 %v3379_v53  ;;  %370 = vmatmul.f32.gmra.mxu2 %v3379_v53 }
  0x55   :  { %312 = vmatmul.f32.gmra.mxu0 %v3379_v53 }
  0x59   :  { %344 = vmatmul.f32.gmra.mxu1 %v3384_v55  ;;  %373 = vmatmul.f32.gmra.mxu2 %v3384_v55 }
  0x5d   :  { %315 = vmatmul.f32.gmra.mxu0 %v3384_v55 }
  0x61   :  { %347 = vmatmul.f32.gmra.mxu1 %v3389_v57  ;;  %376 = vmatmul.f32.gmra.mxu2 %v3389_v57 }
  0x65   :  { %318 = vmatmul.f32.gmra.mxu0 %v3389_v57 }
  0xc6   :  { %v339_v59 = vpop.f32.mrf.mxu1 }
  0xc7   :  { %v340_v9 = vadd.f32 %v339_v59, %v288_v1 }
  0xca   :  { %v310_v0 = vpop.f32.mrf.mxu0 }
  0xcb   :  { %v311_v4 = vadd.f32 %v310_v0, %v287_v63 }
  0xcc   :  { %v368_v62 = vpop.f32.mrf.mxu2 }
  0xcd   :  { %v3407_v10 = vadd.f32 %v368_v62, %v3400_v5  ;;  %v380_v12 = vmul.f32 %v3402_v7, %v311_v4  ;;  %v701_v13 = vmul.f32 %v3404_v8, %v311_v4  ;;  %v865_v25 = vmul.f32 %v3423_v21, %v311_v4 }
  0xce   :  { %v342_v2 = vpop.f32.mrf.mxu1  ;;  %v483_v34 = vmul.f32 %v3446_v33, %v311_v4 }
  0xcf   :  { %v343_v3 = vadd.f32 %v342_v2, %v288_v1  ;;  %v479_v18 = vmul.f32 %v3402_v7, %v3407_v10 }
  0xd1   :  { %398 = vmatpush.xpose.msra.mxu3 %v343_v3  ;;  %719 = vmatpush.xpose.msrb.mxu0 %v343_v3 }
  0xd2   :  { %v313_v14 = vpop.f32.mrf.mxu0 }
  0xd3   :  { %v3418_v19 = vadd.f32 %v313_v14, %v287_v63 }
  0xd4   :  { %v371_v11 = vpop.f32.mrf.mxu2 }
  0xd5   :  { %v3412_v15 = vadd.f32 %v371_v11, %v3400_v5  ;;  %399 = vmatpush.xpose.msra.mxu3 %v340_v9  ;;  %720 = vmatpush.xpose.msrb.mxu0 %v340_v9  ;;  %v381_v20 = vmul.f32 %v3402_v7, %v3418_v19  ;;  %v866_v30 = vmul.f32 %v3423_v21, %v3418_v19 }
  0xd6   :  { %v345_v16 = vpop.f32.mrf.mxu1  ;;  %v484_v35 = vmul.f32 %v3446_v33, %v3418_v19 }
  0xd7   :  { %v480_v17 = vmul.f32 %v3402_v7, %v3412_v15  ;;  %v3431_v27 = vadd.f32 %v345_v16, %v288_v1 }
  0xd8   :  { %400 = vmatmul.f32.vlgmr.msra.gmra.mxu3 %v380_v12  ;;  %721 = vmatmul.f32.vlgmr.msrb.gmra.mxu0 %v701_v13 }
  0xd9   :  { %883 = vmatpush.xpose.msra.mxu0 %v343_v3  ;;  %663 = vmatpush.msrb.mxu2 %v480_v17 }
  0xda   :  { %v316_v22 = vpop.f32.mrf.mxu0 }
  0xdb   :  { %664 = vmatpush.msrb.mxu2 %v479_v18  ;;  %v3428_v26 = vadd.f32 %v316_v22, %v287_v63 }
  0xdd   :  { %884 = vmatpush.xpose.msra.mxu0 %v340_v9  ;;  %2784 = vmatpush.xpose.msra.mxu2 %v343_v3  ;;  %v382_v28 = vmul.f32 %v3402_v7, %v3428_v26  ;;  %v485_v36 = vmul.f32 %v3446_v33, %v3428_v26 }
  0xde   :  { %v348_v23 = vpop.f32.mrf.mxu1 }
  0xdf   :  { %v3425_v24 = vadd.f32 %v348_v23, %v288_v1 }
  0xe0   :  { %403 = vmatmul.f32.gmra.mxu3 %v381_v20  ;;  %885 = vmatmul.f32.vlgmr.msra.gmra.mxu0 %v865_v25 }
  0xe1   :  { %2785 = vmatpush.xpose.msra.mxu2 %v340_v9  ;;  %421 = vmatpush.xpose.msrb.mxu3 %v3425_v24 }
  0xe2   :  { %v319_v29 = vpop.f32.mrf.mxu0 }
  0xe3   :  { %v3438_v31 = vadd.f32 %v319_v29, %v287_v63  ;;  %v582_v29 = vmul.f32 %v3446_v33, %v3412_v15 }
  0xe5   :  { %422 = vmatpush.xpose.msrb.mxu3 %v3431_v27  ;;  %v383_v32 = vmul.f32 %v3402_v7, %v3438_v31  ;;  %v486_v37 = vmul.f32 %v3446_v33, %v3438_v31  ;;  %605 = vmatpush.msrb.mxu1 %v582_v29 }
  0xe8   :  { %423 = vmatmul.f32.vlgmr.msrb.gmra.mxu3 %v382_v28  ;;  %888 = vmatmul.f32.gmra.mxu0 %v866_v30 }
  0xe9   :  { %501 = vmatpush.xpose.msra.mxu3 %v343_v3 }
  0xed   :  { %502 = vmatpush.xpose.msra.mxu3 %v340_v9 }
  0xf0   :  { %426 = vmatmul.f32.gmra.mxu3 %v383_v32 }
  0xf1   :  { %524 = vmatpush.xpose.msrb.mxu3 %v3425_v24 }
  0xf5   :  { %525 = vmatpush.xpose.msrb.mxu3 %v3431_v27 }
  0xf8   :  { %503 = vmatmul.f32.vlgmr.msra.gmra.mxu3 %v483_v34 }
 0x100   :  { %506 = vmatmul.f32.gmra.mxu3 %v484_v35 }
 0x108   :  { %526 = vmatmul.f32.vlgmr.msrb.gmra.mxu3 %v485_v36 }
 0x110   :  { %529 = vmatmul.f32.gmra.mxu3 %v486_v37 }
 0x15b   :  { %v401_v38 = vpop.f32.mrf.mxu3 }
 0x15c   :  { %v430_v45 = vmul.f32 0.17677669, %v401_v38 }
 0x15e   :  { %v435_v49 = vsel %vm434_vm8, %v430_v45, -inf }
 0x163   :  { %v404_v39 = vpop.f32.mrf.mxu3 }
 0x164   :  { %v431_v51 = vmul.f32 0.17677669, %v404_v39  ;;  %v722_v39 = vpop.f32.mrf.mxu0 }
 0x166   :  { %v438_v56 = vsel %vm434_vm8, %v431_v51, -inf }
 0x16b   :  { %v3455_v40 = vpop.f32.mrf.mxu3 }
 0x173   :  { %v3457_v41 = vpop.f32.mrf.mxu3 }
 0x17b   :  { %v504_v42 = vpop.f32.mrf.mxu3 }
 0x17c   :  { %v533_v43 = vmul.f32 0.17677669, %v504_v42  ;;  %v3488_v42 = vmul.f32 0.17677669, %v3455_v40 }
 0x17e   :  { %v537_v44 = vsel %vm434_vm8, %v533_v43, -inf }
 0x17f   :  { %538 = vmax.xlane.f32.xlu0 %v537_v44 }
 0x183   :  { %v507_v46 = vpop.f32.mrf.mxu3 }
 0x184   :  { %v534_v48 = vmul.f32 0.17677669, %v507_v46 }
 0x186   :  { %v540_v50 = vsel %vm434_vm8, %v534_v48, -inf }
 0x187   :  { %436 = vmax.xlane.f32.xlu0 %v435_v49  ;;  %541 = vmax.xlane.f32.xlu1 %v540_v50  ;;  %v3501_v49 = vmul.f32 0.17677669, %v3457_v41  ;;  %v886_v50 = vpop.f32.mrf.mxu0 }
 0x189   :  { %v444_v40 = vsel %vm434_vm8, %v3501_v49, -inf }
 0x18b   :  { %v527_v52 = vpop.f32.mrf.mxu3 }
 0x18c   :  { %v535_v54 = vmul.f32 0.17677669, %v527_v52 }
 0x18e   :  { %v543_v58 = vsel %vm434_vm8, %v535_v54, -inf }
 0x18f   :  { %439 = vmax.xlane.f32.xlu1 %v438_v56  ;;  %544 = vmax.xlane.f32.xlu2 %v543_v58  ;;  %v581_v56 = vmul.f32 %v3446_v33, %v3407_v10 }
 0x191   :  { %606 = vmatpush.msrb.mxu1 %v581_v56 }
 0x193   :  { %v530_v59 = vpop.f32.mrf.mxu3 }
 0x194   :  { %v536_v60 = vmul.f32 0.17677669, %v530_v59 }
 0x196   :  { %v546_v61 = vsel %vm434_vm8, %v536_v60, -inf }
 0x197   :  { %547 = vmax.xlane.f32.xlu2 %v546_v61 }
 0x1f2   :  { %v539_v62 = vpop.xlane.xlu0 %538 }
 0x1f3   :  { %v549_v63 = vsub.f32 %v533_v43, %v539_v62  ;;  %v3490_v43 = vmul.f32 0.17677669, %v722_v39 }
 0x1f5   :  { %v553_v0 = vmul.f32 1.442695, %v549_v63 }
 0x1f7   :  { %2819 = vpow2.f32 %v553_v0 }
 0x1fa   :  { %v437_v1 = vpop.xlane.xlu0 %436  ;;  %v542_v2 = vpop.xlane.xlu1 %541 }
 0x1fb   :  { %v447_v3 = vsub.f32 %v430_v45, %v437_v1  ;;  %v550_v4 = vsub.f32 %v534_v48, %v542_v2  ;;  %v441_v45 = vsel %vm434_vm8, %v3488_v42, -inf  ;;  %v755_v48 = vsel %vm434_vm8, %v3490_v43, -inf }
 0x1fd   :  { %v3465_v6 = vpop.eup %2819  ;;  %v451_v9 = vmul.f32 1.442695, %v447_v3  ;;  %v555_v11 = vmul.f32 1.442695, %v550_v4 }
 0x1fe   :  { %v561_v12 = vsel %vm434_vm8, %v3465_v6, 0.0 }
 0x1ff   :  { %2821 = vpow2.f32 %v451_v9  ;;  %562 = vadd.xlane.f32.xlu0 %v561_v12 }
 0x200   :  { %2823 = vpow2.f32 %v555_v11 }
 0x202   :  { %v440_v13 = vpop.xlane.xlu1 %439  ;;  %v545_v14 = vpop.xlane.xlu2 %544 }
 0x203   :  { %v448_v16 = vsub.f32 %v431_v51, %v440_v13  ;;  %v551_v17 = vsub.f32 %v535_v54, %v545_v14  ;;  %v3505_v51 = vmul.f32 0.17677669, %v886_v50  ;;  %v374_v54 = vpop.f32.mrf.mxu2 }
 0x204   :  { %v3515_v41 = vadd.f32 %v374_v54, %v3400_v5  ;;  %v889_v54 = vpop.f32.mrf.mxu0 }
 0x205   :  { %v3469_v18 = vpop.eup %2821  ;;  %v453_v20 = vmul.f32 1.442695, %v448_v16  ;;  %v557_v22 = vmul.f32 1.442695, %v551_v17  ;;  %v919_v52 = vsel %vm434_vm8, %v3505_v51, -inf }
 0x206   :  { %v3471_v23 = vpop.eup %2823  ;;  %v459_v25 = vsel %vm434_vm8, %v3469_v18, 0.0  ;;  %v583_v61 = vmul.f32 %v3446_v33, %v3515_v41  ;;  %v481_v63 = vmul.f32 %v3402_v7, %v3515_v41 }
 0x207   :  { %2825 = vpow2.f32 %v453_v20  ;;  %460 = vadd.xlane.f32.xlu1 %v459_v25  ;;  %v564_v28 = vsel %vm434_vm8, %v3471_v23, 0.0  ;;  %v799_v20 = vmul.f32 %v3404_v8, %v3407_v10 }
 0x208   :  { %2827 = vpow2.f32 %v557_v22  ;;  %565 = vadd.xlane.f32.xlu2 %v564_v28 }
 0x20a   :  { %v548_v30 = vpop.xlane.xlu2 %547 }
 0x20b   :  { %v552_v32 = vsub.f32 %v536_v60, %v548_v30  ;;  %v377_v58 = vpop.f32.mrf.mxu2 }
 0x20c   :  { %v3512_v59 = vadd.f32 %v377_v58, %v3400_v5  ;;  %v801_v5 = vmul.f32 %v3404_v8, %v3515_v41  ;;  %v916_v58 = vmul.f32 0.17677669, %v889_v54 }
 0x20d   :  { %v3479_v34 = vpop.eup %2825  ;;  %v559_v35 = vmul.f32 1.442695, %v552_v32  ;;  %v702_v32 = vmul.f32 %v3404_v8, %v3418_v19  ;;  %v867_v19 = vmul.f32 %v3423_v21, %v3428_v26 }
 0x20e   :  { %v3481_v36 = vpop.eup %2827  ;;  %v462_v37 = vsel %vm434_vm8, %v3479_v34, 0.0  ;;  %v584_v60 = vmul.f32 %v3446_v33, %v3512_v59  ;;  %v482_v62 = vmul.f32 %v3402_v7, %v3512_v59  ;;  %v802_v0 = vmul.f32 %v3404_v8, %v3512_v59 }
 0x20f   :  { %2829 = vpow2.f32 %v559_v35  ;;  %463 = vadd.xlane.f32.xlu0 %v462_v37  ;;  %v567_v38 = vsel %vm434_vm8, %v3481_v36, 0.0  ;;  %v963_v35 = vmul.f32 %v3423_v21, %v3407_v10 }
 0x210   :  { %568 = vadd.xlane.f32.xlu1 %v567_v38  ;;  %634 = vmatpush.msra.mxu1 %v584_v60 }
 0x211   :  { %692 = vmatpush.msra.mxu3 %v482_v62 }
 0x212   :  { %635 = vmatpush.msra.mxu1 %v583_v61 }
 0x213   :  { %693 = vmatpush.msra.mxu3 %v481_v63 }
 0x215   :  { %v3492_v44 = vpop.eup %2829  ;;  %852 = vmatpush.msrb.mxu3 %v802_v0  ;;  %v922_v0 = vsel %vm434_vm8, %v916_v58, -inf }
 0x216   :  { %v570_v46 = vsel %vm434_vm8, %v3492_v44, 0.0 }
 0x217   :  { %442 = vmax.xlane.f32.xlu0 %v441_v45  ;;  %571 = vadd.xlane.f32.xlu2 %v570_v46 }
 0x218   :  { %756 = vmax.xlane.f32.xlu1 %v755_v48  ;;  %853 = vmatpush.msrb.mxu3 %v801_v5 }
 0x21f   :  { %445 = vmax.xlane.f32.xlu2 %v444_v40 }
 0x227   :  { %920 = vmax.xlane.f32.xlu2 %v919_v52 }
 0x272   :  { %v563_v1 = vpop.xlane.xlu0 %562 }
 0x273   :  { %2831 = vrcp.f32 %v563_v1 }
 0x279   :  { %v2832_v2 = vpop.eup %2831 }
 0x27a   :  { %v461_v3 = vpop.xlane.xlu1 %460  ;;  %v577_v4 = vmul.f32 %v2832_v2, %v3465_v6  ;;  %v800_v6 = vmul.f32 %v3404_v8, %v3412_v15 }
 0x27b   :  { %2833 = vrcp.f32 %v461_v3  ;;  %v566_v9 = vpop.xlane.xlu2 %565 }
 0x27c   :  { %2835 = vrcp.f32 %v566_v9  ;;  %2747 = vmatmul.msk.f32.vlgmr.msrb.gmra.mxu1 %vm434_vm8, %v577_v4 }
 0x27d   :  { %742 = vmatpush.xpose.msrb.mxu1 %v3425_v24 }
 0x281   :  { %v2834_v11 = vpop.eup %2833  ;;  %743 = vmatpush.xpose.msrb.mxu1 %v3431_v27 }
 0x282   :  { %v2836_v12 = vpop.eup %2835  ;;  %v464_v13 = vpop.xlane.xlu0 %463  ;;  %v475_v14 = vmul.f32 %v2834_v11, %v3469_v18 }
 0x283   :  { %2837 = vrcp.f32 %v464_v13  ;;  %v569_v16 = vpop.xlane.xlu1 %568  ;;  %v578_v17 = vmul.f32 %v2836_v12, %v3471_v23 }
 0x284   :  { %2839 = vrcp.f32 %v569_v16  ;;  %2751 = vmatmul.msk.f32.vlgmr.msrb.gmra.mxu2 %vm434_vm8, %v475_v14 }
 0x285   :  { %2748 = vmatmul.msk.f32.gmra.mxu1 %vm434_vm8, %v578_v17  ;;  %823 = vmatpush.msrb.mxu2 %v800_v6 }
 0x287   :  { %824 = vmatpush.msrb.mxu2 %v799_v20 }
 0x289   :  { %v2838_v22 = vpop.eup %2837 }
 0x28a   :  { %v2840_v25 = vpop.eup %2839  ;;  %v572_v18 = vpop.xlane.xlu2 %571  ;;  %v476_v28 = vmul.f32 %v2838_v22, %v3479_v34  ;;  %v964_v34 = vmul.f32 %v3423_v21, %v3412_v15  ;;  %v868_v15 = vmul.f32 %v3423_v21, %v3438_v31 }
 0x28b   :  { %v579_v23 = vmul.f32 %v2840_v25, %v3481_v36  ;;  %2841 = vrcp.f32 %v572_v18  ;;  %v757_v60 = vpop.xlane.xlu1 %756 }
 0x28c   :  { %2752 = vmatmul.msk.f32.gmra.mxu2 %vm434_vm8, %v476_v28  ;;  %v767_v63 = vsub.f32 %v3490_v43, %v757_v60 }
 0x28d   :  { %2749 = vmatmul.msk.f32.vlgmr.msra.gmra.mxu1 %vm434_vm8, %v579_v23 }
 0x28e   :  { %906 = vmatpush.xpose.msra.mxu1 %v3425_v24  ;;  %v703_v24 = vmul.f32 %v3404_v8, %v3428_v26  ;;  %v443_v26 = vpop.xlane.xlu0 %442 }
 0x28f   :  { %v449_v50 = vsub.f32 %v3488_v42, %v443_v26  ;;  %v771_v42 = vmul.f32 1.442695, %v767_v63 }
 0x291   :  { %v2842_v29 = vpop.eup %2841  ;;  %v455_v56 = vmul.f32 1.442695, %v449_v50 }
 0x292   :  { %907 = vmatpush.xpose.msra.mxu1 %v3431_v27  ;;  %v580_v30 = vmul.f32 %v2842_v29, %v3492_v44  ;;  %v704_v27 = vmul.f32 %v3404_v8, %v3438_v31  ;;  %v446_v1 = vpop.xlane.xlu2 %445 }
 0x293   :  { %2843 = vpow2.f32 %v455_v56  ;;  %v450_v9 = vsub.f32 %v3501_v49, %v446_v1 }
 0x294   :  { %724 = vmatmul.f32.vlgmr.msra.gmra.mxu2 %v702_v32  ;;  %2845 = vpow2.f32 %v771_v42 }
 0x295   :  { %2750 = vmatmul.msk.f32.gmra.mxu1 %vm434_vm8, %v580_v30  ;;  %987 = vmatpush.msra.mxu2 %v964_v34  ;;  %v457_v12 = vmul.f32 1.442695, %v450_v9 }
 0x297   :  { %988 = vmatpush.msra.mxu2 %v963_v35  ;;  %2847 = vpow2.f32 %v457_v12 }
 0x299   :  { %v3581_v2 = vpop.eup %2843 }
 0x29a   :  { %v465_v11 = vsel %vm434_vm8, %v3581_v2, 0.0  ;;  %v921_v13 = vpop.xlane.xlu2 %920  ;;  %v3587_v14 = vpop.eup %2845 }
 0x29b   :  { %v931_v6 = vsub.f32 %v3505_v51, %v921_v13  ;;  %v779_v49 = vsel %vm434_vm8, %v3587_v14, 0.0 }
 0x29d   :  { %744 = vmatmul.f32.vlgmr.msrb.gmra.mxu1 %v703_v24  ;;  %v935_v22 = vmul.f32 1.442695, %v931_v6  ;;  %v3593_v25 = vpop.eup %2847 }
 0x29e   :  { %v468_v18 = vsel %vm434_vm8, %v3593_v25, 0.0 }
 0x29f   :  { %2849 = vpow2.f32 %v935_v22 }
 0x2a5   :  { %747 = vmatmul.f32.gmra.mxu1 %v704_v27  ;;  %v3597_v28 = vpop.eup %2849 }
 0x2a6   :  { %v943_v51 = vsel %vm434_vm8, %v3597_v28, 0.0 }
 0x2ad   :  { %908 = vmatmul.f32.vlgmr.msra.gmra.mxu1 %v867_v19 }
 0x2b5   :  { %911 = vmatmul.f32.gmra.mxu1 %v868_v15 }
 0x2f9   :  { %v3563_v36 = vpop.f32.mrf.mxu1 }
 0x302   :  { %v3565_v10 = vpop.f32.mrf.mxu1 }
 0x307   :  { %v3567_v37 = vpop.f32.mrf.mxu2 }
 0x30a   :  { %v3569_v38 = vpop.f32.mrf.mxu1 }
 0x30f   :  { %v3571_v39 = vpop.f32.mrf.mxu2 }
 0x312   :  { %v3573_v44 = vpop.f32.mrf.mxu1 }
 0x317   :  { %v725_v45 = vpop.f32.mrf.mxu2 }
 0x318   :  { %v752_v46 = vmul.f32 0.17677669, %v725_v45 }
 0x31a   :  { %v745_v48 = vpop.f32.mrf.mxu1  ;;  %v758_v40 = vsel %vm434_vm8, %v752_v46, -inf }
 0x31b   :  { %v753_v31 = vmul.f32 0.17677669, %v745_v48  ;;  %759 = vmax.xlane.f32.xlu0 %v758_v40 }
 0x31d   :  { %v761_v52 = vsel %vm434_vm8, %v753_v31, -inf }
 0x31e   :  { %762 = vmax.xlane.f32.xlu1 %v761_v52 }
 0x322   :  { %v748_v61 = vpop.f32.mrf.mxu1 }
 0x323   :  { %v754_v62 = vmul.f32 0.17677669, %v748_v61 }
 0x325   :  { %v764_v5 = vsel %vm434_vm8, %v754_v62, -inf }
 0x326   :  { %923 = vmax.xlane.f32.xlu1 %v922_v0  ;;  %765 = vmax.xlane.f32.xlu0 %v764_v5 }
 0x32a   :  { %v909_v3 = vpop.f32.mrf.mxu1 }
 0x32b   :  { %v917_v4 = vmul.f32 0.17677669, %v909_v3  ;;  %v966_v3 = vmul.f32 %v3423_v21, %v3512_v59 }
 0x32d   :  { %v925_v43 = vsel %vm434_vm8, %v917_v4, -inf }
 0x32e   :  { %466 = vadd.xlane.f32.xlu1 %v465_v11  ;;  %926 = vmax.xlane.f32.xlu2 %v925_v43  ;;  %v965_v11 = vmul.f32 %v3423_v21, %v3515_v41 }
 0x332   :  { %v912_v16 = vpop.f32.mrf.mxu1 }
 0x333   :  { %v918_v17 = vmul.f32 0.17677669, %v912_v16 }
 0x335   :  { %v928_v20 = vsel %vm434_vm8, %v918_v17, -inf }
 0x336   :  { %929 = vmax.xlane.f32.xlu0 %v928_v20  ;;  %780 = vadd.xlane.f32.xlu2 %v779_v49 }
 0x33e   :  { %469 = vadd.xlane.f32.xlu0 %v468_v18 }
 0x346   :  { %944 = vadd.xlane.f32.xlu0 %v943_v51 }
 0x38e   :  { %v760_v23 = vpop.xlane.xlu0 %759 }
 0x38f   :  { %v768_v29 = vsub.f32 %v752_v46, %v760_v23 }
 0x391   :  { %v773_v30 = vmul.f32 1.442695, %v768_v29  ;;  %v763_v32 = vpop.xlane.xlu1 %762 }
 0x392   :  { %v769_v34 = vsub.f32 %v753_v31, %v763_v32  ;;  %v284_v32 = vld [vmem:[#allocation10 + $0x78] sm:$0xff] }
 0x393   :  { %2851 = vpow2.f32 %v773_v30  ;;  %1032 = vmatpush.msrb.mxu0 %v284_v32 }
 0x394   :  { %v775_v35 = vmul.f32 1.442695, %v769_v34  ;;  %v283_v34 = vld [vmem:[#allocation10 + $0x70] sm:$0xff] }
 0x395   :  { %1033 = vmatpush.msrb.mxu0 %v283_v34 }
 0x396   :  { %2853 = vpow2.f32 %v775_v35 }
 0x399   :  { %v2852_v24 = vpop.eup %2851  ;;  %v924_v27 = vpop.xlane.xlu1 %923 }
 0x39a   :  { %v766_v19 = vpop.xlane.xlu0 %765  ;;  %v932_v15 = vsub.f32 %v916_v58, %v924_v27  ;;  %v782_v26 = vsel %vm434_vm8, %v2852_v24, 0.0  ;;  %v282_v27 = vld [vmem:[#allocation10 + $0x68] sm:$0xff] }
 0x39b   :  { %v770_v45 = vsub.f32 %v754_v62, %v766_v19  ;;  %783 = vadd.xlane.f32.xlu1 %v782_v26  ;;  %1034 = vmatpush.msrb.mxu0 %v282_v27  ;;  %v280_v26 = vld [vmem:[#allocation10 + $0x58] sm:$0xff] }
 0x39c   :  { %v2854_v48 = vpop.eup %2853  ;;  %v937_v40 = vmul.f32 1.442695, %v932_v15 }
 0x39d   :  { %v777_v50 = vmul.f32 1.442695, %v770_v45  ;;  %v785_v52 = vsel %vm434_vm8, %v2854_v48, 0.0  ;;  %v281_v45 = vld [vmem:[#allocation10 + $0x60] sm:$0xff] }
 0x39e   :  { %2855 = vpow2.f32 %v937_v40  ;;  %786 = vadd.xlane.f32.xlu2 %v785_v52  ;;  %1035 = vmatpush.msrb.mxu0 %v281_v45 }
 0x39f   :  { %2857 = vpow2.f32 %v777_v50 }
 0x3a0   :  { %1036 = vmatpush.msrb.mxu0 %v280_v26 }
 0x3a1   :  { %v467_v46 = vpop.xlane.xlu1 %466  ;;  %v927_v31 = vpop.xlane.xlu2 %926 }
 0x3a2   :  { %2859 = vrcp.f32 %v467_v46  ;;  %v933_v54 = vsub.f32 %v917_v4, %v927_v31  ;;  %v278_v46 = vld [vmem:[#allocation10 + $0x48] sm:$0xff]  ;;  %v277_v31 = vld [vmem:[#allocation10 + $0x40] sm:$0xff] }
 0x3a4   :  { %v3603_v56 = vpop.eup %2855  ;;  %v939_v60 = vmul.f32 1.442695, %v933_v54  ;;  %v276_v54 = vld [vmem:[#allocation10 + $0x38] sm:$0xff] }
 0x3a5   :  { %v2858_v58 = vpop.eup %2857  ;;  %v946_v61 = vsel %vm434_vm8, %v3603_v56, 0.0 }
 0x3a6   :  { %2861 = vpow2.f32 %v939_v60  ;;  %v788_v62 = vsel %vm434_vm8, %v2858_v58, 0.0  ;;  %947 = vadd.xlane.f32.xlu2 %v946_v61  ;;  %v275_v60 = vld [vmem:[#allocation10 + $0x30] sm:$0xff]  ;;  %v274_v61 = vld [vmem:[#allocation10 + $0x28] sm:$0xff] }
 0x3a7   :  { %789 = vadd.xlane.f32.xlu1 %v788_v62  ;;  %v273_v62 = vld [vmem:[#allocation10 + $0x20] sm:$0xff] }
 0x3a8   :  { %v2860_v63 = vpop.eup %2859 }
 0x3a9   :  { %v477_v0 = vmul.f32 %v2860_v63, %v3581_v2  ;;  %v930_v5 = vpop.xlane.xlu0 %929  ;;  %v781_v1 = vpop.xlane.xlu2 %780  ;;  %v272_v63 = vld [vmem:[#allocation10 + $0x18] sm:$0xff] }
 0x3aa   :  { %v934_v42 = vsub.f32 %v918_v17, %v930_v5  ;;  %2863 = vrcp.f32 %v781_v1  ;;  %v270_v5 = vld [vmem:[#allocation10 + $0x8] sm:$0xff]  ;;  %v269_v1 = vld [vmem:[#allocation10] sm:$0xff] }
 0x3ab   :  { %2753 = vmatmul.msk.f32.vlgmr.msra.gmra.mxu3 %vm434_vm8, %v477_v0  ;;  %v271_v0 = vld [vmem:[#allocation10 + $0x10] sm:$0xff] }
 0x3ac   :  { %v2862_v4 = vpop.eup %2861  ;;  %v941_v9 = vmul.f32 1.442695, %v934_v42  ;;  %1016 = vmatpush.msra.mxu3 %v966_v3 }
 0x3ad   :  { %v949_v43 = vsel %vm434_vm8, %v2862_v4, 0.0 }
 0x3ae   :  { %2865 = vpow2.f32 %v941_v9  ;;  %1017 = vmatpush.msra.mxu3 %v965_v11  ;;  %950 = vadd.xlane.f32.xlu0 %v949_v43  ;;  %v667_v43 = vadd.f32 %v3567_v37, %v3563_v36 }
 0x3b0   :  { %v2864_v2 = vpop.eup %2863 }
 0x3b1   :  { %v795_v12 = vmul.f32 %v2864_v2, %v3587_v14  ;;  %v470_v13 = vpop.xlane.xlu0 %469 }
 0x3b2   :  { %2867 = vrcp.f32 %v470_v13 }
 0x3b3   :  { %2755 = vmatmul.msk.f32.vlgmr.msrb.gmra.mxu2 %vm434_vm8, %v795_v12 }
 0x3b4   :  { %v2866_v59 = vpop.eup %2865 }
 0x3b5   :  { %v952_v16 = vsel %vm434_vm8, %v2866_v59, 0.0 }
 0x3b6   :  { %953 = vadd.xlane.f32.xlu1 %v952_v16  ;;  %v670_v16 = vadd.f32 %v3571_v39, %v3565_v10  ;;  %v2807_v10 = vld [vmem:[%s4146_s5] ss:$0 sm:$0xff] }
 0x3b8   :  { %v2868_v17 = vpop.eup %2867 }
 0x3b9   :  { %v478_v6 = vmul.f32 %v2868_v17, %v3593_v25  ;;  %v945_v49 = vpop.xlane.xlu0 %944 }
 0x3bb   :  { %2754 = vmatmul.msk.f32.gmra.mxu3 %vm434_vm8, %v478_v6 }
 0x40e   :  { %v784_v41 = vpop.xlane.xlu1 %783 }
 0x40f   :  { %2869 = vrcp.f32 %v784_v41 }
 0x411   :  { %v787_v20 = vpop.xlane.xlu2 %786 }
 0x412   :  { %2871 = vrcp.f32 %v787_v20 }
 0x413   :  { %2873 = vrcp.f32 %v945_v49 }
 0x415   :  { %v2870_v22 = vpop.eup %2869 }
 0x416   :  { %v796_v14 = vmul.f32 %v2870_v22, %v2852_v24 }
 0x418   :  { %v2872_v18 = vpop.eup %2871  ;;  %2756 = vmatmul.msk.f32.gmra.mxu2 %vm434_vm8, %v796_v14 }
 0x419   :  { %v797_v51 = vmul.f32 %v2872_v18, %v2854_v48  ;;  %v948_v29 = vpop.xlane.xlu2 %947  ;;  %v2874_v30 = vpop.eup %2873 }
 0x41a   :  { %v790_v23 = vpop.xlane.xlu1 %789  ;;  %v959_v25 = vmul.f32 %v2874_v30, %v3597_v28  ;;  %v279_v28 = vld [vmem:[#allocation10 + $0x50] sm:$0xff] }
 0x41b   :  { %2875 = vrcp.f32 %v790_v23  ;;  %2757 = vmatmul.msk.f32.vlgmr.msrb.gmra.mxu3 %vm434_vm8, %v797_v51  ;;  %1037 = vmatpush.msrb.mxu0 %v279_v28  ;;  %v1198_v28 = vld [vmem:[#allocation14 + $0xf0] sm:$0xff] }
 0x41c   :  { %2877 = vrcp.f32 %v948_v29  ;;  %1206 = vmatpush.msrb.mxu1 %v1198_v28 }
 0x41d   :  { %1038 = vmatpush.msrb.mxu0 %v278_v46 }
 0x41f   :  { %1039 = vmatpush.msrb.mxu0 %v277_v31 }
 0x420   :  { %2759 = vmatmul.msk.f32.vlgmr.msra.gmra.mxu2 %vm434_vm8, %v959_v25 }
 0x421   :  { %v2876_v35 = vpop.eup %2875  ;;  %v951_v24 = vpop.xlane.xlu0 %950  ;;  %1040 = vmatpush.msrb.mxu0 %v276_v54 }
 0x422   :  { %2879 = vrcp.f32 %v951_v24  ;;  %v798_v19 = vmul.f32 %v2876_v35, %v2858_v58  ;;  %v2878_v15 = vpop.eup %2877 }
 0x423   :  { %v960_v48 = vmul.f32 %v2878_v15, %v3603_v56  ;;  %1041 = vmatpush.msrb.mxu0 %v275_v60 }
 0x424   :  { %2758 = vmatmul.msk.f32.gmra.mxu3 %vm434_vm8, %v798_v19  ;;  %v3252_v19 = vmov 128.0  }
 0x425   :  { %1042 = vmatpush.msrb.mxu0 %v274_v61 }
 0x427   :  { %1043 = vmatpush.msrb.mxu0 %v273_v62 }
 0x428   :  { %v2880_v40 = vpop.eup %2879  ;;  %2760 = vmatmul.msk.f32.gmra.mxu2 %vm434_vm8, %v960_v48 }
 0x429   :  { %v961_v50 = vmul.f32 %v2880_v40, %v2862_v4  ;;  %v954_v52 = vpop.xlane.xlu1 %953  ;;  %1044 = vmatpush.msrb.mxu0 %v272_v63  ;;  %v1199_v40 = vld [vmem:[#allocation14 + $0xf8] sm:$0xff] }
 0x42a   :  { %2881 = vrcp.f32 %v954_v52  ;;  %1235 = vmatpush.msrb.mxu2 %v1199_v40  ;;  %v1197_v52 = vld [vmem:[#allocation14 + $0xe8] sm:$0xff] }
 0x42b   :  { %1045 = vmatpush.msrb.mxu0 %v271_v0  ;;  %2883 = vrcp.f32 %v3252_v19 }
 0x42c   :  { %2761 = vmatmul.msk.f32.vlgmr.msra.gmra.mxu3 %vm434_vm8, %v961_v50  ;;  %v1196_v50 = vld [vmem:[#allocation14 + $0xe0] sm:$0xff]  ;;  %1236 = vmatpush.msrb.mxu2 %v1197_v52 }
 0x42d   :  { %1046 = vmatpush.msrb.mxu0 %v270_v5  ;;  %1207 = vmatpush.msrb.mxu1 %v1196_v50 }
 0x42e   :  { %v695_v42 = vpop.f32.mrf.mxu3 }
 0x42f   :  { %1047 = vmatpush.msrb.mxu0 %v269_v1  ;;  %v696_v49 = vadd.f32 %v695_v42, %v3569_v38 }
 0x430   :  { %v2882_v58 = vpop.eup %2881 }
 0x431   :  { %v962_v56 = vmul.f32 %v2882_v58, %v2866_v59  ;;  %v2884_v15 = vpop.eup %2883 }
 0x432   :  { %vm1080_vm9 = vweird.f32 %v2884_v15 }
 0x434   :  { %2762 = vmatmul.msk.f32.gmra.mxu3 %vm434_vm8, %v962_v56 }
 0x436   :  { %v826_v3 = vpop.f32.mrf.mxu2 }
 0x437   :  { %v861_v2 = vadd.f32 %v826_v3, %v667_v43  ;;  %v1193_v43 = vld [vmem:[#allocation14 + $0xc8] sm:$0xff] }
 0x43e   :  { %v698_v4 = vpop.f32.mrf.mxu3 }
 0x43f   :  { %v699_v36 = vadd.f32 %v698_v4, %v3573_v44  ;;  %v1194_v4 = vld [vmem:[#allocation14 + $0xd0] sm:$0xff] }
 0x440   :  { %1208 = vmatpush.msrb.mxu1 %v1194_v4 }
 0x49b   :  { %v829_v9 = vpop.f32.mrf.mxu2 }
 0x49c   :  { %v862_v17 = vadd.f32 %v829_v9, %v670_v16  ;;  %v1195_v9 = vld [vmem:[#allocation14 + $0xd8] sm:$0xff]  ;;  %v1186_v16 = vld [vmem:[#allocation14 + $0x90] sm:$0xff] }
 0x49d   :  { %1237 = vmatpush.msrb.mxu2 %v1195_v9 }
 0x49e   :  { %v855_v11 = vpop.f32.mrf.mxu3 }
 0x49f   :  { %v863_v22 = vadd.f32 %v855_v11, %v696_v49  ;;  %v1192_v11 = vld [vmem:[#allocation14 + $0xc0] sm:$0xff]  ;;  %1238 = vmatpush.msrb.mxu2 %v1193_v43  ;;  %v1183_v49 = vld [vmem:[#allocation14 + $0x78] sm:$0xff] }
 0x4a0   :  { %1209 = vmatpush.msrb.mxu1 %v1192_v11  ;;  %v1301_v11 = vld [vmem:[#allocation16 + $0xe8] sm:$0xff] }
 0x4a3   :  { %v990_v12 = vpop.f32.mrf.mxu2 }
 0x4a4   :  { %v1025_v13 = vadd.f32 %v990_v12, %v861_v2  ;;  %v1190_v2 = vld [vmem:[#allocation14 + $0xb0] sm:$0xff]  ;;  %v1191_v12 = vld [vmem:[#allocation14 + $0xb8] sm:$0xff] }
 0x4a5   :  { %1210 = vmatpush.msrb.mxu1 %v1190_v2  ;;  %1239 = vmatpush.msrb.mxu2 %v1191_v12  ;;  %v1284_v12 = vld [vmem:[#allocation16 + $0x60] sm:$0xff] }
 0x4a6   :  { %1048 = vmatmul.f32.vlgmr.msrb.gmra.mxu0 %v1025_v13  ;;  %v1188_v13 = vld [vmem:[#allocation14 + $0xa0] sm:$0xff] }
 0x4a7   :  { %v858_v59 = vpop.f32.mrf.mxu3  ;;  %1211 = vmatpush.msrb.mxu1 %v1188_v13 }
 0x4a8   :  { %v864_v18 = vadd.f32 %v858_v59, %v699_v36  ;;  %v1189_v59 = vld [vmem:[#allocation14 + $0xa8] sm:$0xff]  ;;  %v1178_v36 = vld [vmem:[#allocation14 + $0x50] sm:$0xff] }
 0x4a9   :  { %1240 = vmatpush.msrb.mxu2 %v1189_v59  ;;  %1212 = vmatpush.msrb.mxu1 %v1186_v16 }
 0x4ab   :  { %v993_v6 = vpop.f32.mrf.mxu2 }
 0x4ac   :  { %v1026_v41 = vadd.f32 %v993_v6, %v862_v17  ;;  %v1187_v17 = vld [vmem:[#allocation14 + $0x98] sm:$0xff]  ;;  %v1184_v6 = vld [vmem:[#allocation14 + $0x80] sm:$0xff] }
 0x4ad   :  { %1241 = vmatpush.msrb.mxu2 %v1187_v17  ;;  %1213 = vmatpush.msrb.mxu1 %v1184_v6  ;;  %v1283_v17 = vld [vmem:[#allocation16 + $0x58] sm:$0xff]  ;;  %v1300_v6 = vld [vmem:[#allocation16 + $0xe0] sm:$0xff] }
 0x4ae   :  { %1051 = vmatmul.f32.gmra.mxu0 %v1026_v41  ;;  %v1185_v41 = vld [vmem:[#allocation14 + $0x88] sm:$0xff] }
 0x4af   :  { %v1019_v20 = vpop.f32.mrf.mxu3  ;;  %1242 = vmatpush.msrb.mxu2 %v1185_v41 }
 0x4b0   :  { %v1027_v14 = vadd.f32 %v1019_v20, %v863_v22  ;;  %v1182_v20 = vld [vmem:[#allocation14 + $0x70] sm:$0xff]  ;;  %v1180_v22 = vld [vmem:[#allocation14 + $0x60] sm:$0xff] }
 0x4b1   :  { %1214 = vmatpush.msrb.mxu1 %v1182_v20  ;;  %1243 = vmatpush.msrb.mxu2 %v1183_v49  ;;  %v1282_v49 = vld [vmem:[#allocation16 + $0x50] sm:$0xff] }
 0x4b3   :  { %1215 = vmatpush.msrb.mxu1 %v1180_v22  ;;  %v1299_v22 = vld [vmem:[#allocation16 + $0xd8] sm:$0xff] }
 0x4b5   :  { %1216 = vmatpush.msrb.mxu1 %v1178_v36 }
 0x4b6   :  { %1054 = vmatmul.f32.gmra.mxu0 %v1027_v14  ;;  %v1181_v14 = vld [vmem:[#allocation14 + $0x68] sm:$0xff] }
 0x4b7   :  { %v1022_v37 = vpop.f32.mrf.mxu3  ;;  %1244 = vmatpush.msrb.mxu2 %v1181_v14 }
 0x4b8   :  { %v1028_v51 = vadd.f32 %v1022_v37, %v864_v18  ;;  %v1179_v37 = vld [vmem:[#allocation14 + $0x58] sm:$0xff]  ;;  %v1176_v18 = vld [vmem:[#allocation14 + $0x40] sm:$0xff] }
 0x4b9   :  { %1245 = vmatpush.msrb.mxu2 %v1179_v37  ;;  %1217 = vmatpush.msrb.mxu1 %v1176_v18  ;;  %v1281_v18 = vld [vmem:[#allocation16 + $0x48] sm:$0xff] }
 0x4be   :  { %1057 = vmatmul.f32.gmra.mxu0 %v1028_v51  ;;  %v1177_v51 = vld [vmem:[#allocation14 + $0x48] sm:$0xff] }
 0x4bf   :  { %1246 = vmatpush.msrb.mxu2 %v1177_v51  ;;  %v1298_v51 = vld [vmem:[#allocation16 + $0xd0] sm:$0xff] }
 0x523   :  { %v1049_v39 = vpop.f32.mrf.mxu0 }
 0x524   :  { %v1050_v23 = vadd.f32 %v2807_v10, %v1049_v39  ;;  %v1175_v39 = vld [vmem:[#allocation14 + $0x38] sm:$0xff] }
 0x525   :  { %1247 = vmatpush.msrb.mxu2 %v1175_v39 }
 0x526   :  { %v1061_v29 = vadd.f32 %v1050_v23, %v3375_v47  ;;  %v1076_v47 = vmul.f32 128.0, %v2884_v15  ;;  %v1172_v23 = vld [vmem:[#allocation14 + $0x20] sm:$0xff] }
 0x528   :  { %1067 = vadd.xlane.f32.xlu2 %v1061_v29  ;;  %v1077_v45 = vsub.f32 1.0, %v1076_v47 }
 0x52a   :  { %v1078_v26 = vmul.f32 %v2884_v15, %v1077_v45 }
 0x52b   :  { %v1052_v30 = vpop.f32.mrf.mxu0 }
 0x52c   :  { %v1053_v38 = vadd.f32 %v2807_v10, %v1052_v30  ;;  %v1079_v48 = vadd.f32 %v2884_v15, %v1078_v26  ;;  %v1170_v30 = vld [vmem:[#allocation14 + $0x10] sm:$0xff] }
 0x52e   :  { %v1062_v25 = vadd.f32 %v1053_v38, %v3379_v53  ;;  %v3642_v53 = vsel %vm1080_vm9, %v2884_v15, %v1079_v48  ;;  %v1171_v38 = vld [vmem:[#allocation14 + $0x18] sm:$0xff] }
 0x530   :  { %1069 = vadd.xlane.f32.xlu0 %v1062_v25 }
 0x533   :  { %v1055_v32 = vpop.f32.mrf.mxu0 }
 0x534   :  { %v1056_v44 = vadd.f32 %v2807_v10, %v1055_v32  ;;  %v1169_v32 = vld [vmem:[#allocation14 + $0x8] sm:$0xff] }
 0x536   :  { %v1063_v34 = vadd.f32 %v1056_v44, %v3384_v55 }
 0x538   :  { %1071 = vadd.xlane.f32.xlu1 %v1063_v34 }
 0x53b   :  { %v1058_v35 = vpop.f32.mrf.mxu0 }
 0x53c   :  { %v1059_v24 = vadd.f32 %v2807_v10, %v1058_v35  ;;  %v1174_v10 = vld [vmem:[#allocation14 + $0x30] sm:$0xff] }
 0x53d   :  { %1218 = vmatpush.msrb.mxu1 %v1174_v10 }
 0x53e   :  { %v1064_v27 = vadd.f32 %v1059_v24, %v3389_v57 }
 0x53f   :  { %1219 = vmatpush.msrb.mxu1 %v1172_v23  ;;  %v1280_v23 = vld [vmem:[#allocation16 + $0x40] sm:$0xff] }
 0x540   :  { %1073 = vadd.xlane.f32.xlu2 %v1064_v27 }
 0x541   :  { %1220 = vmatpush.msrb.mxu1 %v1170_v30 }
 0x59b   :  { %v1068_v55 = vpop.xlane.xlu2 %1067 }
 0x59c   :  { %v1082_v57 = vmul.f32 %v3642_v53, %v1068_v55 }
 0x59e   :  { %v3645_v46 = vsub.f32 %v1061_v29, %v1082_v57  ;;  %v1173_v29 = vld [vmem:[#allocation14 + $0x28] sm:$0xff] }
 0x59f   :  { %1248 = vmatpush.msrb.mxu2 %v1173_v29  ;;  %v1297_v29 = vld [vmem:[#allocation16 + $0xc8] sm:$0xff] }
 0x5a0   :  { %v1090_v31 = vmul.f32 %v3645_v46, %v3645_v46 }
 0x5a1   :  { %1249 = vmatpush.msrb.mxu2 %v1171_v38 }
 0x5a2   :  { %1094 = vadd.xlane.f32.xlu0 %v1090_v31  ;;  %v3669_v31 = vld [vmem:[#allocation11] ss:$0 sm:$0xff] }
 0x5a3   :  { %v1070_v54 = vpop.xlane.xlu0 %1069  ;;  %1250 = vmatpush.msrb.mxu2 %v1169_v32  ;;  %v1279_v32 = vld [vmem:[#allocation16 + $0x38] sm:$0xff] }
 0x5a4   :  { %v1083_v60 = vmul.f32 %v3642_v53, %v1070_v54  ;;  %v1287_v54 = vld [vmem:[#allocation16 + $0x78] sm:$0xff] }
 0x5a5   :  { %1308 = vmatpush.msrb.mxu3 %v1287_v54 }
 0x5a6   :  { %v3650_v58 = vsub.f32 %v1062_v25, %v1083_v60  ;;  %v1168_v25 = vld [vmem:[#allocation14] sm:$0xff]  ;;  %v1286_v60 = vld [vmem:[#allocation16 + $0x70] sm:$0xff] }
 0x5a7   :  { %1221 = vmatpush.msrb.mxu1 %v1168_v25  ;;  %1309 = vmatpush.msrb.mxu3 %v1286_v60 }
 0x5a8   :  { %v1091_v56 = vmul.f32 %v3650_v58, %v3650_v58 }
 0x5aa   :  { %1096 = vadd.xlane.f32.xlu1 %v1091_v56 }
 0x5ab   :  { %v1072_v61 = vpop.xlane.xlu1 %1071 }
 0x5ac   :  { %v1084_v62 = vmul.f32 %v3642_v53, %v1072_v61 }
 0x5ae   :  { %v3655_v63 = vsub.f32 %v1063_v34, %v1084_v62  ;;  %v1303_v62 = vld [vmem:[#allocation16 + $0xf8] sm:$0xff] }
 0x5af   :  { %1337 = vmatpush.msra.mxu0 %v1303_v62  ;;  %v1273_v62 = vld [vmem:[#allocation16 + $0x8] sm:$0xff] }
 0x5b0   :  { %v1092_v0 = vmul.f32 %v3655_v63, %v3655_v63 }
 0x5b2   :  { %1098 = vadd.xlane.f32.xlu2 %v1092_v0 }
 0x5b3   :  { %v1074_v5 = vpop.xlane.xlu2 %1073 }
 0x5b4   :  { %v1085_v1 = vmul.f32 %v3642_v53, %v1074_v5  ;;  %v3673_v5 = vld [vmem:[#allocation13] ss:$0 sm:$0xff] }
 0x5b6   :  { %v3660_v42 = vsub.f32 %v1064_v27, %v1085_v1  ;;  %v1285_v1 = vld [vmem:[#allocation16 + $0x68] sm:$0xff] }
 0x5b7   :  { %1310 = vmatpush.msrb.mxu3 %v1285_v1  ;;  %v1272_v1 = vld [vmem:[#allocation16] sm:$0xff] }
 0x5b8   :  { %v1093_v3 = vmul.f32 %v3660_v42, %v3660_v42 }
 0x5b9   :  { %1311 = vmatpush.msrb.mxu3 %v1284_v12 }
 0x5ba   :  { %1100 = vadd.xlane.f32.xlu0 %v1093_v3  ;;  %v1302_v3 = vld [vmem:[#allocation16 + $0xf0] sm:$0xff] }
 0x5bb   :  { %1338 = vmatpush.msra.mxu0 %v1302_v3  ;;  %1312 = vmatpush.msrb.mxu3 %v1283_v17  ;;  %v1291_v3 = vld [vmem:[#allocation16 + $0x98] sm:$0xff] }
 0x5bd   :  { %1339 = vmatpush.msra.mxu0 %v1301_v11  ;;  %1313 = vmatpush.msrb.mxu3 %v1282_v49 }
 0x5bf   :  { %1340 = vmatpush.msra.mxu0 %v1300_v6  ;;  %1314 = vmatpush.msrb.mxu3 %v1281_v18 }
 0x5c1   :  { %1341 = vmatpush.msra.mxu0 %v1299_v22  ;;  %1315 = vmatpush.msrb.mxu3 %v1280_v23 }
 0x5c3   :  { %1342 = vmatpush.msra.mxu0 %v1298_v51  ;;  %1316 = vmatpush.msrb.mxu3 %v1279_v32 }
 0x5c5   :  { %1343 = vmatpush.msra.mxu0 %v1297_v29 }
 0x615   :  { %v1095_v44 = vpop.xlane.xlu0 %1094 }
 0x616   :  { %v1102_v34 = vmul.f32 %v1095_v44, %v3642_v53  ;;  %v1296_v44 = vld [vmem:[#allocation16 + $0xc0] sm:$0xff] }
 0x617   :  { %1344 = vmatpush.msra.mxu0 %v1296_v44  ;;  %v2810_v44 = vld [vmem:[%s4152_s11] ss:$0 sm:$0xff] }
 0x618   :  { %v1106_v35 = vadd.f32 1e-05, %v1102_v34 }
 0x61a   :  { %2885 = vrsqrt.f32 %v1106_v35  ;;  %vm1116_vm11 = vweird.f32 %v1106_v35 }
 0x61d   :  { %v1097_v24 = vpop.xlane.xlu1 %1096 }
 0x61e   :  { %v1103_v27 = vmul.f32 %v1097_v24, %v3642_v53  ;;  %v1295_v24 = vld [vmem:[#allocation16 + $0xb8] sm:$0xff] }
 0x61f   :  { %1345 = vmatpush.msra.mxu0 %v1295_v24 }
 0x620   :  { %v2886_v19 = vpop.eup %2885  ;;  %v1107_v15 = vadd.f32 1e-05, %v1103_v27 }
 0x621   :  { %v1111_v47 = vmul.f32 %v2886_v19, %v1106_v35  ;;  %vm1117_vm10 = vweird.f32 %v2886_v19  ;;  %v1278_v35 = vld [vmem:[#allocation16 + $0x30] sm:$0xff] }
 0x622   :  { %2887 = vrsqrt.f32 %v1107_v15  ;;  %vm1118_vm12 = vmor %vm1116_vm11, %vm1117_vm10  ;;  %vm1126_vm14 = vweird.f32 %v1107_v15  ;;  %1317 = vmatpush.msrb.mxu3 %v1278_v35 }
 0x623   :  { %v1112_v45 = vmul.f32 %v2886_v19, %v1111_v47  ;;  %v1277_v47 = vld [vmem:[#allocation16 + $0x28] sm:$0xff] }
 0x624   :  { %1318 = vmatpush.msrb.mxu3 %v1277_v47 }
 0x625   :  { %v1113_v26 = vmul.f32 0.5, %v1112_v45  ;;  %v1099_v48 = vpop.xlane.xlu2 %1098  ;;  %v1294_v45 = vld [vmem:[#allocation16 + $0xb0] sm:$0xff] }
 0x626   :  { %v1104_v28 = vmul.f32 %v1099_v48, %v3642_v53  ;;  %1346 = vmatpush.msra.mxu0 %v1294_v45 }
 0x627   :  { %v1114_v40 = vsub.f32 1.5, %v1113_v26 }
 0x628   :  { %v2888_v50 = vpop.eup %2887  ;;  %v3667_v55 = vadd.f32 1e-05, %v1104_v28  ;;  %v1276_v28 = vld [vmem:[#allocation16 + $0x20] sm:$0xff] }
 0x629   :  { %v1115_v52 = vmul.f32 %v2886_v19, %v1114_v40  ;;  %v1121_v57 = vmul.f32 %v2888_v50, %v1107_v15  ;;  %vm1127_vm13 = vweird.f32 %v2888_v50  ;;  %1319 = vmatpush.msrb.mxu3 %v1276_v28 }
 0x62a   :  { %2889 = vrsqrt.f32 %v3667_v55  ;;  %vm1128_vm15 = vmor %vm1126_vm14, %vm1127_vm13  ;;  %vm1136_vm1 = vweird.f32 %v3667_v55 }
 0x62b   :  { %v1119_v56 = vsel %vm1118_vm12, %v2886_v19, %v1115_v52  ;;  %v1122_v61 = vmul.f32 %v2888_v50, %v1121_v57 }
 0x62c   :  { %v1150_v0 = vmul.f32 %v1119_v56, %v3645_v46  ;;  %v1274_v56 = vld [vmem:[#allocation16 + $0x10] sm:$0xff] }
 0x62d   :  { %v1123_v4 = vmul.f32 0.5, %v1122_v61  ;;  %v1101_v9 = vpop.xlane.xlu0 %1100  ;;  %v1293_v61 = vld [vmem:[#allocation16 + $0xa8] sm:$0xff] }
 0x62e   :  { %v1105_v43 = vmul.f32 %v1101_v9, %v3642_v53  ;;  %v1157_v2 = vmul.f32 %v3669_v31, %v1150_v0  ;;  %1347 = vmatpush.msra.mxu0 %v1293_v61  ;;  %v1292_v0 = vld [vmem:[#allocation16 + $0xa0] sm:$0xff] }
 0x62f   :  { %v1124_v13 = vsub.f32 1.5, %v1123_v4  ;;  %v1200_v4 = vld [vmem:[%s4150_s9] sm:$0x3]  ;;  %v1512_v61 = vld [vmem:[#allocation7 + $0x2e8] sm:$0xff] }
 0x630   :  { %v2890_v59 = vpop.eup %2889  ;;  %v3677_v46 = vadd.f32 1e-05, %v1105_v43  ;;  %v3680_v16 = vadd.f32 %v3673_v5, %v1157_v2  ;;  %1348 = vmatpush.msra.mxu0 %v1292_v0  ;;  %v1202_v9 = vperm.slane %v1200_v4, 0  ;;  %v1203_v12 = vperm.slane %v1200_v4, 1  ;;  %v1514_v0 = vld [vmem:[#allocation7 + $0x2f8] sm:$0xff]  ;;  %1543 = vmatpush.msra.mxu1 %v1512_v61  ;;  %v1471_v61 = vld [vmem:[#allocation7 + $0x1a0] sm:$0xff] }
 0x631   :  { %v1125_v41 = vmul.f32 %v2888_v50, %v1124_v13  ;;  %v1131_v20 = vmul.f32 %v2890_v59, %v3667_v55  ;;  %vm1137_vm0 = vweird.f32 %v2890_v59  ;;  %v1275_v55 = vld [vmem:[#allocation16 + $0x18] sm:$0xff] }
 0x632   :  { %2891 = vrsqrt.f32 %v3677_v46  ;;  %1222 = vmatmul.f32.vlgmr.msrb.gmra.mxu1 %v3680_v16  ;;  %1251 = vmatmul.f32.vlgmr.msrb.gmra.mxu2 %v3680_v16  ;;  %vm1138_vm2 = vmor %vm1136_vm1, %vm1137_vm0  ;;  %vm1146_vm4 = vweird.f32 %v3677_v46 }
 0x633   :  { %v1129_v14 = vsel %vm1128_vm15, %v2888_v50, %v1125_v41  ;;  %v1132_v36 = vmul.f32 %v2890_v59, %v1131_v20  ;;  %1320 = vmatpush.msrb.mxu3 %v1275_v55  ;;  %1349 = vmatpush.msra.mxu0 %v1291_v3  ;;  %v1510_v3 = vld [vmem:[#allocation7 + $0x2d8] sm:$0xff] }
 0x634   :  { %v1151_v37 = vmul.f32 %v1129_v14, %v3650_v58 }
 0x635   :  { %v1133_v10 = vmul.f32 0.5, %v1132_v36  ;;  %1321 = vmatpush.msrb.mxu3 %v1274_v56 }
 0x636   :  { %v1158_v39 = vmul.f32 %v3669_v31, %v1151_v37 }
 0x637   :  { %v1134_v30 = vsub.f32 1.5, %v1133_v10  ;;  %1322 = vmatpush.msrb.mxu3 %v1273_v62  ;;  %v1513_v62 = vld [vmem:[#allocation7 + $0x2f0] sm:$0xff] }
 0x638   :  { %v2892_v38 = vpop.eup %2891  ;;  %v3689_v25 = vadd.f32 %v3673_v5, %v1158_v39  ;;  %1572 = vmatpush.msra.mxu2 %v1513_v62  ;;  %v1472_v62 = vld [vmem:[#allocation7 + $0x1a8] sm:$0xff] }
 0x639   :  { %v1135_v58 = vmul.f32 %v2890_v59, %v1134_v30  ;;  %v1141_v34 = vmul.f32 %v2892_v38, %v3677_v46  ;;  %vm1147_vm3 = vweird.f32 %v2892_v38  ;;  %1323 = vmatpush.msrb.mxu3 %v1272_v1 }
 0x63a   :  { %1225 = vmatmul.f32.gmra.mxu1 %v3689_v25  ;;  %1254 = vmatmul.f32.gmra.mxu2 %v3689_v25  ;;  %vm1148_vm5 = vmor %vm1146_vm4, %vm1147_vm3 }
 0x63b   :  { %v1139_v27 = vsel %vm1138_vm2, %v2890_v59, %v1135_v58  ;;  %v1142_v19 = vmul.f32 %v2892_v38, %v1141_v34  ;;  %1601 = vmatpush.msra.mxu3 %v1514_v0  ;;  %1573 = vmatpush.msra.mxu2 %v1510_v3  ;;  %v1467_v0 = vld [vmem:[#allocation7 + $0x180] sm:$0xff] }
 0x63c   :  { %v1152_v15 = vmul.f32 %v1139_v27, %v3655_v63 }
 0x63d   :  { %v1143_v26 = vmul.f32 0.5, %v1142_v19 }
 0x63e   :  { %v1159_v48 = vmul.f32 %v3669_v31, %v1152_v15 }
 0x63f   :  { %v1144_v40 = vsub.f32 1.5, %v1143_v26 }
 0x640   :  { %v3698_v50 = vadd.f32 %v3673_v5, %v1159_v48 }
 0x641   :  { %v1145_v52 = vmul.f32 %v2892_v38, %v1144_v40 }
 0x642   :  { %1228 = vmatmul.f32.gmra.mxu1 %v3698_v50  ;;  %1257 = vmatmul.f32.gmra.mxu2 %v3698_v50 }
 0x643   :  { %v1149_v63 = vsel %vm1148_vm5, %v2892_v38, %v1145_v52 }
 0x644   :  { %v1153_v57 = vmul.f32 %v1149_v63, %v3660_v42  ;;  %v1290_v42 = vld [vmem:[#allocation16 + $0x90] sm:$0xff] }
 0x645   :  { %1350 = vmatpush.msra.mxu0 %v1290_v42  ;;  %v1511_v42 = vld [vmem:[#allocation7 + $0x2e0] sm:$0xff] }
 0x646   :  { %v1160_v54 = vmul.f32 %v3669_v31, %v1153_v57  ;;  %v1289_v31 = vld [vmem:[#allocation16 + $0x88] sm:$0xff]  ;;  %1602 = vmatpush.msra.mxu3 %v1511_v42 }
 0x647   :  { %1351 = vmatpush.msra.mxu0 %v1289_v31 }
 0x648   :  { %v3706_v60 = vadd.f32 %v3673_v5, %v1160_v54  ;;  %v1288_v5 = vld [vmem:[#allocation16 + $0x80] sm:$0xff] }
 0x649   :  { %1352 = vmatpush.msra.mxu0 %v1288_v5 }
 0x64a   :  { %1231 = vmatmul.f32.gmra.mxu1 %v3706_v60  ;;  %1260 = vmatmul.f32.gmra.mxu2 %v3706_v60 }
 0x6af   :  { %v1223_v11 = vpop.f32.mrf.mxu1 }
 0x6b0   :  { %v1224_v43 = vadd.f32 %v1223_v11, %v1202_v9 }
 0x6b2   :  { %v1264_v2 = vmax.f32 %v1224_v43, 0.0 }
 0x6b4   :  { %1324 = vmatmul.f32.vlgmr.msrb.gmra.mxu3 %v1264_v2 }
 0x6b5   :  { %v1252_v13 = vpop.f32.mrf.mxu2 }
 0x6b6   :  { %v1253_v59 = vadd.f32 %v1252_v13, %v1203_v12 }
 0x6b7   :  { %v1226_v46 = vpop.f32.mrf.mxu1 }
 0x6b8   :  { %v1265_v17 = vmax.f32 %v1253_v59, 0.0  ;;  %v1227_v6 = vadd.f32 %v1226_v46, %v1202_v9 }
 0x6ba   :  { %v1266_v41 = vmax.f32 %v1227_v6, 0.0  ;;  %1353 = vmatmul.f32.vlgmr.msra.gmra.mxu0 %v1265_v17 }
 0x6bc   :  { %1327 = vmatmul.f32.gmra.mxu3 %v1266_v41  ;;  %v1506_v41 = vld [vmem:[#allocation7 + $0x2b8] sm:$0xff] }
 0x6bd   :  { %v1255_v20 = vpop.f32.mrf.mxu2 }
 0x6be   :  { %v1256_v49 = vadd.f32 %v1255_v20, %v1203_v12  ;;  %v1507_v20 = vld [vmem:[#allocation7 + $0x2c0] sm:$0xff] }
 0x6bf   :  { %v1229_v22 = vpop.f32.mrf.mxu1  ;;  %1574 = vmatpush.msra.mxu2 %v1507_v20 }
 0x6c0   :  { %v1267_v14 = vmax.f32 %v1256_v49, 0.0  ;;  %v1230_v36 = vadd.f32 %v1229_v22, %v1202_v9  ;;  %v1508_v49 = vld [vmem:[#allocation7 + $0x2c8] sm:$0xff]  ;;  %v1503_v22 = vld [vmem:[#allocation7 + $0x2a0] sm:$0xff] }
 0x6c1   :  { %1603 = vmatpush.msra.mxu3 %v1508_v49 }
 0x6c2   :  { %v1268_v37 = vmax.f32 %v1230_v36, 0.0  ;;  %1356 = vmatmul.f32.gmra.mxu0 %v1267_v14  ;;  %v1504_v14 = vld [vmem:[#allocation7 + $0x2a8] sm:$0xff]  ;;  %v1505_v36 = vld [vmem:[#allocation7 + $0x2b0] sm:$0xff] }
 0x6c3   :  { %1575 = vmatpush.msra.mxu2 %v1504_v14  ;;  %1604 = vmatpush.msra.mxu3 %v1505_v36  ;;  %v2811_v14 = vld [vmem:[%s4153_s12] ss:$0 sm:$0xff] }
 0x6c4   :  { %1330 = vmatmul.f32.gmra.mxu3 %v1268_v37  ;;  %v1500_v37 = vld [vmem:[#allocation7 + $0x288] sm:$0xff] }
 0x6c5   :  { %v1258_v18 = vpop.f32.mrf.mxu2 }
 0x6c6   :  { %v1259_v51 = vadd.f32 %v1258_v18, %v1203_v12  ;;  %v1501_v18 = vld [vmem:[#allocation7 + $0x290] sm:$0xff] }
 0x6c7   :  { %v1232_v10 = vpop.f32.mrf.mxu1  ;;  %1576 = vmatpush.msra.mxu2 %v1501_v18 }
 0x6c8   :  { %v1269_v39 = vmax.f32 %v1259_v51, 0.0  ;;  %v1233_v23 = vadd.f32 %v1232_v10, %v1202_v9  ;;  %v1502_v51 = vld [vmem:[#allocation7 + $0x298] sm:$0xff]  ;;  %v1497_v10 = vld [vmem:[#allocation7 + $0x270] sm:$0xff] }
 0x6c9   :  { %1605 = vmatpush.msra.mxu3 %v1502_v51  ;;  %v2812_v51 = vld [vmem:[%s4154_s13] ss:$0 sm:$0xff] }
 0x6ca   :  { %v1270_v29 = vmax.f32 %v1233_v23, 0.0  ;;  %1359 = vmatmul.f32.gmra.mxu0 %v1269_v39  ;;  %v1498_v39 = vld [vmem:[#allocation7 + $0x278] sm:$0xff]  ;;  %v1499_v23 = vld [vmem:[#allocation7 + $0x280] sm:$0xff] }
 0x6cb   :  { %1577 = vmatpush.msra.mxu2 %v1498_v39  ;;  %1606 = vmatpush.msra.mxu3 %v1499_v23 }
 0x6cc   :  { %1333 = vmatmul.f32.gmra.mxu3 %v1270_v29  ;;  %v1494_v29 = vld [vmem:[#allocation7 + $0x258] sm:$0xff] }
 0x6cd   :  { %v1261_v30 = vpop.f32.mrf.mxu2 }
 0x6ce   :  { %v1262_v38 = vadd.f32 %v1261_v30, %v1203_v12  ;;  %v1495_v30 = vld [vmem:[#allocation7 + $0x260] sm:$0xff] }
 0x6cf   :  { %1578 = vmatpush.msra.mxu2 %v1495_v30 }
 0x6d0   :  { %v1271_v32 = vmax.f32 %v1262_v38, 0.0  ;;  %v1496_v38 = vld [vmem:[#allocation7 + $0x268] sm:$0xff] }
 0x6d1   :  { %1607 = vmatpush.msra.mxu3 %v1496_v38 }
 0x6d2   :  { %1362 = vmatmul.f32.gmra.mxu0 %v1271_v32  ;;  %v1491_v32 = vld [vmem:[#allocation7 + $0x240] sm:$0xff] }
 0x737   :  { %v1325_v58 = vpop.f32.mrf.mxu3  ;;  %v1354_v34 = vpop.f32.mrf.mxu0 }
 0x738   :  { %v1326_v35 = vadd.f32 %v2810_v44, %v1325_v58  ;;  %v1493_v58 = vld [vmem:[#allocation7 + $0x250] sm:$0xff] }
 0x739   :  { %1608 = vmatpush.msra.mxu3 %v1493_v58 }
 0x73a   :  { %v1355_v24 = vadd.f32 %v1354_v34, %v1326_v35  ;;  %v1488_v34 = vld [vmem:[#allocation7 + $0x228] sm:$0xff]  ;;  %v1489_v35 = vld [vmem:[#allocation7 + $0x230] sm:$0xff] }
 0x73c   :  { %v1366_v27 = vadd.f32 %v1355_v24, %v3680_v16  ;;  %v1490_v24 = vld [vmem:[#allocation7 + $0x238] sm:$0xff] }
 0x73d   :  { %1609 = vmatpush.msra.mxu3 %v1490_v24 }
 0x73e   :  { %1372 = vadd.xlane.f32.xlu1 %v1366_v27 }
 0x73f   :  { %v1328_v19 = vpop.f32.mrf.mxu3  ;;  %v1357_v15 = vpop.f32.mrf.mxu0 }
 0x740   :  { %v1329_v47 = vadd.f32 %v2810_v44, %v1328_v19  ;;  %v1486_v19 = vld [vmem:[#allocation7 + $0x218] sm:$0xff] }
 0x742   :  { %v1358_v45 = vadd.f32 %v1357_v15, %v1329_v47  ;;  %v1487_v15 = vld [vmem:[#allocation7 + $0x220] sm:$0xff]  ;;  %v1482_v47 = vld [vmem:[#allocation7 + $0x1f8] sm:$0xff] }
 0x743   :  { %1610 = vmatpush.msra.mxu3 %v1487_v15 }
 0x744   :  { %v1367_v26 = vadd.f32 %v1358_v45, %v3689_v25  ;;  %v1509_v25 = vld [vmem:[#allocation7 + $0x2d0] sm:$0xff]  ;;  %v1483_v45 = vld [vmem:[#allocation7 + $0x200] sm:$0xff] }
 0x745   :  { %1544 = vmatpush.msra.mxu1 %v1509_v25  ;;  %v1469_v25 = vld [vmem:[#allocation7 + $0x190] sm:$0xff] }
 0x746   :  { %1374 = vadd.xlane.f32.xlu2 %v1367_v26 }
 0x747   :  { %v1331_v48 = vpop.f32.mrf.mxu3  ;;  %v1360_v28 = vpop.f32.mrf.mxu0  ;;  %1545 = vmatpush.msra.mxu1 %v1506_v41 }
 0x748   :  { %v1332_v40 = vadd.f32 %v2810_v44, %v1331_v48  ;;  %v1479_v48 = vld [vmem:[#allocation7 + $0x1e0] sm:$0xff] }
 0x749   :  { %1546 = vmatpush.msra.mxu1 %v1503_v22 }
 0x74a   :  { %v1361_v55 = vadd.f32 %v1360_v28, %v1332_v40  ;;  %v1480_v28 = vld [vmem:[#allocation7 + $0x1e8] sm:$0xff]  ;;  %v1481_v40 = vld [vmem:[#allocation7 + $0x1f0] sm:$0xff] }
 0x74b   :  { %1547 = vmatpush.msra.mxu1 %v1500_v37 }
 0x74c   :  { %v1368_v52 = vadd.f32 %v1361_v55, %v3698_v50  ;;  %v1476_v55 = vld [vmem:[#allocation7 + $0x1c8] sm:$0xff] }
 0x74d   :  { %1548 = vmatpush.msra.mxu1 %v1497_v10 }
 0x74e   :  { %1376 = vadd.xlane.f32.xlu0 %v1368_v52 }
 0x74f   :  { %v1334_v63 = vpop.f32.mrf.mxu3  ;;  %v1363_v54 = vpop.f32.mrf.mxu0  ;;  %1549 = vmatpush.msra.mxu1 %v1494_v29 }
 0x750   :  { %v1335_v57 = vadd.f32 %v2810_v44, %v1334_v63  ;;  %v1492_v44 = vld [vmem:[#allocation7 + $0x248] sm:$0xff]  ;;  %v1478_v63 = vld [vmem:[#allocation7 + $0x1d8] sm:$0xff] }
 0x751   :  { %1550 = vmatpush.msra.mxu1 %v1491_v32  ;;  %1579 = vmatpush.msra.mxu2 %v1492_v44 }
 0x752   :  { %v1364_v56 = vadd.f32 %v1363_v54, %v1335_v57  ;;  %v1473_v57 = vld [vmem:[#allocation7 + $0x1b0] sm:$0xff]  ;;  %v1474_v54 = vld [vmem:[#allocation7 + $0x1b8] sm:$0xff] }
 0x753   :  { %1551 = vmatpush.msra.mxu1 %v1488_v34  ;;  %1580 = vmatpush.msra.mxu2 %v1489_v35 }
 0x754   :  { %v1369_v16 = vadd.f32 %v1364_v56, %v3706_v60  ;;  %v1475_v56 = vld [vmem:[#allocation7 + $0x1c0] sm:$0xff] }
 0x755   :  { %1581 = vmatpush.msra.mxu2 %v1486_v19 }
 0x756   :  { %1378 = vadd.xlane.f32.xlu1 %v1369_v16 }
 0x757   :  { %1582 = vmatpush.msra.mxu2 %v1483_v45 }
 0x759   :  { %1583 = vmatpush.msra.mxu2 %v1480_v28 }
 0x7b1   :  { %v1373_v1 = vpop.xlane.xlu1 %1372 }
 0x7b2   :  { %v1380_v31 = vmul.f32 %v1373_v1, %v3642_v53  ;;  %v1468_v1 = vld [vmem:[#allocation7 + $0x188] sm:$0xff] }
 0x7b4   :  { %v3721_v50 = vsub.f32 %v1366_v27, %v1380_v31  ;;  %v1485_v27 = vld [vmem:[#allocation7 + $0x210] sm:$0xff] }
 0x7b5   :  { %1552 = vmatpush.msra.mxu1 %v1485_v27 }
 0x7b6   :  { %v1388_v60 = vmul.f32 %v3721_v50, %v3721_v50 }
 0x7b7   :  { %1553 = vmatpush.msra.mxu1 %v1482_v47 }
 0x7b8   :  { %1392 = vadd.xlane.f32.xlu2 %v1388_v60 }
 0x7b9   :  { %v1375_v5 = vpop.xlane.xlu2 %1374  ;;  %1554 = vmatpush.msra.mxu1 %v1479_v48 }
 0x7ba   :  { %v1381_v4 = vmul.f32 %v1375_v5, %v3642_v53 }
 0x7bb   :  { %1555 = vmatpush.msra.mxu1 %v1476_v55 }
 0x7bc   :  { %v3726_v9 = vsub.f32 %v1367_v26, %v1381_v4  ;;  %v1484_v26 = vld [vmem:[#allocation7 + $0x208] sm:$0xff] }
 0x7bd   :  { %1611 = vmatpush.msra.mxu3 %v1484_v26  ;;  %1556 = vmatpush.msra.mxu1 %v1473_v57 }
 0x7be   :  { %v1389_v11 = vmul.f32 %v3726_v9, %v3726_v9 }
 0x7bf   :  { %1612 = vmatpush.msra.mxu3 %v1481_v40 }
 0x7c0   :  { %1394 = vadd.xlane.f32.xlu0 %v1389_v11 }
 0x7c1   :  { %v1377_v43 = vpop.xlane.xlu0 %1376  ;;  %1613 = vmatpush.msra.mxu3 %v1478_v63 }
 0x7c2   :  { %v1382_v2 = vmul.f32 %v1377_v43, %v3642_v53 }
 0x7c3   :  { %1614 = vmatpush.msra.mxu3 %v1475_v56 }
 0x7c4   :  { %v3731_v12 = vsub.f32 %v1368_v52, %v1382_v2  ;;  %v1477_v52 = vld [vmem:[#allocation7 + $0x1d0] sm:$0xff] }
 0x7c5   :  { %1584 = vmatpush.msra.mxu2 %v1477_v52  ;;  %1615 = vmatpush.msra.mxu3 %v1472_v62 }
 0x7c6   :  { %v1390_v13 = vmul.f32 %v3731_v12, %v3731_v12 }
 0x7c7   :  { %1585 = vmatpush.msra.mxu2 %v1474_v54  ;;  %1616 = vmatpush.msra.mxu3 %v1469_v25  ;;  %v1516_v25 = vld [vmem:[#allocation8 + $0x3] sm:$0x7] }
 0x7c8   :  { %1396 = vadd.xlane.f32.xlu1 %v1390_v13 }
 0x7c9   :  { %v1379_v59 = vpop.xlane.xlu1 %1378  ;;  %1586 = vmatpush.msra.mxu2 %v1471_v61 }
 0x7ca   :  { %v1383_v46 = vmul.f32 %v1379_v59, %v3642_v53 }
 0x7cb   :  { %1587 = vmatpush.msra.mxu2 %v1468_v1 }
 0x7cc   :  { %v3736_v17 = vsub.f32 %v1369_v16, %v1383_v46  ;;  %v1470_v16 = vld [vmem:[#allocation7 + $0x198] sm:$0xff] }
 0x7cd   :  { %1557 = vmatpush.msra.mxu1 %v1470_v16 }
 0x7ce   :  { %v1391_v6 = vmul.f32 %v3736_v17, %v3736_v17 }
 0x7cf   :  { %1558 = vmatpush.msra.mxu1 %v1467_v0 }
 0x7d0   :  { %1398 = vadd.xlane.f32.xlu2 %v1391_v6 }
 0x82b   :  { %v1393_v3 = vpop.xlane.xlu2 %1392 }
 0x82c   :  { %v1400_v42 = vmul.f32 %v1393_v3, %v3642_v53  ;;  %v1538_v3 = vperm.slane %v1516_v25, 1 }
 0x82e   :  { %v1404_v31 = vadd.f32 1e-05, %v1400_v42  ;;  %v3774_v42 = vperm.slane %v1516_v25, 0 }
 0x830   :  { %2893 = vrsqrt.f32 %v1404_v31  ;;  %vm1414_vm7 = vweird.f32 %v1404_v31 }
 0x833   :  { %v1395_v60 = vpop.xlane.xlu0 %1394 }
 0x834   :  { %v1401_v5 = vmul.f32 %v1395_v60, %v3642_v53 }
 0x836   :  { %v2894_v4 = vpop.eup %2893  ;;  %v1405_v11 = vadd.f32 1e-05, %v1401_v5 }
 0x837   :  { %v1409_v43 = vmul.f32 %v2894_v4, %v1404_v31  ;;  %vm1415_vm6 = vweird.f32 %v2894_v4  ;;  %v1539_v31 = vperm.slane %v1516_v25, 2 }
 0x838   :  { %2895 = vrsqrt.f32 %v1405_v11  ;;  %vm1416_vm9 = vmor %vm1414_vm7, %vm1415_vm6  ;;  %vm1424_vm11 = vweird.f32 %v1405_v11 }
 0x839   :  { %v1410_v2 = vmul.f32 %v2894_v4, %v1409_v43 }
 0x83b   :  { %v1411_v13 = vmul.f32 0.5, %v1410_v2  ;;  %v1397_v59 = vpop.xlane.xlu1 %1396 }
 0x83c   :  { %v1402_v46 = vmul.f32 %v1397_v59, %v3642_v53 }
 0x83d   :  { %v1412_v6 = vsub.f32 1.5, %v1411_v13 }
 0x83e   :  { %v2896_v41 = vpop.eup %2895  ;;  %v1406_v20 = vadd.f32 1e-05, %v1402_v46 }
 0x83f   :  { %v1413_v49 = vmul.f32 %v2894_v4, %v1412_v6  ;;  %v1419_v22 = vmul.f32 %v2896_v41, %v1405_v11  ;;  %vm1425_vm10 = vweird.f32 %v2896_v41 }
 0x840   :  { %2897 = vrsqrt.f32 %v1406_v20  ;;  %vm1426_vm12 = vmor %vm1424_vm11, %vm1425_vm10  ;;  %vm1434_vm14 = vweird.f32 %v1406_v20 }
 0x841   :  { %v1417_v36 = vsel %vm1416_vm9, %v2894_v4, %v1413_v49  ;;  %v1420_v37 = vmul.f32 %v2896_v41, %v1419_v22 }
 0x842   :  { %v1448_v18 = vmul.f32 %v1417_v36, %v3721_v50 }
 0x843   :  { %v1421_v10 = vmul.f32 0.5, %v1420_v37  ;;  %v1399_v39 = vpop.xlane.xlu2 %1398 }
 0x844   :  { %v1403_v23 = vmul.f32 %v1399_v39, %v3642_v53  ;;  %v1455_v29 = vmul.f32 %v2811_v14, %v1448_v18 }
 0x845   :  { %v1422_v30 = vsub.f32 1.5, %v1421_v10 }
 0x846   :  { %v2898_v38 = vpop.eup %2897  ;;  %v1407_v32 = vadd.f32 1e-05, %v1403_v23  ;;  %v3751_v44 = vadd.f32 %v2812_v51, %v1455_v29 }
 0x847   :  { %v1423_v58 = vmul.f32 %v2896_v41, %v1422_v30  ;;  %v1429_v34 = vmul.f32 %v2898_v38, %v1406_v20  ;;  %vm1435_vm13 = vweird.f32 %v2898_v38 }
 0x848   :  { %2899 = vrsqrt.f32 %v1407_v32  ;;  %1559 = vmatmul.f32.vlgmr.msra.gmra.mxu1 %v3751_v44  ;;  %1588 = vmatmul.f32.vlgmr.msra.gmra.mxu2 %v3751_v44  ;;  %vm1436_vm15 = vmor %vm1434_vm14, %vm1435_vm13  ;;  %vm1444_vm1 = vweird.f32 %v1407_v32 }
 0x849   :  { %v1427_v50 = vsel %vm1426_vm12, %v2896_v41, %v1423_v58  ;;  %v1430_v35 = vmul.f32 %v2898_v38, %v1429_v34  ;;  %1617 = vmatmul.f32.vlgmr.msra.gmra.mxu3 %v3751_v44 }
 0x84a   :  { %v1449_v24 = vmul.f32 %v1427_v50, %v3726_v9 }
 0x84b   :  { %v1431_v27 = vmul.f32 0.5, %v1430_v35 }
 0x84c   :  { %v1456_v19 = vmul.f32 %v2811_v14, %v1449_v24 }
 0x84d   :  { %v1432_v15 = vsub.f32 1.5, %v1431_v27 }
 0x84e   :  { %v2900_v47 = vpop.eup %2899  ;;  %v3757_v45 = vadd.f32 %v2812_v51, %v1456_v19 }
 0x84f   :  { %v1433_v26 = vmul.f32 %v2898_v38, %v1432_v15  ;;  %v1439_v48 = vmul.f32 %v2900_v47, %v1407_v32  ;;  %vm1445_vm0 = vweird.f32 %v2900_v47 }
 0x850   :  { %1562 = vmatmul.f32.gmra.mxu1 %v3757_v45  ;;  %1591 = vmatmul.f32.gmra.mxu2 %v3757_v45  ;;  %vm1446_vm2 = vmor %vm1444_vm1, %vm1445_vm0 }
 0x851   :  { %v1437_v28 = vsel %vm1436_vm15, %v2898_v38, %v1433_v26  ;;  %v1440_v40 = vmul.f32 %v2900_v47, %v1439_v48  ;;  %1620 = vmatmul.f32.gmra.mxu3 %v3757_v45 }
 0x852   :  { %v1450_v9 = vmul.f32 %v1437_v28, %v3731_v12 }
 0x853   :  { %v1441_v55 = vmul.f32 0.5, %v1440_v40 }
 0x854   :  { %v1457_v52 = vmul.f32 %v2811_v14, %v1450_v9 }
 0x855   :  { %v1442_v63 = vsub.f32 1.5, %v1441_v55 }
 0x856   :  { %v3763_v57 = vadd.f32 %v2812_v51, %v1457_v52 }
 0x857   :  { %v1443_v54 = vmul.f32 %v2900_v47, %v1442_v63 }
 0x858   :  { %1565 = vmatmul.f32.gmra.mxu1 %v3763_v57  ;;  %1594 = vmatmul.f32.gmra.mxu2 %v3763_v57 }
 0x859   :  { %v1447_v56 = vsel %vm1446_vm2, %v2900_v47, %v1443_v54  ;;  %1623 = vmatmul.f32.gmra.mxu3 %v3763_v57 }
 0x85a   :  { %v1451_v16 = vmul.f32 %v1447_v56, %v3736_v17 }
 0x85c   :  { %v1458_v61 = vmul.f32 %v2811_v14, %v1451_v16 }
 0x85e   :  { %v3769_v12 = vadd.f32 %v2812_v51, %v1458_v61 }
 0x860   :  { %1568 = vmatmul.f32.gmra.mxu1 %v3769_v12  ;;  %1597 = vmatmul.f32.gmra.mxu2 %v3769_v12 }
 0x861   :  { %1626 = vmatmul.f32.gmra.mxu3 %v3769_v12 }
 0x8c5   :  { %v1560_v1 = vpop.f32.mrf.mxu1 }
 0x8c6   :  { %v3783_v11 = vadd.f32 %v1560_v1, %v3774_v42 }
 0x8c8   :  { %v1630_v41 = vmul.f32 %v3402_v7, %v3783_v11  ;;  %v1732_v20 = vmul.f32 %v3446_v33, %v3783_v11 }
 0x8cb   :  { %v1589_v62 = vpop.f32.mrf.mxu2 }
 0x8cc   :  { %v1618_v0 = vpop.f32.mrf.mxu3  ;;  %v3785_v43 = vadd.f32 %v1589_v62, %v1538_v3 }
 0x8cd   :  { %v3787_v2 = vadd.f32 %v1618_v0, %v1539_v31  ;;  %v1563_v13 = vpop.f32.mrf.mxu1 }
 0x8ce   :  { %v3806_v37 = vadd.f32 %v1563_v13, %v3774_v42 }
 0x8cf   :  { %v1830_v22 = vmul.f32 %v3446_v33, %v3787_v2  ;;  %v1728_v14 = vmul.f32 %v3402_v7, %v3787_v2  ;;  %v2048_v18 = vmul.f32 %v3404_v8, %v3787_v2 }
 0x8d0   :  { %v1631_v39 = vmul.f32 %v3402_v7, %v3806_v37  ;;  %v1733_v23 = vmul.f32 %v3446_v33, %v3806_v37 }
 0x8d3   :  { %v1592_v60 = vpop.f32.mrf.mxu2 }
 0x8d4   :  { %v3776_v5 = vadd.f32 %v1592_v60, %v1538_v3  ;;  %v1621_v17 = vpop.f32.mrf.mxu3 }
 0x8d5   :  { %v3778_v4 = vadd.f32 %v1621_v17, %v1539_v31  ;;  %v1566_v51 = vpop.f32.mrf.mxu1 }
 0x8d6   :  { %1648 = vmatpush.xpose.msrb.mxu0 %v3776_v5  ;;  %1750 = vmatpush.xpose.msrb.mxu2 %v3776_v5  ;;  %v3823_v32 = vadd.f32 %v1566_v51, %v3774_v42 }
 0x8d7   :  { %v1831_v59 = vmul.f32 %v3446_v33, %v3778_v4  ;;  %v1729_v46 = vmul.f32 %v3402_v7, %v3778_v4  ;;  %v2049_v36 = vmul.f32 %v3404_v8, %v3778_v4 }
 0x8d8   :  { %v1632_v24 = vmul.f32 %v3402_v7, %v3823_v32  ;;  %v1734_v27 = vmul.f32 %v3446_v33, %v3823_v32 }
 0x8da   :  { %1649 = vmatpush.xpose.msrb.mxu0 %v3785_v43  ;;  %1751 = vmatpush.xpose.msrb.mxu2 %v3785_v43 }
 0x8db   :  { %v1595_v6 = vpop.f32.mrf.mxu2 }
 0x8dc   :  { %v1624_v49 = vpop.f32.mrf.mxu3  ;;  %v3825_v58 = vadd.f32 %v1595_v6, %v1538_v3 }
 0x8dd   :  { %1650 = vmatmul.f32.vlgmr.msrb.gmra.mxu0 %v1630_v41  ;;  %1752 = vmatmul.f32.vlgmr.msrb.gmra.mxu2 %v1732_v20  ;;  %v3827_v34 = vadd.f32 %v1624_v49, %v1539_v31  ;;  %v1569_v19 = vpop.f32.mrf.mxu1 }
 0x8de   :  { %1854 = vmatpush.msra.mxu0 %v1831_v59  ;;  %1912 = vmatpush.msra.mxu2 %v1729_v46  ;;  %v3846_v48 = vadd.f32 %v1569_v19, %v3774_v42 }
 0x8df   :  { %v1832_v15 = vmul.f32 %v3446_v33, %v3827_v34  ;;  %v1730_v47 = vmul.f32 %v3402_v7, %v3827_v34  ;;  %v2050_v28 = vmul.f32 %v3404_v8, %v3827_v34 }
 0x8e0   :  { %1855 = vmatpush.msra.mxu0 %v1830_v22  ;;  %1913 = vmatpush.msra.mxu2 %v1728_v14  ;;  %v1633_v40 = vmul.f32 %v3402_v7, %v3846_v48  ;;  %v1735_v9 = vmul.f32 %v3446_v33, %v3846_v48 }
 0x8e2   :  { %1968 = vmatpush.xpose.msrb.mxu0 %v3776_v5  ;;  %2072 = vmatpush.msrb.mxu2 %v2049_v36 }
 0x8e3   :  { %v1598_v10 = vpop.f32.mrf.mxu2 }
 0x8e4   :  { %2073 = vmatpush.msrb.mxu2 %v2048_v18  ;;  %v3816_v29 = vadd.f32 %v1598_v10, %v1538_v3  ;;  %v1627_v30 = vpop.f32.mrf.mxu3 }
 0x8e5   :  { %v3818_v38 = vadd.f32 %v1627_v30, %v1539_v31  ;;  %1653 = vmatmul.f32.gmra.mxu0 %v1631_v39  ;;  %1755 = vmatmul.f32.gmra.mxu2 %v1733_v23 }
 0x8e6   :  { %1969 = vmatpush.xpose.msrb.mxu0 %v3785_v43  ;;  %1671 = vmatpush.xpose.msrb.mxu1 %v3816_v29 }
 0x8e7   :  { %1773 = vmatpush.xpose.msrb.mxu3 %v3816_v29  ;;  %v1833_v50 = vmul.f32 %v3446_v33, %v3818_v38  ;;  %v1731_v35 = vmul.f32 %v3402_v7, %v3818_v38  ;;  %v2051_v26 = vmul.f32 %v3404_v8, %v3818_v38 }
 0x8ea   :  { %1672 = vmatpush.xpose.msrb.mxu1 %v3825_v58 }
 0x8eb   :  { %1774 = vmatpush.xpose.msrb.mxu3 %v3825_v58 }
 0x8ed   :  { %1673 = vmatmul.f32.vlgmr.msrb.gmra.mxu1 %v1632_v24 }
 0x8ee   :  { %1883 = vmatpush.msra.mxu1 %v1833_v50  ;;  %1775 = vmatmul.f32.vlgmr.msrb.gmra.mxu3 %v1734_v27 }
 0x8ef   :  { %1941 = vmatpush.msra.mxu3 %v1731_v35 }
 0x8f0   :  { %1884 = vmatpush.msra.mxu1 %v1832_v15 }
 0x8f1   :  { %1942 = vmatpush.msra.mxu3 %v1730_v47 }
 0x8f2   :  { %1991 = vmatpush.xpose.msrb.mxu1 %v3816_v29 }
 0x8f3   :  { %2101 = vmatpush.msrb.mxu3 %v2051_v26 }
 0x8f5   :  { %2102 = vmatpush.msrb.mxu3 %v2050_v28  ;;  %1676 = vmatmul.f32.gmra.mxu1 %v1633_v40 }
 0x8f6   :  { %1992 = vmatpush.xpose.msrb.mxu1 %v3825_v58  ;;  %1778 = vmatmul.f32.gmra.mxu3 %v1735_v9 }
 0x95a   :  { %v1651_v20 = vpop.f32.mrf.mxu0 }
 0x95b   :  { %v3862_v14 = vmul.f32 0.17677669, %v1651_v20 }
 0x95d   :  { %v1684_v23 = vsel %vm434_vm8, %v3862_v14, -inf }
 0x960   :  { %v1753_v55 = vpop.f32.mrf.mxu2 }
 0x961   :  { %v1782_v52 = vmul.f32 0.17677669, %v1753_v55 }
 0x962   :  { %v1654_v50 = vpop.f32.mrf.mxu0 }
 0x963   :  { %v1786_v63 = vsel %vm434_vm8, %v1782_v52, -inf  ;;  %v3867_v35 = vmul.f32 0.17677669, %v1654_v50 }
 0x964   :  { %1787 = vmax.xlane.f32.xlu0 %v1786_v63 }
 0x965   :  { %v1687_v27 = vsel %vm434_vm8, %v3867_v35, -inf }
 0x968   :  { %v1756_v54 = vpop.f32.mrf.mxu2 }
 0x969   :  { %v1783_v56 = vmul.f32 0.17677669, %v1756_v54 }
 0x96a   :  { %v1674_v10 = vpop.f32.mrf.mxu1 }
 0x96b   :  { %v1789_v16 = vsel %vm434_vm8, %v1783_v56, -inf  ;;  %v3872_v47 = vmul.f32 0.17677669, %v1674_v10 }
 0x96c   :  { %1790 = vmax.xlane.f32.xlu1 %v1789_v16 }
 0x96d   :  { %v1690_v28 = vsel %vm434_vm8, %v3872_v47, -inf }
 0x971   :  { %v1776_v61 = vpop.f32.mrf.mxu3 }
 0x972   :  { %v1784_v62 = vmul.f32 0.17677669, %v1776_v61  ;;  %v1677_v15 = vpop.f32.mrf.mxu1 }
 0x973   :  { %v3874_v26 = vmul.f32 0.17677669, %v1677_v15 }
 0x974   :  { %v1792_v0 = vsel %vm434_vm8, %v1784_v62, -inf }
 0x975   :  { %1793 = vmax.xlane.f32.xlu2 %v1792_v0  ;;  %v1693_v40 = vsel %vm434_vm8, %v3874_v26, -inf }
 0x979   :  { %v1779_v7 = vpop.f32.mrf.mxu3 }
 0x97a   :  { %v1785_v1 = vmul.f32 0.17677669, %v1779_v7  ;;  %v1950_v7 = vmul.f32 %v3404_v8, %v3783_v11 }
 0x97c   :  { %v1795_v33 = vsel %vm434_vm8, %v1785_v1, -inf }
 0x97d   :  { %1796 = vmax.xlane.f32.xlu0 %v1795_v33  ;;  %v1952_v33 = vmul.f32 %v3404_v8, %v3823_v32 }
 0x9d7   :  { %v1788_v25 = vpop.xlane.xlu0 %1787 }
 0x9d8   :  { %v1798_v3 = vsub.f32 %v1782_v52, %v1788_v25  ;;  %v2114_v25 = vmul.f32 %v3423_v21, %v3783_v11 }
 0x9da   :  { %v1802_v42 = vmul.f32 1.442695, %v1798_v3  ;;  %v2116_v3 = vmul.f32 %v3423_v21, %v3823_v32 }
 0x9dc   :  { %2901 = vpow2.f32 %v1802_v42  ;;  %v2117_v42 = vmul.f32 %v3423_v21, %v3846_v48 }
 0x9df   :  { %v1791_v31 = vpop.xlane.xlu1 %1790 }
 0x9e0   :  { %v1799_v60 = vsub.f32 %v1783_v56, %v1791_v31 }
 0x9e2   :  { %v2902_v17 = vpop.eup %2901  ;;  %v1804_v13 = vmul.f32 1.442695, %v1799_v60 }
 0x9e3   :  { %v1810_v59 = vsel %vm434_vm8, %v2902_v17, 0.0 }
 0x9e4   :  { %2903 = vpow2.f32 %v1804_v13  ;;  %1811 = vadd.xlane.f32.xlu1 %v1810_v59 }
 0x9e8   :  { %v1794_v46 = vpop.xlane.xlu2 %1793 }
 0x9e9   :  { %v1800_v6 = vsub.f32 %v1784_v62, %v1794_v46 }
 0x9ea   :  { %v2904_v41 = vpop.eup %2903 }
 0x9eb   :  { %v1806_v49 = vmul.f32 1.442695, %v1800_v6  ;;  %v1813_v22 = vsel %vm434_vm8, %v2904_v41, 0.0 }
 0x9ec   :  { %1814 = vadd.xlane.f32.xlu2 %v1813_v22 }
 0x9ed   :  { %2905 = vpow2.f32 %v1806_v49 }
 0x9f0   :  { %v1797_v36 = vpop.xlane.xlu0 %1796 }
 0x9f1   :  { %v1801_v18 = vsub.f32 %v1785_v1, %v1797_v36  ;;  %v1951_v1 = vmul.f32 %v3404_v8, %v3806_v37 }
 0x9f3   :  { %v2906_v51 = vpop.eup %2905  ;;  %v1808_v39 = vmul.f32 1.442695, %v1801_v18 }
 0x9f4   :  { %v1816_v30 = vsel %vm434_vm8, %v2906_v51, 0.0  ;;  %1685 = vmax.xlane.f32.xlu2 %v1684_v23 }
 0x9f5   :  { %2907 = vpow2.f32 %v1808_v39  ;;  %1817 = vadd.xlane.f32.xlu0 %v1816_v30 }
 0x9fb   :  { %v2908_v24 = vpop.eup %2907 }
 0x9fc   :  { %v1819_v19 = vsel %vm434_vm8, %v2908_v24, 0.0 }
 0x9fd   :  { %1688 = vmax.xlane.f32.xlu0 %v1687_v27  ;;  %1820 = vadd.xlane.f32.xlu1 %v1819_v19 }
 0xa05   :  { %1691 = vmax.xlane.f32.xlu1 %v1690_v28  ;;  %1694 = vmax.xlane.f32.xlu0 %v1693_v40 }
 0xa57   :  { %v1812_v9 = vpop.xlane.xlu1 %1811 }
 0xa58   :  { %2909 = vrcp.f32 %v1812_v9 }
 0xa5e   :  { %v2910_v55 = vpop.eup %2909 }
 0xa5f   :  { %v1826_v52 = vmul.f32 %v2910_v55, %v2902_v17  ;;  %v1815_v63 = vpop.xlane.xlu2 %1814 }
 0xa60   :  { %2911 = vrcp.f32 %v1815_v63 }
 0xa61   :  { %2764 = vmatmul.msk.f32.vlgmr.msra.gmra.mxu0 %vm434_vm8, %v1826_v52 }
 0xa62   :  { %2132 = vmatpush.xpose.msra.mxu0 %v3776_v5 }
 0xa66   :  { %v2912_v54 = vpop.eup %2911  ;;  %2133 = vmatpush.xpose.msra.mxu0 %v3785_v43 }
 0xa67   :  { %v1827_v16 = vmul.f32 %v2912_v54, %v2904_v41 }
 0xa68   :  { %v1818_v56 = vpop.xlane.xlu0 %1817 }
 0xa69   :  { %2913 = vrcp.f32 %v1818_v56  ;;  %2765 = vmatmul.msk.f32.gmra.mxu0 %vm434_vm8, %v1827_v16 }
 0xa6f   :  { %v2914_v61 = vpop.eup %2913 }
 0xa70   :  { %v1828_v62 = vmul.f32 %v2914_v61, %v2906_v51  ;;  %v1821_v0 = vpop.xlane.xlu1 %1820  ;;  %v1689_v10 = vpop.xlane.xlu0 %1688 }
 0xa71   :  { %2915 = vrcp.f32 %v1821_v0  ;;  %1970 = vmatmul.f32.vlgmr.msrb.gmra.mxu0 %v1950_v7  ;;  %v1697_v27 = vsub.f32 %v3867_v35, %v1689_v10 }
 0xa72   :  { %2766 = vmatmul.msk.f32.vlgmr.msra.gmra.mxu1 %vm434_vm8, %v1828_v62 }
 0xa73   :  { %2155 = vmatpush.xpose.msra.mxu1 %v3816_v29  ;;  %v1953_v29 = vmul.f32 %v3404_v8, %v3846_v48  ;;  %v1686_v48 = vpop.xlane.xlu2 %1685  ;;  %v1702_v40 = vmul.f32 1.442695, %v1697_v27 }
 0xa74   :  { %v1696_v22 = vsub.f32 %v3862_v14, %v1686_v48 }
 0xa76   :  { %v1700_v51 = vmul.f32 1.442695, %v1696_v22 }
 0xa77   :  { %v2916_v5 = vpop.eup %2915  ;;  %2156 = vmatpush.xpose.msra.mxu1 %v3825_v58  ;;  %v2115_v58 = vmul.f32 %v3423_v21, %v3806_v37 }
 0xa78   :  { %v1829_v43 = vmul.f32 %v2916_v5, %v2908_v24  ;;  %v1692_v39 = vpop.xlane.xlu1 %1691  ;;  %2917 = vpow2.f32 %v1700_v51  ;;  %v1695_v55 = vpop.xlane.xlu0 %1694 }
 0xa79   :  { %1973 = vmatmul.f32.gmra.mxu0 %v1951_v1  ;;  %v1698_v14 = vsub.f32 %v3872_v47, %v1692_v39  ;;  %v1699_v35 = vsub.f32 %v3874_v26, %v1695_v55 }
 0xa7a   :  { %2767 = vmatmul.msk.f32.gmra.mxu1 %vm434_vm8, %v1829_v43 }
 0xa7b   :  { %v1704_v28 = vmul.f32 1.442695, %v1698_v14  ;;  %v1706_v56 = vmul.f32 1.442695, %v1699_v35 }
 0xa7d   :  { %2919 = vpow2.f32 %v1704_v28 }
 0xa7e   :  { %v3933_v9 = vpop.eup %2917  ;;  %2921 = vpow2.f32 %v1702_v40 }
 0xa7f   :  { %v1708_v47 = vsel %vm434_vm8, %v3933_v9, 0.0  ;;  %2923 = vpow2.f32 %v1706_v56 }
 0xa81   :  { %2134 = vmatmul.f32.vlgmr.msra.gmra.mxu0 %v2114_v25 }
 0xa82   :  { %1993 = vmatmul.f32.vlgmr.msrb.gmra.mxu1 %v1952_v33 }
 0xa83   :  { %v3942_v16 = vpop.eup %2919 }
 0xa84   :  { %v3944_v62 = vpop.eup %2921  ;;  %v1714_v7 = vsel %vm434_vm8, %v3942_v16, 0.0 }
 0xa85   :  { %v1711_v5 = vsel %vm434_vm8, %v3944_v62, 0.0  ;;  %v3954_v43 = vpop.eup %2923 }
 0xa86   :  { %v1717_v1 = vsel %vm434_vm8, %v3954_v43, 0.0 }
 0xa89   :  { %2137 = vmatmul.f32.gmra.mxu0 %v2115_v58 }
 0xa8a   :  { %1996 = vmatmul.f32.gmra.mxu1 %v1953_v29 }
 0xa92   :  { %2157 = vmatmul.f32.vlgmr.msra.gmra.mxu1 %v2116_v3 }
 0xa9a   :  { %2160 = vmatmul.f32.gmra.mxu1 %v2117_v42 }
 0xade   :  { %v3904_v31 = vpop.f32.mrf.mxu0 }
 0xae6   :  { %v3906_v11 = vpop.f32.mrf.mxu0 }
 0xaee   :  { %v1971_v8 = vpop.f32.mrf.mxu0 }
 0xaef   :  { %v3908_v60 = vpop.f32.mrf.mxu1  ;;  %v2000_v17 = vmul.f32 0.17677669, %v1971_v8 }
 0xaf1   :  { %v2004_v37 = vsel %vm434_vm8, %v2000_v17, -inf }
 0xaf2   :  { %2005 = vmax.xlane.f32.xlu2 %v2004_v37 }
 0xaf6   :  { %v1974_v59 = vpop.f32.mrf.mxu0 }
 0xaf7   :  { %v3911_v13 = vpop.f32.mrf.mxu1  ;;  %v2001_v32 = vmul.f32 0.17677669, %v1974_v59 }
 0xaf9   :  { %v2007_v46 = vsel %vm434_vm8, %v2001_v32, -inf }
 0xafa   :  { %2008 = vmax.xlane.f32.xlu1 %v2007_v46 }
 0xafe   :  { %v2135_v41 = vpop.f32.mrf.mxu0 }
 0xaff   :  { %v1994_v6 = vpop.f32.mrf.mxu1  ;;  %v3916_v49 = vmul.f32 0.17677669, %v2135_v41 }
 0xb00   :  { %v3914_v20 = vmul.f32 0.17677669, %v1994_v6 }
 0xb01   :  { %v2168_v18 = vsel %vm434_vm8, %v3916_v49, -inf }
 0xb02   :  { %v2010_v36 = vsel %vm434_vm8, %v3914_v20, -inf  ;;  %2169 = vmax.xlane.f32.xlu0 %v2168_v18 }
 0xb03   :  { %2011 = vmax.xlane.f32.xlu2 %v2010_v36 }
 0xb06   :  { %v2138_v30 = vpop.f32.mrf.mxu0 }
 0xb07   :  { %v1997_v23 = vpop.f32.mrf.mxu1  ;;  %v3925_v24 = vmul.f32 0.17677669, %v2138_v30 }
 0xb08   :  { %v3923_v50 = vmul.f32 0.17677669, %v1997_v23 }
 0xb09   :  { %v2171_v19 = vsel %vm434_vm8, %v3925_v24, -inf }
 0xb0a   :  { %v2013_v15 = vsel %vm434_vm8, %v3923_v50, -inf }
 0xb0b   :  { %2172 = vmax.xlane.f32.xlu2 %v2171_v19  ;;  %2014 = vmax.xlane.f32.xlu1 %v2013_v15 }
 0xb0f   :  { %v2158_v52 = vpop.f32.mrf.mxu1 }
 0xb10   :  { %v3935_v63 = vmul.f32 0.17677669, %v2158_v52 }
 0xb12   :  { %v2174_v54 = vsel %vm434_vm8, %v3935_v63, -inf }
 0xb13   :  { %1709 = vadd.xlane.f32.xlu1 %v1708_v47  ;;  %2175 = vmax.xlane.f32.xlu0 %v2174_v54 }
 0xb17   :  { %v2161_v61 = vpop.f32.mrf.mxu1 }
 0xb18   :  { %v3946_v0 = vmul.f32 0.17677669, %v2161_v61  ;;  %v2213_v61 = vmul.f32 %v3423_v21, %v3778_v4 }
 0xb1a   :  { %v2177_v26 = vsel %vm434_vm8, %v3946_v0, -inf }
 0xb1b   :  { %2178 = vmax.xlane.f32.xlu2 %v2177_v26  ;;  %1715 = vadd.xlane.f32.xlu1 %v1714_v7 }
 0xb1c   :  { %1712 = vadd.xlane.f32.xlu0 %v1711_v5  ;;  %v2212_v5 = vmul.f32 %v3423_v21, %v3787_v2 }
 0xb24   :  { %1718 = vadd.xlane.f32.xlu0 %v1717_v1 }
 0xb65   :  { %v2006_v33 = vpop.xlane.xlu2 %2005 }
 0xb66   :  { %v2016_v25 = vsub.f32 %v2000_v17, %v2006_v33 }
 0xb68   :  { %v2020_v29 = vmul.f32 1.442695, %v2016_v25 }
 0xb6a   :  { %2925 = vpow2.f32 %v2020_v29  ;;  %v2215_v29 = vmul.f32 %v3423_v21, %v3818_v38 }
 0xb6d   :  { %v2009_v58 = vpop.xlane.xlu1 %2008 }
 0xb6e   :  { %v2017_v3 = vsub.f32 %v2001_v32, %v2009_v58  ;;  %v2214_v58 = vmul.f32 %v3423_v21, %v3827_v34 }
 0xb70   :  { %v3958_v42 = vpop.eup %2925  ;;  %v2022_v8 = vmul.f32 1.442695, %v2017_v3 }
 0xb71   :  { %v2028_v37 = vsel %vm434_vm8, %v3958_v42, 0.0 }
 0xb72   :  { %2927 = vpow2.f32 %v2022_v8  ;;  %2029 = vadd.xlane.f32.xlu2 %v2028_v37 }
 0xb75   :  { %v2170_v46 = vpop.xlane.xlu0 %2169 }
 0xb76   :  { %v2012_v59 = vpop.xlane.xlu2 %2011  ;;  %v2180_v6 = vsub.f32 %v3916_v49, %v2170_v46 }
 0xb77   :  { %v2018_v48 = vsub.f32 %v3914_v20, %v2012_v59 }
 0xb78   :  { %v3964_v41 = vpop.eup %2927  ;;  %v2184_v22 = vmul.f32 1.442695, %v2180_v6 }
 0xb79   :  { %v2024_v17 = vmul.f32 1.442695, %v2018_v48  ;;  %v2031_v32 = vsel %vm434_vm8, %v3964_v41, 0.0 }
 0xb7a   :  { %2032 = vadd.xlane.f32.xlu1 %v2031_v32 }
 0xb7b   :  { %2929 = vpow2.f32 %v2024_v17 }
 0xb7c   :  { %2931 = vpow2.f32 %v2184_v22 }
 0xb7e   :  { %v2173_v36 = vpop.xlane.xlu2 %2172  ;;  %v2015_v18 = vpop.xlane.xlu1 %2014 }
 0xb7f   :  { %v2181_v51 = vsub.f32 %v3925_v24, %v2173_v36  ;;  %v2019_v10 = vsub.f32 %v3923_v50, %v2015_v18  ;;  %v1533_v36 = vld [vmem:[#allocation10 + $0xf8] sm:$0xff]  ;;  %v1532_v18 = vld [vmem:[#allocation10 + $0xf0] sm:$0xff] }
 0xb80   :  { %2281 = vmatpush.msrb.mxu0 %v1533_v36 }
 0xb81   :  { %v3970_v39 = vpop.eup %2929  ;;  %v2186_v20 = vmul.f32 1.442695, %v2181_v51  ;;  %v2026_v49 = vmul.f32 1.442695, %v2019_v10 }
 0xb82   :  { %v3972_v23 = vpop.eup %2931  ;;  %v2034_v30 = vsel %vm434_vm8, %v3970_v39, 0.0  ;;  %2282 = vmatpush.msrb.mxu0 %v1532_v18 }
 0xb83   :  { %2933 = vpow2.f32 %v2186_v20  ;;  %2035 = vadd.xlane.f32.xlu2 %v2034_v30  ;;  %v2192_v14 = vsel %vm434_vm8, %v3972_v23, 0.0  ;;  %v1529_v30 = vld [vmem:[#allocation10 + $0xd8] sm:$0xff] }
 0xb84   :  { %2935 = vpow2.f32 %v2026_v49  ;;  %2193 = vadd.xlane.f32.xlu0 %v2192_v14  ;;  %v1531_v49 = vld [vmem:[#allocation10 + $0xe8] sm:$0xff] }
 0xb85   :  { %2283 = vmatpush.msrb.mxu0 %v1531_v49  ;;  %v2442_v49 = vld [vmem:[#allocation14 + $0x1e8] sm:$0xff] }
 0xb86   :  { %v1710_v27 = vpop.xlane.xlu1 %1709  ;;  %v2176_v24 = vpop.xlane.xlu0 %2175 }
 0xb87   :  { %2937 = vrcp.f32 %v1710_v27  ;;  %v2182_v50 = vsub.f32 %v3935_v63, %v2176_v24  ;;  %v1528_v27 = vld [vmem:[#allocation10 + $0xd0] sm:$0xff] }
 0xb89   :  { %v3979_v19 = vpop.eup %2933  ;;  %v2188_v15 = vmul.f32 1.442695, %v2182_v50 }
 0xb8a   :  { %v3981_v28 = vpop.eup %2935  ;;  %v2195_v40 = vsel %vm434_vm8, %v3979_v19, 0.0 }
 0xb8b   :  { %2939 = vpow2.f32 %v2188_v15  ;;  %2196 = vadd.xlane.f32.xlu2 %v2195_v40  ;;  %v2037_v55 = vsel %vm434_vm8, %v3981_v28, 0.0  ;;  %v1526_v40 = vld [vmem:[#allocation10 + $0xc0] sm:$0xff] }
 0xb8c   :  { %2038 = vadd.xlane.f32.xlu1 %v2037_v55  ;;  %v1525_v55 = vld [vmem:[#allocation10 + $0xb8] sm:$0xff] }
 0xb8d   :  { %v2938_v52 = vpop.eup %2937 }
 0xb8e   :  { %v1724_v35 = vmul.f32 %v2938_v52, %v3933_v9  ;;  %v2179_v47 = vpop.xlane.xlu2 %2178  ;;  %v1716_v54 = vpop.xlane.xlu1 %1715  ;;  %v1524_v52 = vld [vmem:[#allocation10 + $0xb0] sm:$0xff] }
 0xb8f   :  { %v2183_v63 = vsub.f32 %v3946_v0, %v2179_v47  ;;  %2941 = vrcp.f32 %v1716_v54  ;;  %v1713_v56 = vpop.xlane.xlu0 %1712  ;;  %v1522_v47 = vld [vmem:[#allocation10 + $0xa0] sm:$0xff]  ;;  %v1521_v54 = vld [vmem:[#allocation10 + $0x98] sm:$0xff] }
 0xb90   :  { %2943 = vrcp.f32 %v1713_v56  ;;  %2768 = vmatmul.msk.f32.vlgmr.msra.gmra.mxu2 %vm434_vm8, %v1724_v35  ;;  %v1523_v35 = vld [vmem:[#allocation10 + $0xa8] sm:$0xff] }
 0xb91   :  { %v3992_v26 = vpop.eup %2939  ;;  %v2190_v7 = vmul.f32 1.442695, %v2183_v63  ;;  %2236 = vmatpush.msra.mxu2 %v2213_v61  ;;  %v1520_v63 = vld [vmem:[#allocation10 + $0x90] sm:$0xff]  ;;  %v1519_v61 = vld [vmem:[#allocation10 + $0x88] sm:$0xff] }
 0xb92   :  { %v2198_v9 = vsel %vm434_vm8, %v3992_v26, 0.0 }
 0xb93   :  { %2945 = vpow2.f32 %v2190_v7  ;;  %2237 = vmatpush.msra.mxu2 %v2212_v5  ;;  %2199 = vadd.xlane.f32.xlu0 %v2198_v9 }
 0xb95   :  { %v2942_v0 = vpop.eup %2941 }
 0xb96   :  { %v2944_v1 = vpop.eup %2943  ;;  %v1726_v4 = vmul.f32 %v2942_v0, %v3942_v16 }
 0xb97   :  { %v1719_v33 = vpop.xlane.xlu0 %1718  ;;  %v1725_v25 = vmul.f32 %v2944_v1, %v3944_v62 }
 0xb98   :  { %2947 = vrcp.f32 %v1719_v33  ;;  %2770 = vmatmul.msk.f32.vlgmr.msra.gmra.mxu3 %vm434_vm8, %v1726_v4 }
 0xb99   :  { %v2946_v2 = vpop.eup %2945  ;;  %2769 = vmatmul.msk.f32.gmra.mxu2 %vm434_vm8, %v1725_v25  ;;  %2265 = vmatpush.msra.mxu3 %v2215_v29 }
 0xb9a   :  { %v2201_v3 = vsel %vm434_vm8, %v2946_v2, 0.0 }
 0xb9b   :  { %2266 = vmatpush.msra.mxu3 %v2214_v58  ;;  %2202 = vadd.xlane.f32.xlu1 %v2201_v3 }
 0xb9e   :  { %v2948_v16 = vpop.eup %2947 }
 0xb9f   :  { %v1727_v62 = vmul.f32 %v2948_v16, %v3954_v43 }
 0xba1   :  { %2771 = vmatmul.msk.f32.gmra.mxu3 %vm434_vm8, %v1727_v62 }
 0xbe5   :  { %v2030_v38 = vpop.xlane.xlu2 %2029 }
 0xbe6   :  { %2949 = vrcp.f32 %v2030_v38 }
 0xbec   :  { %v2950_v8 = vpop.eup %2949 }
 0xbed   :  { %v2044_v37 = vmul.f32 %v2950_v8, %v3958_v42  ;;  %v2033_v59 = vpop.xlane.xlu1 %2032 }
 0xbee   :  { %2951 = vrcp.f32 %v2033_v59 }
 0xbef   :  { %2772 = vmatmul.msk.f32.vlgmr.msrb.gmra.mxu2 %vm434_vm8, %v2044_v37 }
 0xbf4   :  { %v2952_v46 = vpop.eup %2951 }
 0xbf5   :  { %v2045_v34 = vmul.f32 %v2952_v46, %v3964_v41 }
 0xbf6   :  { %v2036_v21 = vpop.xlane.xlu2 %2035 }
 0xbf7   :  { %2953 = vrcp.f32 %v2036_v21  ;;  %v2194_v48 = vpop.xlane.xlu0 %2193  ;;  %2773 = vmatmul.msk.f32.gmra.mxu2 %vm434_vm8, %v2045_v34 }
 0xbf8   :  { %2955 = vrcp.f32 %v2194_v48 }
 0xbfd   :  { %v2954_v43 = vpop.eup %2953 }
 0xbfe   :  { %v2956_v6 = vpop.eup %2955  ;;  %v2046_v17 = vmul.f32 %v2954_v43, %v3970_v39  ;;  %v2197_v22 = vpop.xlane.xlu2 %2196 }
 0xbff   :  { %v2208_v42 = vmul.f32 %v2956_v6, %v3972_v23  ;;  %2957 = vrcp.f32 %v2197_v22  ;;  %v2039_v32 = vpop.xlane.xlu1 %2038  ;;  %v1530_v23 = vld [vmem:[#allocation10 + $0xe0] sm:$0xff] }
 0xc00   :  { %2959 = vrcp.f32 %v2039_v32  ;;  %2774 = vmatmul.msk.f32.vlgmr.msrb.gmra.mxu3 %vm434_vm8, %v2046_v17  ;;  %2284 = vmatpush.msrb.mxu0 %v1530_v23 }
 0xc01   :  { %2776 = vmatmul.msk.f32.vlgmr.msra.gmra.mxu2 %vm434_vm8, %v2208_v42 }
 0xc02   :  { %2285 = vmatpush.msrb.mxu0 %v1529_v30 }
 0xc04   :  { %2286 = vmatpush.msrb.mxu0 %v1528_v27 }
 0xc05   :  { %v2958_v41 = vpop.eup %2957 }
 0xc06   :  { %v2960_v51 = vpop.eup %2959  ;;  %v2200_v10 = vpop.xlane.xlu0 %2199  ;;  %v2209_v20 = vmul.f32 %v2958_v41, %v3979_v19 }
 0xc07   :  { %2961 = vrcp.f32 %v2200_v10  ;;  %v2047_v39 = vmul.f32 %v2960_v51, %v3981_v28  ;;  %v1527_v28 = vld [vmem:[#allocation10 + $0xc8] sm:$0xff]  ;;  %v2443_v10 = vld [vmem:[#allocation14 + $0x1f0] sm:$0xff] }
 0xc08   :  { %2287 = vmatpush.msrb.mxu0 %v1527_v28  ;;  %2452 = vmatpush.msrb.mxu1 %v2443_v10  ;;  %v4060_v10 = vld [vmem:[#allocation11 + $0x1] ss:$0 sm:$0xff] }
 0xc09   :  { %2775 = vmatmul.msk.f32.gmra.mxu3 %vm434_vm8, %v2047_v39  ;;  %2777 = vmatmul.msk.f32.gmra.mxu2 %vm434_vm8, %v2209_v20  ;;  %v2444_v20 = vld [vmem:[#allocation14 + $0x1f8] sm:$0xff]  ;;  %v2441_v39 = vld [vmem:[#allocation14 + $0x1e0] sm:$0xff] }
 0xc0a   :  { %2288 = vmatpush.msrb.mxu0 %v1526_v40  ;;  %2481 = vmatpush.msrb.mxu2 %v2444_v20 }
 0xc0b   :  { %2453 = vmatpush.msrb.mxu1 %v2441_v39 }
 0xc0c   :  { %2289 = vmatpush.msrb.mxu0 %v1525_v55  ;;  %2482 = vmatpush.msrb.mxu2 %v2442_v49  ;;  %v2533_v49 = vld [vmem:[#allocation16 + $0x170] sm:$0xff] }
 0xc0d   :  { %v2962_v14 = vpop.eup %2961 }
 0xc0e   :  { %v2210_v24 = vmul.f32 %v2962_v14, %v3992_v26  ;;  %v2203_v50 = vpop.xlane.xlu1 %2202  ;;  %2290 = vmatpush.msrb.mxu0 %v1524_v52  ;;  %v1518_v26 = vld [vmem:[#allocation10 + $0x80] sm:$0xff] }
 0xc0f   :  { %2963 = vrcp.f32 %v2203_v50 }
 0xc10   :  { %2291 = vmatpush.msrb.mxu0 %v1523_v35  ;;  %v2439_v35 = vld [vmem:[#allocation14 + $0x1d0] sm:$0xff] }
 0xc11   :  { %2778 = vmatmul.msk.f32.vlgmr.msra.gmra.mxu3 %vm434_vm8, %v2210_v24  ;;  %2454 = vmatpush.msrb.mxu1 %v2439_v35 }
 0xc12   :  { %2292 = vmatpush.msrb.mxu0 %v1522_v47  ;;  %v2440_v47 = vld [vmem:[#allocation14 + $0x1d8] sm:$0xff] }
 0xc13   :  { %v1915_v56 = vpop.f32.mrf.mxu2  ;;  %2483 = vmatpush.msrb.mxu2 %v2440_v47  ;;  %v2531_v47 = vld [vmem:[#allocation16 + $0x160] sm:$0xff] }
 0xc14   :  { %2293 = vmatpush.msrb.mxu0 %v1521_v54  ;;  %v1916_v4 = vadd.f32 %v1915_v56, %v3904_v31  ;;  %v2437_v54 = vld [vmem:[#allocation14 + $0x1c0] sm:$0xff]  ;;  %v2435_v56 = vld [vmem:[#allocation14 + $0x1b0] sm:$0xff] }
 0xc15   :  { %v2964_v19 = vpop.eup %2963  ;;  %2455 = vmatpush.msrb.mxu1 %v2437_v54 }
 0xc16   :  { %v2211_v15 = vmul.f32 %v2964_v19, %v2946_v2  ;;  %2294 = vmatpush.msrb.mxu0 %v1520_v63  ;;  %v2438_v63 = vld [vmem:[#allocation14 + $0x1c8] sm:$0xff] }
 0xc17   :  { %2484 = vmatpush.msrb.mxu2 %v2438_v63  ;;  %2456 = vmatpush.msrb.mxu1 %v2435_v56 }
 0xc18   :  { %2295 = vmatpush.msrb.mxu0 %v1519_v61  ;;  %v2436_v61 = vld [vmem:[#allocation14 + $0x1b8] sm:$0xff] }
 0xc19   :  { %2779 = vmatmul.msk.f32.gmra.mxu3 %vm434_vm8, %v2211_v15  ;;  %2485 = vmatpush.msrb.mxu2 %v2436_v61  ;;  %v2530_v61 = vld [vmem:[#allocation16 + $0x158] sm:$0xff] }
 0xc1a   :  { %2296 = vmatpush.msrb.mxu0 %v1518_v26  ;;  %v2433_v26 = vld [vmem:[#allocation14 + $0x1a0] sm:$0xff] }
 0xc1b   :  { %v1944_v5 = vpop.f32.mrf.mxu3  ;;  %2457 = vmatpush.msrb.mxu1 %v2433_v26  ;;  %v2547_v26 = vld [vmem:[#allocation16 + $0x1e0] sm:$0xff] }
 0xc1c   :  { %v1918_v7 = vpop.f32.mrf.mxu2  ;;  %v1945_v8 = vadd.f32 %v1944_v5, %v3908_v60  ;;  %v2431_v5 = vld [vmem:[#allocation14 + $0x190] sm:$0xff] }
 0xc1d   :  { %v1919_v58 = vadd.f32 %v1918_v7, %v3906_v11  ;;  %v2813_v11 = vld [vmem:[%s4146_s5 + $0x1] ss:$0 sm:$0xff]  ;;  %v2434_v7 = vld [vmem:[#allocation14 + $0x1a8] sm:$0xff]  ;;  %2458 = vmatpush.msrb.mxu1 %v2431_v5 }
 0xc1e   :  { %2486 = vmatpush.msrb.mxu2 %v2434_v7 }
 0xc24   :  { %v1947_v0 = vpop.f32.mrf.mxu3 }
 0xc25   :  { %v1948_v31 = vadd.f32 %v1947_v0, %v3911_v13  ;;  %v2429_v0 = vld [vmem:[#allocation14 + $0x180] sm:$0xff] }
 0xc26   :  { %2459 = vmatpush.msrb.mxu1 %v2429_v0  ;;  %v2546_v0 = vld [vmem:[#allocation16 + $0x1d8] sm:$0xff] }
 0xc72   :  { %v2075_v9 = vpop.f32.mrf.mxu2 }
 0xc73   :  { %v2110_v33 = vadd.f32 %v2075_v9, %v1916_v4  ;;  %v2432_v9 = vld [vmem:[#allocation14 + $0x198] sm:$0xff]  ;;  %v2427_v4 = vld [vmem:[#allocation14 + $0x170] sm:$0xff] }
 0xc74   :  { %2487 = vmatpush.msrb.mxu2 %v2432_v9  ;;  %2460 = vmatpush.msrb.mxu1 %v2427_v4  ;;  %v2529_v9 = vld [vmem:[#allocation16 + $0x150] sm:$0xff] }
 0xc7a   :  { %v2078_v1 = vpop.f32.mrf.mxu2 }
 0xc7b   :  { %v2111_v3 = vadd.f32 %v2078_v1, %v1919_v58  ;;  %v2430_v1 = vld [vmem:[#allocation14 + $0x188] sm:$0xff]  ;;  %v2424_v58 = vld [vmem:[#allocation14 + $0x158] sm:$0xff] }
 0xc7c   :  { %2488 = vmatpush.msrb.mxu2 %v2430_v1 }
 0xc83   :  { %v2104_v25 = vpop.f32.mrf.mxu3 }
 0xc84   :  { %v2239_v29 = vpop.f32.mrf.mxu2  ;;  %v2112_v37 = vadd.f32 %v2104_v25, %v1945_v8  ;;  %v2425_v25 = vld [vmem:[#allocation14 + $0x160] sm:$0xff] }
 0xc85   :  { %v2274_v2 = vadd.f32 %v2239_v29, %v2110_v33  ;;  %v2428_v33 = vld [vmem:[#allocation14 + $0x178] sm:$0xff]  ;;  %v2426_v29 = vld [vmem:[#allocation14 + $0x168] sm:$0xff]  ;;  %2461 = vmatpush.msrb.mxu1 %v2425_v25  ;;  %v2417_v8 = vld [vmem:[#allocation14 + $0x120] sm:$0xff] }
 0xc86   :  { %2489 = vmatpush.msrb.mxu2 %v2428_v33  ;;  %v2528_v25 = vld [vmem:[#allocation16 + $0x148] sm:$0xff] }
 0xc87   :  { %2297 = vmatmul.f32.vlgmr.msrb.gmra.mxu0 %v2274_v2  ;;  %v2423_v2 = vld [vmem:[#allocation14 + $0x150] sm:$0xff] }
 0xc88   :  { %2490 = vmatpush.msrb.mxu2 %v2426_v29  ;;  %2462 = vmatpush.msrb.mxu1 %v2423_v2  ;;  %v2545_v29 = vld [vmem:[#allocation16 + $0x1d0] sm:$0xff] }
 0xc8a   :  { %2491 = vmatpush.msrb.mxu2 %v2424_v58 }
 0xc8c   :  { %v2107_v16 = vpop.f32.mrf.mxu3  ;;  %v2242_v62 = vpop.f32.mrf.mxu2 }
 0xc8d   :  { %v2275_v38 = vadd.f32 %v2242_v62, %v2111_v3  ;;  %v2113_v21 = vadd.f32 %v2107_v16, %v1948_v31  ;;  %v2421_v3 = vld [vmem:[#allocation14 + $0x140] sm:$0xff]  ;;  %v2422_v16 = vld [vmem:[#allocation14 + $0x148] sm:$0xff]  ;;  %v2419_v62 = vld [vmem:[#allocation14 + $0x130] sm:$0xff] }
 0xc8e   :  { %2463 = vmatpush.msrb.mxu1 %v2421_v3  ;;  %2492 = vmatpush.msrb.mxu2 %v2422_v16  ;;  %v2413_v31 = vld [vmem:[#allocation14 + $0x100] sm:$0xff]  ;;  %v2544_v16 = vld [vmem:[#allocation16 + $0x1c8] sm:$0xff] }
 0xc8f   :  { %2300 = vmatmul.f32.gmra.mxu0 %v2275_v38  ;;  %v2420_v38 = vld [vmem:[#allocation14 + $0x138] sm:$0xff]  ;;  %v2527_v3 = vld [vmem:[#allocation16 + $0x140] sm:$0xff] }
 0xc90   :  { %2464 = vmatpush.msrb.mxu1 %v2419_v62  ;;  %2493 = vmatpush.msrb.mxu2 %v2420_v38 }
 0xc92   :  { %2465 = vmatpush.msrb.mxu1 %v2417_v8 }
 0xc94   :  { %v2268_v59 = vpop.f32.mrf.mxu3 }
 0xc95   :  { %v2276_v46 = vadd.f32 %v2268_v59, %v2112_v37  ;;  %v2418_v37 = vld [vmem:[#allocation14 + $0x128] sm:$0xff]  ;;  %v2415_v59 = vld [vmem:[#allocation14 + $0x110] sm:$0xff] }
 0xc96   :  { %2494 = vmatpush.msrb.mxu2 %v2418_v37  ;;  %2466 = vmatpush.msrb.mxu1 %v2415_v59  ;;  %v2526_v37 = vld [vmem:[#allocation16 + $0x138] sm:$0xff]  ;;  %v2543_v59 = vld [vmem:[#allocation16 + $0x1c0] sm:$0xff] }
 0xc97   :  { %2303 = vmatmul.f32.gmra.mxu0 %v2276_v46  ;;  %v2416_v46 = vld [vmem:[#allocation14 + $0x118] sm:$0xff] }
 0xc98   :  { %2495 = vmatpush.msrb.mxu2 %v2416_v46  ;;  %2467 = vmatpush.msrb.mxu1 %v2413_v31  ;;  %v2525_v31 = vld [vmem:[#allocation16 + $0x130] sm:$0xff] }
 0xc9c   :  { %v2271_v34 = vpop.f32.mrf.mxu3 }
 0xc9d   :  { %v2277_v48 = vadd.f32 %v2271_v34, %v2113_v21  ;;  %v2414_v21 = vld [vmem:[#allocation14 + $0x108] sm:$0xff] }
 0xc9e   :  { %2496 = vmatpush.msrb.mxu2 %v2414_v21  ;;  %v2542_v21 = vld [vmem:[#allocation16 + $0x1b8] sm:$0xff] }
 0xc9f   :  { %2306 = vmatmul.f32.gmra.mxu0 %v2277_v48 }
 0xd04   :  { %v2298_v43 = vpop.f32.mrf.mxu0 }
 0xd05   :  { %v2299_v6 = vadd.f32 %v2813_v11, %v2298_v43 }
 0xd07   :  { %v2310_v17 = vadd.f32 %v2299_v6, %v3751_v44 }
 0xd09   :  { %2318 = vadd.xlane.f32.xlu2 %v2310_v17 }
 0xd0c   :  { %v2301_v60 = vpop.f32.mrf.mxu0 }
 0xd0d   :  { %v2302_v22 = vadd.f32 %v2813_v11, %v2301_v60 }
 0xd0f   :  { %v2311_v42 = vadd.f32 %v2302_v22, %v3757_v45 }
 0xd11   :  { %2320 = vadd.xlane.f32.xlu0 %v2311_v42 }
 0xd14   :  { %v2304_v32 = vpop.f32.mrf.mxu0 }
 0xd15   :  { %v2305_v13 = vadd.f32 %v2813_v11, %v2304_v32 }
 0xd17   :  { %v2312_v41 = vadd.f32 %v2305_v13, %v3763_v57 }
 0xd19   :  { %2322 = vadd.xlane.f32.xlu1 %v2312_v41 }
 0xd1c   :  { %v2307_v36 = vpop.f32.mrf.mxu0 }
 0xd1d   :  { %v2308_v18 = vadd.f32 %v2813_v11, %v2307_v36 }
 0xd1f   :  { %v2313_v51 = vadd.f32 %v2308_v18, %v3769_v12 }
 0xd21   :  { %2324 = vadd.xlane.f32.xlu2 %v2313_v51 }
 0xd7c   :  { %v2319_v44 = vpop.xlane.xlu2 %2318 }
 0xd7d   :  { %v2326_v45 = vmul.f32 %v2319_v44, %v3642_v53  ;;  %v2534_v44 = vld [vmem:[#allocation16 + $0x178] sm:$0xff] }
 0xd7e   :  { %2556 = vmatpush.msrb.mxu3 %v2534_v44  ;;  %v2520_v44 = vld [vmem:[#allocation16 + $0x108] sm:$0xff] }
 0xd7f   :  { %v4036_v23 = vsub.f32 %v2310_v17, %v2326_v45 }
 0xd80   :  { %2557 = vmatpush.msrb.mxu3 %v2533_v49  ;;  %v2539_v49 = vld [vmem:[#allocation16 + $0x1a0] sm:$0xff] }
 0xd81   :  { %v2334_v57 = vmul.f32 %v4036_v23, %v4036_v23 }
 0xd83   :  { %2338 = vadd.xlane.f32.xlu0 %v2334_v57 }
 0xd84   :  { %v2321_v30 = vpop.xlane.xlu0 %2320 }
 0xd85   :  { %v2327_v12 = vmul.f32 %v2321_v30, %v3642_v53  ;;  %v2550_v30 = vld [vmem:[#allocation16 + $0x1f8] sm:$0xff] }
 0xd86   :  { %2585 = vmatpush.msra.mxu0 %v2550_v30  ;;  %v2535_v30 = vld [vmem:[#allocation16 + $0x180] sm:$0xff] }
 0xd87   :  { %v4041_v14 = vsub.f32 %v2311_v42, %v2327_v12 }
 0xd89   :  { %v2335_v27 = vmul.f32 %v4041_v14, %v4041_v14 }
 0xd8b   :  { %2340 = vadd.xlane.f32.xlu1 %v2335_v27  ;;  %v4064_v27 = vld [vmem:[#allocation13 + $0x1] ss:$0 sm:$0xff] }
 0xd8c   :  { %v2323_v24 = vpop.xlane.xlu1 %2322 }
 0xd8d   :  { %v2328_v50 = vmul.f32 %v2323_v24, %v3642_v53  ;;  %v2532_v24 = vld [vmem:[#allocation16 + $0x168] sm:$0xff] }
 0xd8e   :  { %2558 = vmatpush.msrb.mxu3 %v2532_v24 }
 0xd8f   :  { %v4046_v19 = vsub.f32 %v2312_v41, %v2328_v50  ;;  %v2549_v50 = vld [vmem:[#allocation16 + $0x1f0] sm:$0xff] }
 0xd90   :  { %2586 = vmatpush.msra.mxu0 %v2549_v50  ;;  %2559 = vmatpush.msrb.mxu3 %v2531_v47 }
 0xd91   :  { %v2336_v15 = vmul.f32 %v4046_v19, %v4046_v19 }
 0xd92   :  { %2560 = vmatpush.msrb.mxu3 %v2530_v61 }
 0xd93   :  { %2342 = vadd.xlane.f32.xlu2 %v2336_v15 }
 0xd94   :  { %v2325_v28 = vpop.xlane.xlu2 %2324  ;;  %2561 = vmatpush.msrb.mxu3 %v2529_v9 }
 0xd95   :  { %v2329_v40 = vmul.f32 %v2325_v28, %v3642_v53 }
 0xd96   :  { %2562 = vmatpush.msrb.mxu3 %v2528_v25 }
 0xd97   :  { %v4051_v55 = vsub.f32 %v2313_v51, %v2329_v40  ;;  %v2548_v40 = vld [vmem:[#allocation16 + $0x1e8] sm:$0xff] }
 0xd98   :  { %2587 = vmatpush.msra.mxu0 %v2548_v40  ;;  %2563 = vmatpush.msrb.mxu3 %v2527_v3 }
 0xd99   :  { %v2337_v52 = vmul.f32 %v4051_v55, %v4051_v55 }
 0xd9a   :  { %2588 = vmatpush.msra.mxu0 %v2547_v26  ;;  %2564 = vmatpush.msrb.mxu3 %v2526_v37 }
 0xd9b   :  { %2344 = vadd.xlane.f32.xlu0 %v2337_v52 }
 0xd9c   :  { %2589 = vmatpush.msra.mxu0 %v2546_v0  ;;  %2565 = vmatpush.msrb.mxu3 %v2525_v31 }
 0xd9e   :  { %2590 = vmatpush.msra.mxu0 %v2545_v29 }
 0xda0   :  { %2591 = vmatpush.msra.mxu0 %v2544_v16  ;;  %v2816_v16 = vld [vmem:[%s4152_s11 + $0x1] ss:$0 sm:$0xff] }
 0xda2   :  { %2592 = vmatpush.msra.mxu0 %v2543_v59 }
 0xda4   :  { %2593 = vmatpush.msra.mxu0 %v2542_v21 }
 0xdf6   :  { %v2339_v34 = vpop.xlane.xlu0 %2338 }
 0xdf7   :  { %v2346_v48 = vmul.f32 %v2339_v34, %v3642_v53 }
 0xdf9   :  { %v2350_v11 = vadd.f32 1e-05, %v2346_v48 }
 0xdfb   :  { %2965 = vrsqrt.f32 %v2350_v11  ;;  %vm2360_vm3 = vweird.f32 %v2350_v11 }
 0xdfe   :  { %v2341_v43 = vpop.xlane.xlu1 %2340 }
 0xdff   :  { %v2347_v6 = vmul.f32 %v2341_v43, %v3642_v53  ;;  %v2524_v43 = vld [vmem:[#allocation16 + $0x128] sm:$0xff] }
 0xe00   :  { %2566 = vmatpush.msrb.mxu3 %v2524_v43 }
 0xe01   :  { %v2966_v17 = vpop.eup %2965  ;;  %v2351_v60 = vadd.f32 1e-05, %v2347_v6  ;;  %v2541_v6 = vld [vmem:[#allocation16 + $0x1b0] sm:$0xff] }
 0xe02   :  { %v2355_v22 = vmul.f32 %v2966_v17, %v2350_v11  ;;  %vm2361_vm8 = vweird.f32 %v2966_v17  ;;  %2594 = vmatpush.msra.mxu0 %v2541_v6 }
 0xe03   :  { %2967 = vrsqrt.f32 %v2351_v60  ;;  %vm2362_vm4 = vmor %vm2360_vm3, %vm2361_vm8  ;;  %vm2370_vm6 = vweird.f32 %v2351_v60 }
 0xe04   :  { %v2356_v42 = vmul.f32 %v2966_v17, %v2355_v22  ;;  %v2523_v22 = vld [vmem:[#allocation16 + $0x120] sm:$0xff] }
 0xe05   :  { %2567 = vmatpush.msrb.mxu3 %v2523_v22 }
 0xe06   :  { %v2357_v32 = vmul.f32 0.5, %v2356_v42  ;;  %v2343_v13 = vpop.xlane.xlu2 %2342 }
 0xe07   :  { %v2348_v41 = vmul.f32 %v2343_v13, %v3642_v53  ;;  %v2522_v13 = vld [vmem:[#allocation16 + $0x118] sm:$0xff] }
 0xe08   :  { %v2358_v36 = vsub.f32 1.5, %v2357_v32  ;;  %2568 = vmatpush.msrb.mxu3 %v2522_v13 }
 0xe09   :  { %v2968_v18 = vpop.eup %2967  ;;  %v4058_v51 = vadd.f32 1e-05, %v2348_v41 }
 0xe0a   :  { %v2359_v20 = vmul.f32 %v2966_v17, %v2358_v36  ;;  %v2365_v39 = vmul.f32 %v2968_v18, %v2351_v60  ;;  %vm2371_vm5 = vweird.f32 %v2968_v18 }
 0xe0b   :  { %2969 = vrsqrt.f32 %v4058_v51  ;;  %vm2372_vm7 = vmor %vm2370_vm6, %vm2371_vm5  ;;  %vm2380_vm10 = vweird.f32 %v4058_v51 }
 0xe0c   :  { %v2363_v45 = vsel %vm2362_vm4, %v2966_v17, %v2359_v20  ;;  %v2366_v57 = vmul.f32 %v2968_v18, %v2365_v39  ;;  %v2521_v20 = vld [vmem:[#allocation16 + $0x110] sm:$0xff]  ;;  %v2540_v39 = vld [vmem:[#allocation16 + $0x1a8] sm:$0xff] }
 0xe0d   :  { %v2394_v12 = vmul.f32 %v2363_v45, %v4036_v23  ;;  %2569 = vmatpush.msrb.mxu3 %v2521_v20  ;;  %2595 = vmatpush.msra.mxu0 %v2540_v39  ;;  %v2519_v45 = vld [vmem:[#allocation16 + $0x100] sm:$0xff] }
 0xe0e   :  { %v2367_v15 = vmul.f32 0.5, %v2366_v57  ;;  %v2345_v28 = vpop.xlane.xlu0 %2344  ;;  %v2538_v57 = vld [vmem:[#allocation16 + $0x198] sm:$0xff] }
 0xe0f   :  { %v2401_v52 = vmul.f32 %v4060_v10, %v2394_v12  ;;  %v2349_v35 = vmul.f32 %v2345_v28, %v3642_v53  ;;  %2570 = vmatpush.msrb.mxu3 %v2520_v44  ;;  %2596 = vmatpush.msra.mxu0 %v2539_v49  ;;  %v2780_v12 = vld [vmem:[%s4150_s9 + $0x2] sm:$0x3] }
 0xe10   :  { %v2368_v54 = vsub.f32 1.5, %v2367_v15  ;;  %v2449_v28 = vperm.slane %v2780_v12, 1 }
 0xe11   :  { %v2970_v63 = vpop.eup %2969  ;;  %v4068_v23 = vadd.f32 1e-05, %v2349_v35  ;;  %v4071_v56 = vadd.f32 %v4064_v27, %v2401_v52  ;;  %2571 = vmatpush.msrb.mxu3 %v2519_v45  ;;  %2597 = vmatpush.msra.mxu0 %v2538_v57 }
 0xe12   :  { %v2369_v7 = vmul.f32 %v2968_v18, %v2368_v54  ;;  %v2375_v5 = vmul.f32 %v2970_v63, %v4058_v51  ;;  %vm2381_vm9 = vweird.f32 %v2970_v63 }
 0xe13   :  { %2971 = vrsqrt.f32 %v4068_v23  ;;  %2468 = vmatmul.f32.vlgmr.msrb.gmra.mxu1 %v4071_v56  ;;  %2497 = vmatmul.f32.vlgmr.msrb.gmra.mxu2 %v4071_v56  ;;  %vm2382_vm11 = vmor %vm2380_vm10, %vm2381_vm9  ;;  %vm2390_vm13 = vweird.f32 %v4068_v23 }
 0xe14   :  { %v2373_v1 = vsel %vm2372_vm7, %v2968_v18, %v2369_v7  ;;  %v2376_v4 = vmul.f32 %v2970_v63, %v2375_v5 }
 0xe15   :  { %v2395_v33 = vmul.f32 %v2373_v1, %v4041_v14 }
 0xe16   :  { %v2377_v2 = vmul.f32 0.5, %v2376_v4 }
 0xe17   :  { %v2402_v58 = vmul.f32 %v4060_v10, %v2395_v33 }
 0xe18   :  { %v2378_v62 = vsub.f32 1.5, %v2377_v2 }
 0xe19   :  { %v2972_v38 = vpop.eup %2971  ;;  %v4080_v8 = vadd.f32 %v4064_v27, %v2402_v58 }
 0xe1a   :  { %v2379_v14 = vmul.f32 %v2970_v63, %v2378_v62  ;;  %v2385_v46 = vmul.f32 %v2972_v38, %v4068_v23  ;;  %vm2391_vm12 = vweird.f32 %v2972_v38 }
 0xe1b   :  { %2471 = vmatmul.f32.gmra.mxu1 %v4080_v8  ;;  %2500 = vmatmul.f32.gmra.mxu2 %v4080_v8  ;;  %vm2392_vm14 = vmor %vm2390_vm13, %vm2391_vm12 }
 0xe1c   :  { %v2383_v34 = vsel %vm2382_vm11, %v2970_v63, %v2379_v14  ;;  %v2386_v48 = vmul.f32 %v2972_v38, %v2385_v46 }
 0xe1d   :  { %v2396_v11 = vmul.f32 %v2383_v34, %v4046_v19 }
 0xe1e   :  { %v2387_v17 = vmul.f32 0.5, %v2386_v48 }
 0xe1f   :  { %v2403_v60 = vmul.f32 %v4060_v10, %v2396_v11 }
 0xe20   :  { %v2388_v42 = vsub.f32 1.5, %v2387_v17 }
 0xe21   :  { %v4089_v32 = vadd.f32 %v4064_v27, %v2403_v60 }
 0xe22   :  { %v2389_v41 = vmul.f32 %v2972_v38, %v2388_v42 }
 0xe23   :  { %2474 = vmatmul.f32.gmra.mxu1 %v4089_v32  ;;  %2503 = vmatmul.f32.gmra.mxu2 %v4089_v32 }
 0xe24   :  { %v2393_v19 = vsel %vm2392_vm14, %v2972_v38, %v2389_v41 }
 0xe25   :  { %v2397_v36 = vmul.f32 %v2393_v19, %v4051_v55  ;;  %v2537_v55 = vld [vmem:[#allocation16 + $0x190] sm:$0xff] }
 0xe26   :  { %2598 = vmatpush.msra.mxu0 %v2537_v55 }
 0xe27   :  { %v2404_v18 = vmul.f32 %v4060_v10, %v2397_v36  ;;  %v2536_v10 = vld [vmem:[#allocation16 + $0x188] sm:$0xff] }
 0xe28   :  { %2599 = vmatpush.msra.mxu0 %v2536_v10 }
 0xe29   :  { %v4097_v51 = vadd.f32 %v4064_v27, %v2404_v18  ;;  %v2448_v27 = vperm.slane %v2780_v12, 0 }
 0xe2a   :  { %2600 = vmatpush.msra.mxu0 %v2535_v30 }
 0xe2b   :  { %2477 = vmatmul.f32.gmra.mxu1 %v4097_v51  ;;  %2506 = vmatmul.f32.gmra.mxu2 %v4097_v51 }
 0xe90   :  { %v2469_v24 = vpop.f32.mrf.mxu1 }
 0xe91   :  { %v2470_v50 = vadd.f32 %v2469_v24, %v2448_v27 }
 0xe93   :  { %v2510_v15 = vmax.f32 %v2470_v50, 0.0 }
 0xe95   :  { %2572 = vmatmul.f32.vlgmr.msrb.gmra.mxu3 %v2510_v15 }
 0xe96   :  { %v2498_v40 = vpop.f32.mrf.mxu2 }
 0xe97   :  { %v2499_v52 = vadd.f32 %v2498_v40, %v2449_v28 }
 0xe98   :  { %v2472_v35 = vpop.f32.mrf.mxu1 }
 0xe99   :  { %v2511_v47 = vmax.f32 %v2499_v52, 0.0  ;;  %v2473_v54 = vadd.f32 %v2472_v35, %v2448_v27 }
 0xe9b   :  { %v2512_v63 = vmax.f32 %v2473_v54, 0.0  ;;  %2601 = vmatmul.f32.vlgmr.msra.gmra.mxu0 %v2511_v47 }
 0xe9d   :  { %2575 = vmatmul.f32.gmra.mxu3 %v2512_v63 }
 0xe9e   :  { %v2501_v23 = vpop.f32.mrf.mxu2 }
 0xe9f   :  { %v2502_v61 = vadd.f32 %v2501_v23, %v2449_v28 }
 0xea0   :  { %v2475_v26 = vpop.f32.mrf.mxu1 }
 0xea1   :  { %v2513_v7 = vmax.f32 %v2502_v61, 0.0  ;;  %v2476_v5 = vadd.f32 %v2475_v26, %v2448_v27 }
 0xea3   :  { %v2514_v9 = vmax.f32 %v2476_v5, 0.0  ;;  %2604 = vmatmul.f32.gmra.mxu0 %v2513_v7 }
 0xea5   :  { %2578 = vmatmul.f32.gmra.mxu3 %v2514_v9 }
 0xea6   :  { %v2504_v0 = vpop.f32.mrf.mxu2 }
 0xea7   :  { %v2505_v1 = vadd.f32 %v2504_v0, %v2449_v28  ;;  %v2817_v0 = vld [vmem:[%s4153_s12 + $0x1] ss:$0 sm:$0xff]  ;;  %s3253_s12 = smov [#allocation17]  }
 0xea8   :  { %v2478_v4 = vpop.f32.mrf.mxu1 }
 0xea9   :  { %v2515_v33 = vmax.f32 %v2505_v1, 0.0  ;;  %v2479_v25 = vadd.f32 %v2478_v4, %v2448_v27 }
 0xeab   :  { %v2516_v29 = vmax.f32 %v2479_v25, 0.0  ;;  %2607 = vmatmul.f32.gmra.mxu0 %v2515_v33  ;;  %v2818_v25 = vld [vmem:[%s4154_s13 + $0x1] ss:$0 sm:$0xff]  ;;  %s2724_s13 = sshll.u32 %s3253_s12, 4  ;;  %s2725_s13 = int_to_ptr.vmem [resolvable:$true] %s2724_s13 }
 0xead   :  { %2581 = vmatmul.f32.gmra.mxu3 %v2516_v29 }
 0xeae   :  { %v2507_v2 = vpop.f32.mrf.mxu2 }
 0xeaf   :  { %v2508_v58 = vadd.f32 %v2507_v2, %v2449_v28 }
 0xeb1   :  { %v2517_v3 = vmax.f32 %v2508_v58, 0.0 }
 0xeb3   :  { %2610 = vmatmul.f32.gmra.mxu0 %v2517_v3 }
 0xf18   :  { %v2573_v62 = vpop.f32.mrf.mxu3  ;;  %v2602_v38 = vpop.f32.mrf.mxu0 }
 0xf19   :  { %v2574_v37 = vadd.f32 %v2816_v16, %v2573_v62 }
 0xf1b   :  { %v2603_v59 = vadd.f32 %v2602_v38, %v2574_v37 }
 0xf1d   :  { %v2614_v14 = vadd.f32 %v2603_v59, %v4071_v56 }
 0xf1f   :  { %2622 = vadd.xlane.f32.xlu1 %v2614_v14 }
 0xf20   :  { %v2576_v46 = vpop.f32.mrf.mxu3  ;;  %v2605_v31 = vpop.f32.mrf.mxu0 }
 0xf21   :  { %v2577_v21 = vadd.f32 %v2816_v16, %v2576_v46 }
 0xf23   :  { %v2606_v34 = vadd.f32 %v2605_v31, %v2577_v21 }
 0xf25   :  { %v2615_v48 = vadd.f32 %v2606_v34, %v4080_v8 }
 0xf27   :  { %2624 = vadd.xlane.f32.xlu2 %v2615_v48 }
 0xf28   :  { %v2579_v11 = vpop.f32.mrf.mxu3  ;;  %v2608_v43 = vpop.f32.mrf.mxu0 }
 0xf29   :  { %v2580_v6 = vadd.f32 %v2816_v16, %v2579_v11 }
 0xf2b   :  { %v2609_v17 = vadd.f32 %v2608_v43, %v2580_v6 }
 0xf2d   :  { %v2616_v60 = vadd.f32 %v2609_v17, %v4089_v32 }
 0xf2f   :  { %2626 = vadd.xlane.f32.xlu0 %v2616_v60 }
 0xf30   :  { %v2582_v22 = vpop.f32.mrf.mxu3  ;;  %v2611_v13 = vpop.f32.mrf.mxu0 }
 0xf31   :  { %v2583_v42 = vadd.f32 %v2816_v16, %v2582_v22 }
 0xf33   :  { %v2612_v41 = vadd.f32 %v2611_v13, %v2583_v42 }
 0xf35   :  { %v2617_v56 = vadd.f32 %v2612_v41, %v4097_v51 }
 0xf37   :  { %2628 = vadd.xlane.f32.xlu1 %v2617_v56 }
 0xf92   :  { %v2623_v19 = vpop.xlane.xlu1 %2622 }
 0xf93   :  { %v2630_v36 = vmul.f32 %v2623_v19, %v3642_v53 }
 0xf95   :  { %v2634_v18 = vsub.f32 %v2614_v14, %v2630_v36 }
 0xf97   :  { %v2638_v8 = vmul.f32 %v2634_v18, %v2634_v18 }
 0xf99   :  { %2642 = vadd.xlane.f32.xlu2 %v2638_v8 }
 0xf9a   :  { %v2625_v20 = vpop.xlane.xlu2 %2624 }
 0xf9b   :  { %v2631_v39 = vmul.f32 %v2625_v20, %v3642_v53 }
 0xf9d   :  { %v2635_v44 = vsub.f32 %v2615_v48, %v2631_v39 }
 0xf9f   :  { %v2639_v49 = vmul.f32 %v2635_v44, %v2635_v44 }
 0xfa1   :  { %2644 = vadd.xlane.f32.xlu0 %v2639_v49 }
 0xfa2   :  { %v2627_v32 = vpop.xlane.xlu0 %2626 }
 0xfa3   :  { %v2632_v45 = vmul.f32 %v2627_v32, %v3642_v53 }
 0xfa5   :  { %v4114_v57 = vsub.f32 %v2616_v60, %v2632_v45 }
 0xfa7   :  { %v2640_v51 = vmul.f32 %v4114_v57, %v4114_v57 }
 0xfa9   :  { %2646 = vadd.xlane.f32.xlu1 %v2640_v51 }
 0xfaa   :  { %v2629_v55 = vpop.xlane.xlu1 %2628 }
 0xfab   :  { %v2633_v10 = vmul.f32 %v2629_v55, %v3642_v53 }
 0xfad   :  { %v4119_v30 = vsub.f32 %v2617_v56, %v2633_v10 }
 0xfaf   :  { %v2641_v12 = vmul.f32 %v4119_v30, %v4119_v30 }
 0xfb1   :  { %2648 = vadd.xlane.f32.xlu2 %v2641_v12 }
0x100c   :  { %v2643_v27 = vpop.xlane.xlu2 %2642 }
0x100d   :  { %v2650_v24 = vmul.f32 %v2643_v27, %v3642_v53 }
0x100f   :  { %v2654_v50 = vadd.f32 1e-05, %v2650_v24 }
0x1011   :  { %2973 = vrsqrt.f32 %v2654_v50  ;;  %vm2664_vm0 = vweird.f32 %v2654_v50 }
0x1014   :  { %v2645_v15 = vpop.xlane.xlu0 %2644 }
0x1015   :  { %v2651_v28 = vmul.f32 %v2645_v15, %v3642_v53 }
0x1017   :  { %v2974_v40 = vpop.eup %2973  ;;  %v2655_v52 = vadd.f32 1e-05, %v2651_v28 }
0x1018   :  { %v2659_v35 = vmul.f32 %v2974_v40, %v2654_v50  ;;  %vm2665_vm15 = vweird.f32 %v2974_v40 }
0x1019   :  { %2975 = vrsqrt.f32 %v2655_v52  ;;  %vm2666_vm1 = vmor %vm2664_vm0, %vm2665_vm15  ;;  %vm2674_vm8 = vweird.f32 %v2655_v52 }
0x101a   :  { %v2660_v47 = vmul.f32 %v2974_v40, %v2659_v35 }
0x101c   :  { %v2661_v54 = vmul.f32 0.5, %v2660_v47  ;;  %v2647_v63 = vpop.xlane.xlu1 %2646 }
0x101d   :  { %v2652_v23 = vmul.f32 %v2647_v63, %v3642_v53 }
0x101e   :  { %v2662_v61 = vsub.f32 1.5, %v2661_v54 }
0x101f   :  { %v2976_v26 = vpop.eup %2975  ;;  %v2656_v7 = vadd.f32 1e-05, %v2652_v23 }
0x1020   :  { %v2663_v5 = vmul.f32 %v2974_v40, %v2662_v61  ;;  %v2669_v9 = vmul.f32 %v2976_v26, %v2655_v52  ;;  %vm2675_vm2 = vweird.f32 %v2976_v26 }
0x1021   :  { %2977 = vrsqrt.f32 %v2656_v7  ;;  %vm2676_vm3 = vmor %vm2674_vm8, %vm2675_vm2  ;;  %vm2684_vm5 = vweird.f32 %v2656_v7 }
0x1022   :  { %v2667_v1 = vsel %vm2666_vm1, %v2974_v40, %v2663_v5  ;;  %v2670_v4 = vmul.f32 %v2976_v26, %v2669_v9 }
0x1023   :  { %v2698_v33 = vmul.f32 %v2667_v1, %v2634_v18 }
0x1024   :  { %v2671_v29 = vmul.f32 0.5, %v2670_v4  ;;  %v2649_v2 = vpop.xlane.xlu2 %2648 }
0x1025   :  { %v2705_v58 = vmul.f32 %v2817_v0, %v2698_v33  ;;  %v2653_v3 = vmul.f32 %v2649_v2, %v3642_v53 }
0x1026   :  { %v2672_v16 = vsub.f32 1.5, %v2671_v29 }
0x1027   :  { %v2978_v62 = vpop.eup %2977  ;;  %v2657_v38 = vadd.f32 1e-05, %v2653_v3  ;;  %v2712_v37 = vadd.f32 %v2818_v25, %v2705_v58 }
0x1028   :  { %v2673_v59 = vmul.f32 %v2976_v26, %v2672_v16  ;;  %v2679_v14 = vmul.f32 %v2978_v62, %v2656_v7  ;;  %vm2685_vm4 = vweird.f32 %v2978_v62 }
0x1029   :  { %2979 = vrsqrt.f32 %v2657_v38  ;;  %2716 = vst [vmem:[#allocation17] sm:$0xff] %v2712_v37  ;;  %vm2686_vm6 = vmor %vm2684_vm5, %vm2685_vm4  ;;  %vm2694_vm9 = vweird.f32 %v2657_v38 }
0x102a   :  { %v2677_v46 = vsel %vm2676_vm3, %v2976_v26, %v2673_v59  ;;  %v2680_v31 = vmul.f32 %v2978_v62, %v2679_v14 }
0x102b   :  { %v2699_v21 = vmul.f32 %v2677_v46, %v2635_v44 }
0x102c   :  { %v2681_v34 = vmul.f32 0.5, %v2680_v31 }
0x102d   :  { %v2706_v48 = vmul.f32 %v2817_v0, %v2699_v21 }
0x102e   :  { %v2682_v11 = vsub.f32 1.5, %v2681_v34 }
0x102f   :  { %v2980_v43 = vpop.eup %2979  ;;  %v2713_v53 = vadd.f32 %v2818_v25, %v2706_v48 }
0x1030   :  { %v2683_v6 = vmul.f32 %v2978_v62, %v2682_v11  ;;  %v2689_v17 = vmul.f32 %v2980_v43, %v2657_v38  ;;  %vm2695_vm7 = vweird.f32 %v2980_v43 }
0x1031   :  { %2717 = vst [vmem:[#allocation17 + $0x8] sm:$0xff] %v2713_v53  ;;  %vm2696_vm10 = vmor %vm2694_vm9, %vm2695_vm7 }
0x1032   :  { %v2687_v60 = vsel %vm2686_vm6, %v2978_v62, %v2683_v6  ;;  %v2690_v22 = vmul.f32 %v2980_v43, %v2689_v17 }
0x1033   :  { %v2700_v42 = vmul.f32 %v2687_v60, %v4114_v57 }
0x1034   :  { %v2691_v13 = vmul.f32 0.5, %v2690_v22 }
0x1035   :  { %v2707_v41 = vmul.f32 %v2817_v0, %v2700_v42 }
0x1036   :  { %v2692_v56 = vsub.f32 1.5, %v2691_v13 }
0x1037   :  { %v2714_v19 = vadd.f32 %v2818_v25, %v2707_v41 }
0x1038   :  { %v2693_v36 = vmul.f32 %v2980_v43, %v2692_v56 }
0x1039   :  { %2718 = vst [vmem:[#allocation17 + $0x10] sm:$0xff] %v2714_v19 }
0x103a   :  { %v2697_v18 = vsel %vm2696_vm10, %v2980_v43, %v2693_v36 }
0x103b   :  { %v2701_v8 = vmul.f32 %v2697_v18, %v4119_v30 }
0x103d   :  { %v2708_v20 = vmul.f32 %v2817_v0, %v2701_v8 }
0x103f   :  { %v2715_v39 = vadd.f32 %v2818_v25, %v2708_v20 }
0x1041   :  { %2719 = vst [vmem:[#allocation17 + $0x18] sm:$0xff] %v2715_v39 }
0x1042   :  { %2732 = dma.vmem_to_hbm [thread:$0]  %s2725_s13, 512, %s2727_s8, [#allocation4], %s3234_s21, %s3234_s21, %s3235_s22  }
0x1043   :  { %3231 = dma.done.wait [#allocation4], 512  }
0x1044   :  { %3232 = vsyncadd [#allocation4], 4294966784 }
0x1045   :  { %2737 = vsyncpa [#allocation3], 1 }
0x1046   :  { %2738 = vsyncpa [#allocation6], 1 }
0x1047   :  { %2739 = vsyncpa [#allocation9], 1 }
0x1048   :  { %2740 = vsyncpa [#allocation12], 1 }
0x1049   :  { %2741 = vsyncpa [#allocation15], 1 }
0x104a   :  { %2742 = vsyncpa [#allocation4], 1 }

</bundles_post_ra>
